<compile_context>
chip_gen: v7x
topology: tpu7x:2x2x1
jax: 0.10.0
libtpu: 0.0.40
codegen_flags: <defaults>
</compile_context>

<pallas_src>
import jax
import jax.numpy as jnp
from jax import lax
from jax.experimental import pallas as pl
from jax.experimental.pallas import tpu as pltpu

KH = KW = 9
PAD = 4


def _make_kernel(C, Wp, TQ, TQ_EXT, K_PAD):
    KC = KH * KW * C  # true contraction length (243 for C=3)

    def kernel(xwin_ref, w_ref, o_ref, p_ref):
        # xwin_ref: (C, TQ_EXT)  window of flattened padded input for this tile
        # w_ref:    (O, K_PAD)   reordered weight; column KC holds bias + 3
        # o_ref:    (O, TQ)      lane-dense output tile (Wp-strided flat index)
        # p_ref:    (K_PAD, TQ)  transposed im2col patch scratch

        # ---- in-kernel im2col: 81 static window slices, C rows at a time ----
        for di in range(KH):
            for dj in range(KW):
                off = di * Wp + dj
                base = (di * KW + dj) * C
                p_ref[pl.ds(base, C), :] = xwin_ref[:, pl.ds(off, TQ)]

        # bias row (ones) + zero the unused padded-K rows (scratch is uninit;
        # written every grid step so it is megacore-safe).
        p_ref[pl.ds(KC, 1), :] = jnp.ones((1, TQ), jnp.float32)
        p_ref[pl.ds(KC + 1, K_PAD - KC - 1), :] = jnp.zeros(
            (K_PAD - KC - 1, TQ), jnp.float32)

        # ---- (O, K_PAD) @ (K_PAD, TQ) -> (O, TQ) on the MXU ----
        acc = lax.dot_general(
            w_ref[...], p_ref[...],
            dimension_numbers=(((1,), (0,)), ((), ())),
            preferred_element_type=jnp.float32)

        # hardsigmoid-style epilogue ("+3" already folded into the bias column)
        o_ref[...] = (jnp.clip(acc, 0.0, 6.0) * (1.0 / 6.0)).astype(o_ref.dtype)

    return kernel


def conv_hardsigmoid_pallas(x, weight, bias, *, tile_q=None):
    """x: (N, C, H, W) f32; weight: (O, C, 9, 9); bias: (O,).

    Returns (N, O, H, W) == (3 + conv2d(x, weight, bias, pad=4)).clamp(0, 6) / 6.
    """
    N, C, H, W = x.shape
    O = weight.shape[0]
    Hp, Wp = H + 2 * PAD, W + 2 * PAD
    KC = C * KH * KW
    K_PAD = 256  # pad contraction 243 -> 256 for a clean MXU pass

    # Flat (Wp-strided) output positions per image; columns w in [W, Wp) are
    # garbage and dropped at the end.
    Mq = H * Wp
    if tile_q is None:
        # multiple of 128, >= 512 when possible, and aim for >= 2 grid steps
        # (v7x has 2 TensorCores).
        tile_q = min(1024, max(512, 128 * ((Mq + 255) // 256)))
    TQ = tile_q
    nt = (Mq + TQ - 1) // TQ
    TQ_EXT = ((TQ + 8 * Wp + 8 + 127) // 128) * 128  # covers max offset 8*Wp+8

    # Flatten padded input per channel; zero-pad the tail so every window slice
    # is in bounds (padding is only read by discarded columns).
    x_pad = jnp.pad(x, ((0, 0), (0, 0), (PAD, PAD), (PAD, PAD)))
    x_flat = x_pad.reshape(N, C, Hp * Wp).astype(jnp.float32)
    L_need = (nt - 1) * TQ + TQ_EXT
    if L_need > Hp * Wp:
        x_flat = jnp.pad(x_flat, ((0, 0), (0, 0), (0, L_need - Hp * Wp)))

    # Overlapping windows (~1.3-1.5x the raw input, vs 81x for full im2col).
    windows = jnp.stack(
        [x_flat[:, :, i * TQ:i * TQ + TQ_EXT] for i in range(nt)], axis=1)

    # Weight reordered to k = (di, dj, c); bias + 3 folded into column KC.
    w_perm = jnp.transpose(weight, (0, 2, 3, 1)).reshape(O, KC).astype(jnp.float32)
    w_pad = jnp.zeros((O, K_PAD), jnp.float32)
    w_pad = w_pad.at[:, :KC].set(w_perm)
    w_pad = w_pad.at[:, KC].set(bias.astype(jnp.float32) + 3.0)

    kernel = _make_kernel(C, Wp, TQ, TQ_EXT, K_PAD)

    flops = 2 * N * H * W * O * KC
    bytes_accessed = 4 * (x.size + weight.size + bias.size + N * O * H * W)

    out_flat = pl.pallas_call(
        kernel,
        out_shape=jax.ShapeDtypeStruct((N, O, nt * TQ), jnp.float32),
        grid_spec=pltpu.PrefetchScalarGridSpec(
            num_scalar_prefetch=0,
            grid=(N, nt),
            in_specs=[
                pl.BlockSpec((None, None, C, TQ_EXT), lambda n, i: (n, i, 0, 0)),
                pl.BlockSpec((O, K_PAD), lambda n, i: (0, 0)),
            ],
            out_specs=pl.BlockSpec((None, O, TQ), lambda n, i: (n, 0, i)),
            scratch_shapes=[pltpu.VMEM((K_PAD, TQ), jnp.float32)],
        ),
        compiler_params=pltpu.CompilerParams(
            dimension_semantics=("parallel", "parallel"),
            vmem_limit_bytes=32 * 1024 * 1024),
        cost_estimate=pl.CostEstimate(
            flops=flops, transcendentals=0, bytes_accessed=bytes_accessed),
    )(windows, w_pad)

    # Drop the Wp-W garbage columns and return NCHW.
    out = out_flat[:, :, :H * Wp].reshape(N, O, H, Wp)[:, :, :, :W]
    return out


def _reference(x, weight, bias):
    conv = jax.lax.conv_general_dilated(
        x, weight,
        window_strides=(1, 1),
        padding=((PAD, PAD), (PAD, PAD)),
        dimension_numbers=("NCHW", "OIHW", "NCHW"),
    ) + bias.reshape(1, -1, 1, 1)
    return jnp.clip(3.0 + conv, 0.0, 6.0) / 6.0


if __name__ == "__main__":
    key = jax.random.PRNGKey(0)
    kx, kw, kb = jax.random.split(key, 3)

    # Small shapes consistent with the module (Conv2d(3, 8, 9, padding=4)).
    N, C, H, W = 1, 3, 32, 32
    O = 8

    x = jax.random.normal(kx, (N, C, H, W), dtype=jnp.float32)
    fan_in = C * KH * KW
    bound = 1.0 / (fan_in ** 0.5)
    weight = jax.random.uniform(kw, (O, C, KH, KW), jnp.float32, -bound, bound)
    bias = jax.random.uniform(kb, (O,), jnp.float32, -bound, bound)

    out = conv_hardsigmoid_pallas(x, weight, bias)
    out = jax.block_until_ready(out)

    ref = _reference(x, weight, bias)
    assert out.shape == (N, O, H, W)
    assert jnp.allclose(out, ref, atol=1e-4, rtol=1e-4), "mismatch vs reference"

    print("KERNEL_OK")
</pallas_src>

<mosaic_0001>
module attributes {stable_mosaic.version = 11 : i64} {
  func.func @kernel(%arg0: i32, %arg1: i32, %arg2: memref<1x1x3x1024xf32, #tpu.memory_space<vmem>>, %arg3: memref<8x256xf32, #tpu.memory_space<vmem>>, %arg4: memref<1x8x640xf32, #tpu.memory_space<vmem>>, %arg5: memref<256x640xf32, #tpu.memory_space<vmem>>) attributes {dimension_semantics = [#tpu.dimension_semantics<parallel>, #tpu.dimension_semantics<parallel>], iteration_bounds = array<i64: 1, 2>, scalar_prefetch = 0 : i64, scratch_operands = 1 : i64, tpu.core_type = #tpu.core_type<tc>, window_params = [{transform_indices = @transform_0, window_bounds = array<i64: 1, 1, 3, 1024>}, {pipeline_mode = #tpu.pipeline_mode<synchronous>, transform_indices = @transform_1, window_bounds = array<i64: 8, 256>}, {transform_indices = @transform_2, window_bounds = array<i64: 1, 8, 640>}]} {
    %c0 = arith.constant 0 : index
    %c0_0 = arith.constant 0 : index
    %c0_1 = arith.constant 0 : index
    %c0_2 = arith.constant 0 : index
    %0 = vector.load %arg2[%c0, %c0_0, %c0_1, %c0_2] : memref<1x1x3x1024xf32, #tpu.memory_space<vmem>>, vector<1x1x3x640xf32>
    %1 = vector.shape_cast %0 : vector<1x1x3x640xf32> to vector<3x640xf32>
    %c0_3 = arith.constant 0 : index
    %c0_4 = arith.constant 0 : index
    %2 = vector.load %arg5[%c0_3, %c0_4] : memref<256x640xf32, #tpu.memory_space<vmem>>, vector<3x640xf32>
    tpu.vector_store %arg5[%c0_3, %c0_4], %1 {strides = array<i32>} : memref<256x640xf32, #tpu.memory_space<vmem>>, vector<3x640xf32>,
    %c0_5 = arith.constant 0 : index
    %c0_6 = arith.constant 0 : index
    %c0_7 = arith.constant 0 : index
    %c1 = arith.constant 1 : index
    %3 = vector.load %arg2[%c0_5, %c0_6, %c0_7, %c1] : memref<1x1x3x1024xf32, #tpu.memory_space<vmem>>, vector<1x1x3x640xf32>
    %4 = vector.shape_cast %3 : vector<1x1x3x640xf32> to vector<3x640xf32>
    %c3 = arith.constant 3 : index
    %c0_8 = arith.constant 0 : index
    %5 = vector.load %arg5[%c3, %c0_8] : memref<256x640xf32, #tpu.memory_space<vmem>>, vector<3x640xf32>
    tpu.vector_store %arg5[%c3, %c0_8], %4 {strides = array<i32>} : memref<256x640xf32, #tpu.memory_space<vmem>>, vector<3x640xf32>,
    %c0_9 = arith.constant 0 : index
    %c0_10 = arith.constant 0 : index
    %c0_11 = arith.constant 0 : index
    %c2 = arith.constant 2 : index
    %6 = vector.load %arg2[%c0_9, %c0_10, %c0_11, %c2] : memref<1x1x3x1024xf32, #tpu.memory_space<vmem>>, vector<1x1x3x640xf32>
    %7 = vector.shape_cast %6 : vector<1x1x3x640xf32> to vector<3x640xf32>
    %c6 = arith.constant 6 : index
    %c0_12 = arith.constant 0 : index
    %8 = vector.load %arg5[%c6, %c0_12] : memref<256x640xf32, #tpu.memory_space<vmem>>, vector<3x640xf32>
    tpu.vector_store %arg5[%c6, %c0_12], %7 {strides = array<i32>} : memref<256x640xf32, #tpu.memory_space<vmem>>, vector<3x640xf32>,
    %c0_13 = arith.constant 0 : index
    %c0_14 = arith.constant 0 : index
    %c0_15 = arith.constant 0 : index
    %c3_16 = arith.constant 3 : index
    %9 = vector.load %arg2[%c0_13, %c0_14, %c0_15, %c3_16] : memref<1x1x3x1024xf32, #tpu.memory_space<vmem>>, vector<1x1x3x640xf32>
    %10 = vector.shape_cast %9 : vector<1x1x3x640xf32> to vector<3x640xf32>
    %c9 = arith.constant 9 : index
    %c0_17 = arith.constant 0 : index
    %11 = vector.load %arg5[%c9, %c0_17] : memref<256x640xf32, #tpu.memory_space<vmem>>, vector<3x640xf32>
    tpu.vector_store %arg5[%c9, %c0_17], %10 {strides = array<i32>} : memref<256x640xf32, #tpu.memory_space<vmem>>, vector<3x640xf32>,
    %c0_18 = arith.constant 0 : index
    %c0_19 = arith.constant 0 : index
    %c0_20 = arith.constant 0 : index
    %c4 = arith.constant 4 : index
    %12 = vector.load %arg2[%c0_18, %c0_19, %c0_20, %c4] : memref<1x1x3x1024xf32, #tpu.memory_space<vmem>>, vector<1x1x3x640xf32>
    %13 = vector.shape_cast %12 : vector<1x1x3x640xf32> to vector<3x640xf32>
    %c12 = arith.constant 12 : index
    %c0_21 = arith.constant 0 : index
    %14 = vector.load %arg5[%c12, %c0_21] : memref<256x640xf32, #tpu.memory_space<vmem>>, vector<3x640xf32>
    tpu.vector_store %arg5[%c12, %c0_21], %13 {strides = array<i32>} : memref<256x640xf32, #tpu.memory_space<vmem>>, vector<3x640xf32>,
    %c0_22 = arith.constant 0 : index
    %c0_23 = arith.constant 0 : index
    %c0_24 = arith.constant 0 : index
    %c5 = arith.constant 5 : index
    %15 = vector.load %arg2[%c0_22, %c0_23, %c0_24, %c5] : memref<1x1x3x1024xf32, #tpu.memory_space<vmem>>, vector<1x1x3x640xf32>
    %16 = vector.shape_cast %15 : vector<1x1x3x640xf32> to vector<3x640xf32>
    %c15 = arith.constant 15 : index
    %c0_25 = arith.constant 0 : index
    %17 = vector.load %arg5[%c15, %c0_25] : memref<256x640xf32, #tpu.memory_space<vmem>>, vector<3x640xf32>
    tpu.vector_store %arg5[%c15, %c0_25], %16 {strides = array<i32>} : memref<256x640xf32, #tpu.memory_space<vmem>>, vector<3x640xf32>,
    %c0_26 = arith.constant 0 : index
    %c0_27 = arith.constant 0 : index
    %c0_28 = arith.constant 0 : index
    %c6_29 = arith.constant 6 : index
    %18 = vector.load %arg2[%c0_26, %c0_27, %c0_28, %c6_29] : memref<1x1x3x1024xf32, #tpu.memory_space<vmem>>, vector<1x1x3x640xf32>
    %19 = vector.shape_cast %18 : vector<1x1x3x640xf32> to vector<3x640xf32>
    %c18 = arith.constant 18 : index
    %c0_30 = arith.constant 0 : index
    %20 = vector.load %arg5[%c18, %c0_30] : memref<256x640xf32, #tpu.memory_space<vmem>>, vector<3x640xf32>
    tpu.vector_store %arg5[%c18, %c0_30], %19 {strides = array<i32>} : memref<256x640xf32, #tpu.memory_space<vmem>>, vector<3x640xf32>,
    %c0_31 = arith.constant 0 : index
    %c0_32 = arith.constant 0 : index
    %c0_33 = arith.constant 0 : index
    %c7 = arith.constant 7 : index
    %21 = vector.load %arg2[%c0_31, %c0_32, %c0_33, %c7] : memref<1x1x3x1024xf32, #tpu.memory_space<vmem>>, vector<1x1x3x640xf32>
    %22 = vector.shape_cast %21 : vector<1x1x3x640xf32> to vector<3x640xf32>
    %c21 = arith.constant 21 : index
    %c0_34 = arith.constant 0 : index
    %23 = vector.load %arg5[%c21, %c0_34] : memref<256x640xf32, #tpu.memory_space<vmem>>, vector<3x640xf32>
    tpu.vector_store %arg5[%c21, %c0_34], %22 {strides = array<i32>} : memref<256x640xf32, #tpu.memory_space<vmem>>, vector<3x640xf32>,
    %c0_35 = arith.constant 0 : index
    %c0_36 = arith.constant 0 : index
    %c0_37 = arith.constant 0 : index
    %c8 = arith.constant 8 : index
    %24 = vector.load %arg2[%c0_35, %c0_36, %c0_37, %c8] : memref<1x1x3x1024xf32, #tpu.memory_space<vmem>>, vector<1x1x3x640xf32>
    %25 = vector.shape_cast %24 : vector<1x1x3x640xf32> to vector<3x640xf32>
    %c24 = arith.constant 24 : index
    %c0_38 = arith.constant 0 : index
    %26 = vector.load %arg5[%c24, %c0_38] : memref<256x640xf32, #tpu.memory_space<vmem>>, vector<3x640xf32>
    tpu.vector_store %arg5[%c24, %c0_38], %25 {strides = array<i32>} : memref<256x640xf32, #tpu.memory_space<vmem>>, vector<3x640xf32>,
    %c0_39 = arith.constant 0 : index
    %c0_40 = arith.constant 0 : index
    %c0_41 = arith.constant 0 : index
    %c40 = arith.constant 40 : index
    %27 = vector.load %arg2[%c0_39, %c0_40, %c0_41, %c40] : memref<1x1x3x1024xf32, #tpu.memory_space<vmem>>, vector<1x1x3x640xf32>
    %28 = vector.shape_cast %27 : vector<1x1x3x640xf32> to vector<3x640xf32>
    %c27 = arith.constant 27 : index
    %c0_42 = arith.constant 0 : index
    %29 = vector.load %arg5[%c27, %c0_42] : memref<256x640xf32, #tpu.memory_space<vmem>>, vector<3x640xf32>
    tpu.vector_store %arg5[%c27, %c0_42], %28 {strides = array<i32>} : memref<256x640xf32, #tpu.memory_space<vmem>>, vector<3x640xf32>,
    %c0_43 = arith.constant 0 : index
    %c0_44 = arith.constant 0 : index
    %c0_45 = arith.constant 0 : index
    %c41 = arith.constant 41 : index
    %30 = vector.load %arg2[%c0_43, %c0_44, %c0_45, %c41] : memref<1x1x3x1024xf32, #tpu.memory_space<vmem>>, vector<1x1x3x640xf32>
    %31 = vector.shape_cast %30 : vector<1x1x3x640xf32> to vector<3x640xf32>
    %c30 = arith.constant 30 : index
    %c0_46 = arith.constant 0 : index
    %32 = vector.load %arg5[%c30, %c0_46] : memref<256x640xf32, #tpu.memory_space<vmem>>, vector<3x640xf32>
    tpu.vector_store %arg5[%c30, %c0_46], %31 {strides = array<i32>} : memref<256x640xf32, #tpu.memory_space<vmem>>, vector<3x640xf32>,
    %c0_47 = arith.constant 0 : index
    %c0_48 = arith.constant 0 : index
    %c0_49 = arith.constant 0 : index
    %c42 = arith.constant 42 : index
    %33 = vector.load %arg2[%c0_47, %c0_48, %c0_49, %c42] : memref<1x1x3x1024xf32, #tpu.memory_space<vmem>>, vector<1x1x3x640xf32>
    %34 = vector.shape_cast %33 : vector<1x1x3x640xf32> to vector<3x640xf32>
    %c33 = arith.constant 33 : index
    %c0_50 = arith.constant 0 : index
    %35 = vector.load %arg5[%c33, %c0_50] : memref<256x640xf32, #tpu.memory_space<vmem>>, vector<3x640xf32>
    tpu.vector_store %arg5[%c33, %c0_50], %34 {strides = array<i32>} : memref<256x640xf32, #tpu.memory_space<vmem>>, vector<3x640xf32>,
    %c0_51 = arith.constant 0 : index
    %c0_52 = arith.constant 0 : index
    %c0_53 = arith.constant 0 : index
    %c43 = arith.constant 43 : index
    %36 = vector.load %arg2[%c0_51, %c0_52, %c0_53, %c43] : memref<1x1x3x1024xf32, #tpu.memory_space<vmem>>, vector<1x1x3x640xf32>
    %37 = vector.shape_cast %36 : vector<1x1x3x640xf32> to vector<3x640xf32>
    %c36 = arith.constant 36 : index
    %c0_54 = arith.constant 0 : index
    %38 = vector.load %arg5[%c36, %c0_54] : memref<256x640xf32, #tpu.memory_space<vmem>>, vector<3x640xf32>
    tpu.vector_store %arg5[%c36, %c0_54], %37 {strides = array<i32>} : memref<256x640xf32, #tpu.memory_space<vmem>>, vector<3x640xf32>,
    %c0_55 = arith.constant 0 : index
    %c0_56 = arith.constant 0 : index
    %c0_57 = arith.constant 0 : index
    %c44 = arith.constant 44 : index
    %39 = vector.load %arg2[%c0_55, %c0_56, %c0_57, %c44] : memref<1x1x3x1024xf32, #tpu.memory_space<vmem>>, vector<1x1x3x640xf32>
    %40 = vector.shape_cast %39 : vector<1x1x3x640xf32> to vector<3x640xf32>
    %c39 = arith.constant 39 : index
    %c0_58 = arith.constant 0 : index
    %41 = vector.load %arg5[%c39, %c0_58] : memref<256x640xf32, #tpu.memory_space<vmem>>, vector<3x640xf32>
    tpu.vector_store %arg5[%c39, %c0_58], %40 {strides = array<i32>} : memref<256x640xf32, #tpu.memory_space<vmem>>, vector<3x640xf32>,
    %c0_59 = arith.constant 0 : index
    %c0_60 = arith.constant 0 : index
    %c0_61 = arith.constant 0 : index
    %c45 = arith.constant 45 : index
    %42 = vector.load %arg2[%c0_59, %c0_60, %c0_61, %c45] : memref<1x1x3x1024xf32, #tpu.memory_space<vmem>>, vector<1x1x3x640xf32>
    %43 = vector.shape_cast %42 : vector<1x1x3x640xf32> to vector<3x640xf32>
    %c42_62 = arith.constant 42 : index
    %c0_63 = arith.constant 0 : index
    %44 = vector.load %arg5[%c42_62, %c0_63] : memref<256x640xf32, #tpu.memory_space<vmem>>, vector<3x640xf32>
    tpu.vector_store %arg5[%c42_62, %c0_63], %43 {strides = array<i32>} : memref<256x640xf32, #tpu.memory_space<vmem>>, vector<3x640xf32>,
    %c0_64 = arith.constant 0 : index
    %c0_65 = arith.constant 0 : index
    %c0_66 = arith.constant 0 : index
    %c46 = arith.constant 46 : index
    %45 = vector.load %arg2[%c0_64, %c0_65, %c0_66, %c46] : memref<1x1x3x1024xf32, #tpu.memory_space<vmem>>, vector<1x1x3x640xf32>
    %46 = vector.shape_cast %45 : vector<1x1x3x640xf32> to vector<3x640xf32>
    %c45_67 = arith.constant 45 : index
    %c0_68 = arith.constant 0 : index
    %47 = vector.load %arg5[%c45_67, %c0_68] : memref<256x640xf32, #tpu.memory_space<vmem>>, vector<3x640xf32>
    tpu.vector_store %arg5[%c45_67, %c0_68], %46 {strides = array<i32>} : memref<256x640xf32, #tpu.memory_space<vmem>>, vector<3x640xf32>,
    %c0_69 = arith.constant 0 : index
    %c0_70 = arith.constant 0 : index
    %c0_71 = arith.constant 0 : index
    %c47 = arith.constant 47 : index
    %48 = vector.load %arg2[%c0_69, %c0_70, %c0_71, %c47] : memref<1x1x3x1024xf32, #tpu.memory_space<vmem>>, vector<1x1x3x640xf32>
    %49 = vector.shape_cast %48 : vector<1x1x3x640xf32> to vector<3x640xf32>
    %c48 = arith.constant 48 : index
    %c0_72 = arith.constant 0 : index
    %50 = vector.load %arg5[%c48, %c0_72] : memref<256x640xf32, #tpu.memory_space<vmem>>, vector<3x640xf32>
    tpu.vector_store %arg5[%c48, %c0_72], %49 {strides = array<i32>} : memref<256x640xf32, #tpu.memory_space<vmem>>, vector<3x640xf32>,
    %c0_73 = arith.constant 0 : index
    %c0_74 = arith.constant 0 : index
    %c0_75 = arith.constant 0 : index
    %c48_76 = arith.constant 48 : index
    %51 = vector.load %arg2[%c0_73, %c0_74, %c0_75, %c48_76] : memref<1x1x3x1024xf32, #tpu.memory_space<vmem>>, vector<1x1x3x640xf32>
    %52 = vector.shape_cast %51 : vector<1x1x3x640xf32> to vector<3x640xf32>
    %c51 = arith.constant 51 : index
    %c0_77 = arith.constant 0 : index
    %53 = vector.load %arg5[%c51, %c0_77] : memref<256x640xf32, #tpu.memory_space<vmem>>, vector<3x640xf32>
    tpu.vector_store %arg5[%c51, %c0_77], %52 {strides = array<i32>} : memref<256x640xf32, #tpu.memory_space<vmem>>, vector<3x640xf32>,
    %c0_78 = arith.constant 0 : index
    %c0_79 = arith.constant 0 : index
    %c0_80 = arith.constant 0 : index
    %c80 = arith.constant 80 : index
    %54 = vector.load %arg2[%c0_78, %c0_79, %c0_80, %c80] : memref<1x1x3x1024xf32, #tpu.memory_space<vmem>>, vector<1x1x3x640xf32>
    %55 = vector.shape_cast %54 : vector<1x1x3x640xf32> to vector<3x640xf32>
    %c54 = arith.constant 54 : index
    %c0_81 = arith.constant 0 : index
    %56 = vector.load %arg5[%c54, %c0_81] : memref<256x640xf32, #tpu.memory_space<vmem>>, vector<3x640xf32>
    tpu.vector_store %arg5[%c54, %c0_81], %55 {strides = array<i32>} : memref<256x640xf32, #tpu.memory_space<vmem>>, vector<3x640xf32>,
    %c0_82 = arith.constant 0 : index
    %c0_83 = arith.constant 0 : index
    %c0_84 = arith.constant 0 : index
    %c81 = arith.constant 81 : index
    %57 = vector.load %arg2[%c0_82, %c0_83, %c0_84, %c81] : memref<1x1x3x1024xf32, #tpu.memory_space<vmem>>, vector<1x1x3x640xf32>
    %58 = vector.shape_cast %57 : vector<1x1x3x640xf32> to vector<3x640xf32>
    %c57 = arith.constant 57 : index
    %c0_85 = arith.constant 0 : index
    %59 = vector.load %arg5[%c57, %c0_85] : memref<256x640xf32, #tpu.memory_space<vmem>>, vector<3x640xf32>
    tpu.vector_store %arg5[%c57, %c0_85], %58 {strides = array<i32>} : memref<256x640xf32, #tpu.memory_space<vmem>>, vector<3x640xf32>,
    %c0_86 = arith.constant 0 : index
    %c0_87 = arith.constant 0 : index
    %c0_88 = arith.constant 0 : index
    %c82 = arith.constant 82 : index
    %60 = vector.load %arg2[%c0_86, %c0_87, %c0_88, %c82] : memref<1x1x3x1024xf32, #tpu.memory_space<vmem>>, vector<1x1x3x640xf32>
    %61 = vector.shape_cast %60 : vector<1x1x3x640xf32> to vector<3x640xf32>
    %c60 = arith.constant 60 : index
    %c0_89 = arith.constant 0 : index
    %62 = vector.load %arg5[%c60, %c0_89] : memref<256x640xf32, #tpu.memory_space<vmem>>, vector<3x640xf32>
    tpu.vector_store %arg5[%c60, %c0_89], %61 {strides = array<i32>} : memref<256x640xf32, #tpu.memory_space<vmem>>, vector<3x640xf32>,
    %c0_90 = arith.constant 0 : index
    %c0_91 = arith.constant 0 : index
    %c0_92 = arith.constant 0 : index
    %c83 = arith.constant 83 : index
    %63 = vector.load %arg2[%c0_90, %c0_91, %c0_92, %c83] : memref<1x1x3x1024xf32, #tpu.memory_space<vmem>>, vector<1x1x3x640xf32>
    %64 = vector.shape_cast %63 : vector<1x1x3x640xf32> to vector<3x640xf32>
    %c63 = arith.constant 63 : index
    %c0_93 = arith.constant 0 : index
    %65 = vector.load %arg5[%c63, %c0_93] : memref<256x640xf32, #tpu.memory_space<vmem>>, vector<3x640xf32>
    tpu.vector_store %arg5[%c63, %c0_93], %64 {strides = array<i32>} : memref<256x640xf32, #tpu.memory_space<vmem>>, vector<3x640xf32>,
    %c0_94 = arith.constant 0 : index
    %c0_95 = arith.constant 0 : index
    %c0_96 = arith.constant 0 : index
    %c84 = arith.constant 84 : index
    %66 = vector.load %arg2[%c0_94, %c0_95, %c0_96, %c84] : memref<1x1x3x1024xf32, #tpu.memory_space<vmem>>, vector<1x1x3x640xf32>
    %67 = vector.shape_cast %66 : vector<1x1x3x640xf32> to vector<3x640xf32>
    %c66 = arith.constant 66 : index
    %c0_97 = arith.constant 0 : index
    %68 = vector.load %arg5[%c66, %c0_97] : memref<256x640xf32, #tpu.memory_space<vmem>>, vector<3x640xf32>
    tpu.vector_store %arg5[%c66, %c0_97], %67 {strides = array<i32>} : memref<256x640xf32, #tpu.memory_space<vmem>>, vector<3x640xf32>,
    %c0_98 = arith.constant 0 : index
    %c0_99 = arith.constant 0 : index
    %c0_100 = arith.constant 0 : index
    %c85 = arith.constant 85 : index
    %69 = vector.load %arg2[%c0_98, %c0_99, %c0_100, %c85] : memref<1x1x3x1024xf32, #tpu.memory_space<vmem>>, vector<1x1x3x640xf32>
    %70 = vector.shape_cast %69 : vector<1x1x3x640xf32> to vector<3x640xf32>
    %c69 = arith.constant 69 : index
    %c0_101 = arith.constant 0 : index
    %71 = vector.load %arg5[%c69, %c0_101] : memref<256x640xf32, #tpu.memory_space<vmem>>, vector<3x640xf32>
    tpu.vector_store %arg5[%c69, %c0_101], %70 {strides = array<i32>} : memref<256x640xf32, #tpu.memory_space<vmem>>, vector<3x640xf32>,
    %c0_102 = arith.constant 0 : index
    %c0_103 = arith.constant 0 : index
    %c0_104 = arith.constant 0 : index
    %c86 = arith.constant 86 : index
    %72 = vector.load %arg2[%c0_102, %c0_103, %c0_104, %c86] : memref<1x1x3x1024xf32, #tpu.memory_space<vmem>>, vector<1x1x3x640xf32>
    %73 = vector.shape_cast %72 : vector<1x1x3x640xf32> to vector<3x640xf32>
    %c72 = arith.constant 72 : index
    %c0_105 = arith.constant 0 : index
    %74 = vector.load %arg5[%c72, %c0_105] : memref<256x640xf32, #tpu.memory_space<vmem>>, vector<3x640xf32>
    tpu.vector_store %arg5[%c72, %c0_105], %73 {strides = array<i32>} : memref<256x640xf32, #tpu.memory_space<vmem>>, vector<3x640xf32>,
    %c0_106 = arith.constant 0 : index
    %c0_107 = arith.constant 0 : index
    %c0_108 = arith.constant 0 : index
    %c87 = arith.constant 87 : index
    %75 = vector.load %arg2[%c0_106, %c0_107, %c0_108, %c87] : memref<1x1x3x1024xf32, #tpu.memory_space<vmem>>, vector<1x1x3x640xf32>
    %76 = vector.shape_cast %75 : vector<1x1x3x640xf32> to vector<3x640xf32>
    %c75 = arith.constant 75 : index
    %c0_109 = arith.constant 0 : index
    %77 = vector.load %arg5[%c75, %c0_109] : memref<256x640xf32, #tpu.memory_space<vmem>>, vector<3x640xf32>
    tpu.vector_store %arg5[%c75, %c0_109], %76 {strides = array<i32>} : memref<256x640xf32, #tpu.memory_space<vmem>>, vector<3x640xf32>,
    %c0_110 = arith.constant 0 : index
    %c0_111 = arith.constant 0 : index
    %c0_112 = arith.constant 0 : index
    %c88 = arith.constant 88 : index
    %78 = vector.load %arg2[%c0_110, %c0_111, %c0_112, %c88] : memref<1x1x3x1024xf32, #tpu.memory_space<vmem>>, vector<1x1x3x640xf32>
    %79 = vector.shape_cast %78 : vector<1x1x3x640xf32> to vector<3x640xf32>
    %c78 = arith.constant 78 : index
    %c0_113 = arith.constant 0 : index
    %80 = vector.load %arg5[%c78, %c0_113] : memref<256x640xf32, #tpu.memory_space<vmem>>, vector<3x640xf32>
    tpu.vector_store %arg5[%c78, %c0_113], %79 {strides = array<i32>} : memref<256x640xf32, #tpu.memory_space<vmem>>, vector<3x640xf32>,
    %c0_114 = arith.constant 0 : index
    %c0_115 = arith.constant 0 : index
    %c0_116 = arith.constant 0 : index
    %c120 = arith.constant 120 : index
    %81 = vector.load %arg2[%c0_114, %c0_115, %c0_116, %c120] : memref<1x1x3x1024xf32, #tpu.memory_space<vmem>>, vector<1x1x3x640xf32>
    %82 = vector.shape_cast %81 : vector<1x1x3x640xf32> to vector<3x640xf32>
    %c81_117 = arith.constant 81 : index
    %c0_118 = arith.constant 0 : index
    %83 = vector.load %arg5[%c81_117, %c0_118] : memref<256x640xf32, #tpu.memory_space<vmem>>, vector<3x640xf32>
    tpu.vector_store %arg5[%c81_117, %c0_118], %82 {strides = array<i32>} : memref<256x640xf32, #tpu.memory_space<vmem>>, vector<3x640xf32>,
    %c0_119 = arith.constant 0 : index
    %c0_120 = arith.constant 0 : index
    %c0_121 = arith.constant 0 : index
    %c121 = arith.constant 121 : index
    %84 = vector.load %arg2[%c0_119, %c0_120, %c0_121, %c121] : memref<1x1x3x1024xf32, #tpu.memory_space<vmem>>, vector<1x1x3x640xf32>
    %85 = vector.shape_cast %84 : vector<1x1x3x640xf32> to vector<3x640xf32>
    %c84_122 = arith.constant 84 : index
    %c0_123 = arith.constant 0 : index
    %86 = vector.load %arg5[%c84_122, %c0_123] : memref<256x640xf32, #tpu.memory_space<vmem>>, vector<3x640xf32>
    tpu.vector_store %arg5[%c84_122, %c0_123], %85 {strides = array<i32>} : memref<256x640xf32, #tpu.memory_space<vmem>>, vector<3x640xf32>,
    %c0_124 = arith.constant 0 : index
    %c0_125 = arith.constant 0 : index
    %c0_126 = arith.constant 0 : index
    %c122 = arith.constant 122 : index
    %87 = vector.load %arg2[%c0_124, %c0_125, %c0_126, %c122] : memref<1x1x3x1024xf32, #tpu.memory_space<vmem>>, vector<1x1x3x640xf32>
    %88 = vector.shape_cast %87 : vector<1x1x3x640xf32> to vector<3x640xf32>
    %c87_127 = arith.constant 87 : index
    %c0_128 = arith.constant 0 : index
    %89 = vector.load %arg5[%c87_127, %c0_128] : memref<256x640xf32, #tpu.memory_space<vmem>>, vector<3x640xf32>
    tpu.vector_store %arg5[%c87_127, %c0_128], %88 {strides = array<i32>} : memref<256x640xf32, #tpu.memory_space<vmem>>, vector<3x640xf32>,
    %c0_129 = arith.constant 0 : index
    %c0_130 = arith.constant 0 : index
    %c0_131 = arith.constant 0 : index
    %c123 = arith.constant 123 : index
    %90 = vector.load %arg2[%c0_129, %c0_130, %c0_131, %c123] : memref<1x1x3x1024xf32, #tpu.memory_space<vmem>>, vector<1x1x3x640xf32>
    %91 = vector.shape_cast %90 : vector<1x1x3x640xf32> to vector<3x640xf32>
    %c90 = arith.constant 90 : index
    %c0_132 = arith.constant 0 : index
    %92 = vector.load %arg5[%c90, %c0_132] : memref<256x640xf32, #tpu.memory_space<vmem>>, vector<3x640xf32>
    tpu.vector_store %arg5[%c90, %c0_132], %91 {strides = array<i32>} : memref<256x640xf32, #tpu.memory_space<vmem>>, vector<3x640xf32>,
    %c0_133 = arith.constant 0 : index
    %c0_134 = arith.constant 0 : index
    %c0_135 = arith.constant 0 : index
    %c124 = arith.constant 124 : index
    %93 = vector.load %arg2[%c0_133, %c0_134, %c0_135, %c124] : memref<1x1x3x1024xf32, #tpu.memory_space<vmem>>, vector<1x1x3x640xf32>
    %94 = vector.shape_cast %93 : vector<1x1x3x640xf32> to vector<3x640xf32>
    %c93 = arith.constant 93 : index
    %c0_136 = arith.constant 0 : index
    %95 = vector.load %arg5[%c93, %c0_136] : memref<256x640xf32, #tpu.memory_space<vmem>>, vector<3x640xf32>
    tpu.vector_store %arg5[%c93, %c0_136], %94 {strides = array<i32>} : memref<256x640xf32, #tpu.memory_space<vmem>>, vector<3x640xf32>,
    %c0_137 = arith.constant 0 : index
    %c0_138 = arith.constant 0 : index
    %c0_139 = arith.constant 0 : index
    %c125 = arith.constant 125 : index
    %96 = vector.load %arg2[%c0_137, %c0_138, %c0_139, %c125] : memref<1x1x3x1024xf32, #tpu.memory_space<vmem>>, vector<1x1x3x640xf32>
    %97 = vector.shape_cast %96 : vector<1x1x3x640xf32> to vector<3x640xf32>
    %c96 = arith.constant 96 : index
    %c0_140 = arith.constant 0 : index
    %98 = vector.load %arg5[%c96, %c0_140] : memref<256x640xf32, #tpu.memory_space<vmem>>, vector<3x640xf32>
    tpu.vector_store %arg5[%c96, %c0_140], %97 {strides = array<i32>} : memref<256x640xf32, #tpu.memory_space<vmem>>, vector<3x640xf32>,
    %c0_141 = arith.constant 0 : index
    %c0_142 = arith.constant 0 : index
    %c0_143 = arith.constant 0 : index
    %c126 = arith.constant 126 : index
    %99 = vector.load %arg2[%c0_141, %c0_142, %c0_143, %c126] : memref<1x1x3x1024xf32, #tpu.memory_space<vmem>>, vector<1x1x3x640xf32>
    %100 = vector.shape_cast %99 : vector<1x1x3x640xf32> to vector<3x640xf32>
    %c99 = arith.constant 99 : index
    %c0_144 = arith.constant 0 : index
    %101 = vector.load %arg5[%c99, %c0_144] : memref<256x640xf32, #tpu.memory_space<vmem>>, vector<3x640xf32>
    tpu.vector_store %arg5[%c99, %c0_144], %100 {strides = array<i32>} : memref<256x640xf32, #tpu.memory_space<vmem>>, vector<3x640xf32>,
    %c0_145 = arith.constant 0 : index
    %c0_146 = arith.constant 0 : index
    %c0_147 = arith.constant 0 : index
    %c127 = arith.constant 127 : index
    %102 = vector.load %arg2[%c0_145, %c0_146, %c0_147, %c127] : memref<1x1x3x1024xf32, #tpu.memory_space<vmem>>, vector<1x1x3x640xf32>
    %103 = vector.shape_cast %102 : vector<1x1x3x640xf32> to vector<3x640xf32>
    %c102 = arith.constant 102 : index
    %c0_148 = arith.constant 0 : index
    %104 = vector.load %arg5[%c102, %c0_148] : memref<256x640xf32, #tpu.memory_space<vmem>>, vector<3x640xf32>
    tpu.vector_store %arg5[%c102, %c0_148], %103 {strides = array<i32>} : memref<256x640xf32, #tpu.memory_space<vmem>>, vector<3x640xf32>,
    %c0_149 = arith.constant 0 : index
    %c0_150 = arith.constant 0 : index
    %c0_151 = arith.constant 0 : index
    %c128 = arith.constant 128 : index
    %105 = vector.load %arg2[%c0_149, %c0_150, %c0_151, %c128] : memref<1x1x3x1024xf32, #tpu.memory_space<vmem>>, vector<1x1x3x640xf32>
    %106 = vector.shape_cast %105 : vector<1x1x3x640xf32> to vector<3x640xf32>
    %c105 = arith.constant 105 : index
    %c0_152 = arith.constant 0 : index
    %107 = vector.load %arg5[%c105, %c0_152] : memref<256x640xf32, #tpu.memory_space<vmem>>, vector<3x640xf32>
    tpu.vector_store %arg5[%c105, %c0_152], %106 {strides = array<i32>} : memref<256x640xf32, #tpu.memory_space<vmem>>, vector<3x640xf32>,
    %c0_153 = arith.constant 0 : index
    %c0_154 = arith.constant 0 : index
    %c0_155 = arith.constant 0 : index
    %c160 = arith.constant 160 : index
    %108 = vector.load %arg2[%c0_153, %c0_154, %c0_155, %c160] : memref<1x1x3x1024xf32, #tpu.memory_space<vmem>>, vector<1x1x3x640xf32>
    %109 = vector.shape_cast %108 : vector<1x1x3x640xf32> to vector<3x640xf32>
    %c108 = arith.constant 108 : index
    %c0_156 = arith.constant 0 : index
    %110 = vector.load %arg5[%c108, %c0_156] : memref<256x640xf32, #tpu.memory_space<vmem>>, vector<3x640xf32>
    tpu.vector_store %arg5[%c108, %c0_156], %109 {strides = array<i32>} : memref<256x640xf32, #tpu.memory_space<vmem>>, vector<3x640xf32>,
    %c0_157 = arith.constant 0 : index
    %c0_158 = arith.constant 0 : index
    %c0_159 = arith.constant 0 : index
    %c161 = arith.constant 161 : index
    %111 = vector.load %arg2[%c0_157, %c0_158, %c0_159, %c161] : memref<1x1x3x1024xf32, #tpu.memory_space<vmem>>, vector<1x1x3x640xf32>
    %112 = vector.shape_cast %111 : vector<1x1x3x640xf32> to vector<3x640xf32>
    %c111 = arith.constant 111 : index
    %c0_160 = arith.constant 0 : index
    %113 = vector.load %arg5[%c111, %c0_160] : memref<256x640xf32, #tpu.memory_space<vmem>>, vector<3x640xf32>
    tpu.vector_store %arg5[%c111, %c0_160], %112 {strides = array<i32>} : memref<256x640xf32, #tpu.memory_space<vmem>>, vector<3x640xf32>,
    %c0_161 = arith.constant 0 : index
    %c0_162 = arith.constant 0 : index
    %c0_163 = arith.constant 0 : index
    %c162 = arith.constant 162 : index
    %114 = vector.load %arg2[%c0_161, %c0_162, %c0_163, %c162] : memref<1x1x3x1024xf32, #tpu.memory_space<vmem>>, vector<1x1x3x640xf32>
    %115 = vector.shape_cast %114 : vector<1x1x3x640xf32> to vector<3x640xf32>
    %c114 = arith.constant 114 : index
    %c0_164 = arith.constant 0 : index
    %116 = vector.load %arg5[%c114, %c0_164] : memref<256x640xf32, #tpu.memory_space<vmem>>, vector<3x640xf32>
    tpu.vector_store %arg5[%c114, %c0_164], %115 {strides = array<i32>} : memref<256x640xf32, #tpu.memory_space<vmem>>, vector<3x640xf32>,
    %c0_165 = arith.constant 0 : index
    %c0_166 = arith.constant 0 : index
    %c0_167 = arith.constant 0 : index
    %c163 = arith.constant 163 : index
    %117 = vector.load %arg2[%c0_165, %c0_166, %c0_167, %c163] : memref<1x1x3x1024xf32, #tpu.memory_space<vmem>>, vector<1x1x3x640xf32>
    %118 = vector.shape_cast %117 : vector<1x1x3x640xf32> to vector<3x640xf32>
    %c117 = arith.constant 117 : index
    %c0_168 = arith.constant 0 : index
    %119 = vector.load %arg5[%c117, %c0_168] : memref<256x640xf32, #tpu.memory_space<vmem>>, vector<3x640xf32>
    tpu.vector_store %arg5[%c117, %c0_168], %118 {strides = array<i32>} : memref<256x640xf32, #tpu.memory_space<vmem>>, vector<3x640xf32>,
    %c0_169 = arith.constant 0 : index
    %c0_170 = arith.constant 0 : index
    %c0_171 = arith.constant 0 : index
    %c164 = arith.constant 164 : index
    %120 = vector.load %arg2[%c0_169, %c0_170, %c0_171, %c164] : memref<1x1x3x1024xf32, #tpu.memory_space<vmem>>, vector<1x1x3x640xf32>
    %121 = vector.shape_cast %120 : vector<1x1x3x640xf32> to vector<3x640xf32>
    %c120_172 = arith.constant 120 : index
    %c0_173 = arith.constant 0 : index
    %122 = vector.load %arg5[%c120_172, %c0_173] : memref<256x640xf32, #tpu.memory_space<vmem>>, vector<3x640xf32>
    tpu.vector_store %arg5[%c120_172, %c0_173], %121 {strides = array<i32>} : memref<256x640xf32, #tpu.memory_space<vmem>>, vector<3x640xf32>,
    %c0_174 = arith.constant 0 : index
    %c0_175 = arith.constant 0 : index
    %c0_176 = arith.constant 0 : index
    %c165 = arith.constant 165 : index
    %123 = vector.load %arg2[%c0_174, %c0_175, %c0_176, %c165] : memref<1x1x3x1024xf32, #tpu.memory_space<vmem>>, vector<1x1x3x640xf32>
    %124 = vector.shape_cast %123 : vector<1x1x3x640xf32> to vector<3x640xf32>
    %c123_177 = arith.constant 123 : index
    %c0_178 = arith.constant 0 : index
    %125 = vector.load %arg5[%c123_177, %c0_178] : memref<256x640xf32, #tpu.memory_space<vmem>>, vector<3x640xf32>
    tpu.vector_store %arg5[%c123_177, %c0_178], %124 {strides = array<i32>} : memref<256x640xf32, #tpu.memory_space<vmem>>, vector<3x640xf32>,
    %c0_179 = arith.constant 0 : index
    %c0_180 = arith.constant 0 : index
    %c0_181 = arith.constant 0 : index
    %c166 = arith.constant 166 : index
    %126 = vector.load %arg2[%c0_179, %c0_180, %c0_181, %c166] : memref<1x1x3x1024xf32, #tpu.memory_space<vmem>>, vector<1x1x3x640xf32>
    %127 = vector.shape_cast %126 : vector<1x1x3x640xf32> to vector<3x640xf32>
    %c126_182 = arith.constant 126 : index
    %c0_183 = arith.constant 0 : index
    %128 = vector.load %arg5[%c126_182, %c0_183] : memref<256x640xf32, #tpu.memory_space<vmem>>, vector<3x640xf32>
    tpu.vector_store %arg5[%c126_182, %c0_183], %127 {strides = array<i32>} : memref<256x640xf32, #tpu.memory_space<vmem>>, vector<3x640xf32>,
    %c0_184 = arith.constant 0 : index
    %c0_185 = arith.constant 0 : index
    %c0_186 = arith.constant 0 : index
    %c167 = arith.constant 167 : index
    %129 = vector.load %arg2[%c0_184, %c0_185, %c0_186, %c167] : memref<1x1x3x1024xf32, #tpu.memory_space<vmem>>, vector<1x1x3x640xf32>
    %130 = vector.shape_cast %129 : vector<1x1x3x640xf32> to vector<3x640xf32>
    %c129 = arith.constant 129 : index
    %c0_187 = arith.constant 0 : index
    %131 = vector.load %arg5[%c129, %c0_187] : memref<256x640xf32, #tpu.memory_space<vmem>>, vector<3x640xf32>
    tpu.vector_store %arg5[%c129, %c0_187], %130 {strides = array<i32>} : memref<256x640xf32, #tpu.memory_space<vmem>>, vector<3x640xf32>,
    %c0_188 = arith.constant 0 : index
    %c0_189 = arith.constant 0 : index
    %c0_190 = arith.constant 0 : index
    %c168 = arith.constant 168 : index
    %132 = vector.load %arg2[%c0_188, %c0_189, %c0_190, %c168] : memref<1x1x3x1024xf32, #tpu.memory_space<vmem>>, vector<1x1x3x640xf32>
    %133 = vector.shape_cast %132 : vector<1x1x3x640xf32> to vector<3x640xf32>
    %c132 = arith.constant 132 : index
    %c0_191 = arith.constant 0 : index
    %134 = vector.load %arg5[%c132, %c0_191] : memref<256x640xf32, #tpu.memory_space<vmem>>, vector<3x640xf32>
    tpu.vector_store %arg5[%c132, %c0_191], %133 {strides = array<i32>} : memref<256x640xf32, #tpu.memory_space<vmem>>, vector<3x640xf32>,
    %c0_192 = arith.constant 0 : index
    %c0_193 = arith.constant 0 : index
    %c0_194 = arith.constant 0 : index
    %c200 = arith.constant 200 : index
    %135 = vector.load %arg2[%c0_192, %c0_193, %c0_194, %c200] : memref<1x1x3x1024xf32, #tpu.memory_space<vmem>>, vector<1x1x3x640xf32>
    %136 = vector.shape_cast %135 : vector<1x1x3x640xf32> to vector<3x640xf32>
    %c135 = arith.constant 135 : index
    %c0_195 = arith.constant 0 : index
    %137 = vector.load %arg5[%c135, %c0_195] : memref<256x640xf32, #tpu.memory_space<vmem>>, vector<3x640xf32>
    tpu.vector_store %arg5[%c135, %c0_195], %136 {strides = array<i32>} : memref<256x640xf32, #tpu.memory_space<vmem>>, vector<3x640xf32>,
    %c0_196 = arith.constant 0 : index
    %c0_197 = arith.constant 0 : index
    %c0_198 = arith.constant 0 : index
    %c201 = arith.constant 201 : index
    %138 = vector.load %arg2[%c0_196, %c0_197, %c0_198, %c201] : memref<1x1x3x1024xf32, #tpu.memory_space<vmem>>, vector<1x1x3x640xf32>
    %139 = vector.shape_cast %138 : vector<1x1x3x640xf32> to vector<3x640xf32>
    %c138 = arith.constant 138 : index
    %c0_199 = arith.constant 0 : index
    %140 = vector.load %arg5[%c138, %c0_199] : memref<256x640xf32, #tpu.memory_space<vmem>>, vector<3x640xf32>
    tpu.vector_store %arg5[%c138, %c0_199], %139 {strides = array<i32>} : memref<256x640xf32, #tpu.memory_space<vmem>>, vector<3x640xf32>,
    %c0_200 = arith.constant 0 : index
    %c0_201 = arith.constant 0 : index
    %c0_202 = arith.constant 0 : index
    %c202 = arith.constant 202 : index
    %141 = vector.load %arg2[%c0_200, %c0_201, %c0_202, %c202] : memref<1x1x3x1024xf32, #tpu.memory_space<vmem>>, vector<1x1x3x640xf32>
    %142 = vector.shape_cast %141 : vector<1x1x3x640xf32> to vector<3x640xf32>
    %c141 = arith.constant 141 : index
    %c0_203 = arith.constant 0 : index
    %143 = vector.load %arg5[%c141, %c0_203] : memref<256x640xf32, #tpu.memory_space<vmem>>, vector<3x640xf32>
    tpu.vector_store %arg5[%c141, %c0_203], %142 {strides = array<i32>} : memref<256x640xf32, #tpu.memory_space<vmem>>, vector<3x640xf32>,
    %c0_204 = arith.constant 0 : index
    %c0_205 = arith.constant 0 : index
    %c0_206 = arith.constant 0 : index
    %c203 = arith.constant 203 : index
    %144 = vector.load %arg2[%c0_204, %c0_205, %c0_206, %c203] : memref<1x1x3x1024xf32, #tpu.memory_space<vmem>>, vector<1x1x3x640xf32>
    %145 = vector.shape_cast %144 : vector<1x1x3x640xf32> to vector<3x640xf32>
    %c144 = arith.constant 144 : index
    %c0_207 = arith.constant 0 : index
    %146 = vector.load %arg5[%c144, %c0_207] : memref<256x640xf32, #tpu.memory_space<vmem>>, vector<3x640xf32>
    tpu.vector_store %arg5[%c144, %c0_207], %145 {strides = array<i32>} : memref<256x640xf32, #tpu.memory_space<vmem>>, vector<3x640xf32>,
    %c0_208 = arith.constant 0 : index
    %c0_209 = arith.constant 0 : index
    %c0_210 = arith.constant 0 : index
    %c204 = arith.constant 204 : index
    %147 = vector.load %arg2[%c0_208, %c0_209, %c0_210, %c204] : memref<1x1x3x1024xf32, #tpu.memory_space<vmem>>, vector<1x1x3x640xf32>
    %148 = vector.shape_cast %147 : vector<1x1x3x640xf32> to vector<3x640xf32>
    %c147 = arith.constant 147 : index
    %c0_211 = arith.constant 0 : index
    %149 = vector.load %arg5[%c147, %c0_211] : memref<256x640xf32, #tpu.memory_space<vmem>>, vector<3x640xf32>
    tpu.vector_store %arg5[%c147, %c0_211], %148 {strides = array<i32>} : memref<256x640xf32, #tpu.memory_space<vmem>>, vector<3x640xf32>,
    %c0_212 = arith.constant 0 : index
    %c0_213 = arith.constant 0 : index
    %c0_214 = arith.constant 0 : index
    %c205 = arith.constant 205 : index
    %150 = vector.load %arg2[%c0_212, %c0_213, %c0_214, %c205] : memref<1x1x3x1024xf32, #tpu.memory_space<vmem>>, vector<1x1x3x640xf32>
    %151 = vector.shape_cast %150 : vector<1x1x3x640xf32> to vector<3x640xf32>
    %c150 = arith.constant 150 : index
    %c0_215 = arith.constant 0 : index
    %152 = vector.load %arg5[%c150, %c0_215] : memref<256x640xf32, #tpu.memory_space<vmem>>, vector<3x640xf32>
    tpu.vector_store %arg5[%c150, %c0_215], %151 {strides = array<i32>} : memref<256x640xf32, #tpu.memory_space<vmem>>, vector<3x640xf32>,
    %c0_216 = arith.constant 0 : index
    %c0_217 = arith.constant 0 : index
    %c0_218 = arith.constant 0 : index
    %c206 = arith.constant 206 : index
    %153 = vector.load %arg2[%c0_216, %c0_217, %c0_218, %c206] : memref<1x1x3x1024xf32, #tpu.memory_space<vmem>>, vector<1x1x3x640xf32>
    %154 = vector.shape_cast %153 : vector<1x1x3x640xf32> to vector<3x640xf32>
    %c153 = arith.constant 153 : index
    %c0_219 = arith.constant 0 : index
    %155 = vector.load %arg5[%c153, %c0_219] : memref<256x640xf32, #tpu.memory_space<vmem>>, vector<3x640xf32>
    tpu.vector_store %arg5[%c153, %c0_219], %154 {strides = array<i32>} : memref<256x640xf32, #tpu.memory_space<vmem>>, vector<3x640xf32>,
    %c0_220 = arith.constant 0 : index
    %c0_221 = arith.constant 0 : index
    %c0_222 = arith.constant 0 : index
    %c207 = arith.constant 207 : index
    %156 = vector.load %arg2[%c0_220, %c0_221, %c0_222, %c207] : memref<1x1x3x1024xf32, #tpu.memory_space<vmem>>, vector<1x1x3x640xf32>
    %157 = vector.shape_cast %156 : vector<1x1x3x640xf32> to vector<3x640xf32>
    %c156 = arith.constant 156 : index
    %c0_223 = arith.constant 0 : index
    %158 = vector.load %arg5[%c156, %c0_223] : memref<256x640xf32, #tpu.memory_space<vmem>>, vector<3x640xf32>
    tpu.vector_store %arg5[%c156, %c0_223], %157 {strides = array<i32>} : memref<256x640xf32, #tpu.memory_space<vmem>>, vector<3x640xf32>,
    %c0_224 = arith.constant 0 : index
    %c0_225 = arith.constant 0 : index
    %c0_226 = arith.constant 0 : index
    %c208 = arith.constant 208 : index
    %159 = vector.load %arg2[%c0_224, %c0_225, %c0_226, %c208] : memref<1x1x3x1024xf32, #tpu.memory_space<vmem>>, vector<1x1x3x640xf32>
    %160 = vector.shape_cast %159 : vector<1x1x3x640xf32> to vector<3x640xf32>
    %c159 = arith.constant 159 : index
    %c0_227 = arith.constant 0 : index
    %161 = vector.load %arg5[%c159, %c0_227] : memref<256x640xf32, #tpu.memory_space<vmem>>, vector<3x640xf32>
    tpu.vector_store %arg5[%c159, %c0_227], %160 {strides = array<i32>} : memref<256x640xf32, #tpu.memory_space<vmem>>, vector<3x640xf32>,
    %c0_228 = arith.constant 0 : index
    %c0_229 = arith.constant 0 : index
    %c0_230 = arith.constant 0 : index
    %c240 = arith.constant 240 : index
    %162 = vector.load %arg2[%c0_228, %c0_229, %c0_230, %c240] : memref<1x1x3x1024xf32, #tpu.memory_space<vmem>>, vector<1x1x3x640xf32>
    %163 = vector.shape_cast %162 : vector<1x1x3x640xf32> to vector<3x640xf32>
    %c162_231 = arith.constant 162 : index
    %c0_232 = arith.constant 0 : index
    %164 = vector.load %arg5[%c162_231, %c0_232] : memref<256x640xf32, #tpu.memory_space<vmem>>, vector<3x640xf32>
    tpu.vector_store %arg5[%c162_231, %c0_232], %163 {strides = array<i32>} : memref<256x640xf32, #tpu.memory_space<vmem>>, vector<3x640xf32>,
    %c0_233 = arith.constant 0 : index
    %c0_234 = arith.constant 0 : index
    %c0_235 = arith.constant 0 : index
    %c241 = arith.constant 241 : index
    %165 = vector.load %arg2[%c0_233, %c0_234, %c0_235, %c241] : memref<1x1x3x1024xf32, #tpu.memory_space<vmem>>, vector<1x1x3x640xf32>
    %166 = vector.shape_cast %165 : vector<1x1x3x640xf32> to vector<3x640xf32>
    %c165_236 = arith.constant 165 : index
    %c0_237 = arith.constant 0 : index
    %167 = vector.load %arg5[%c165_236, %c0_237] : memref<256x640xf32, #tpu.memory_space<vmem>>, vector<3x640xf32>
    tpu.vector_store %arg5[%c165_236, %c0_237], %166 {strides = array<i32>} : memref<256x640xf32, #tpu.memory_space<vmem>>, vector<3x640xf32>,
    %c0_238 = arith.constant 0 : index
    %c0_239 = arith.constant 0 : index
    %c0_240 = arith.constant 0 : index
    %c242 = arith.constant 242 : index
    %168 = vector.load %arg2[%c0_238, %c0_239, %c0_240, %c242] : memref<1x1x3x1024xf32, #tpu.memory_space<vmem>>, vector<1x1x3x640xf32>
    %169 = vector.shape_cast %168 : vector<1x1x3x640xf32> to vector<3x640xf32>
    %c168_241 = arith.constant 168 : index
    %c0_242 = arith.constant 0 : index
    %170 = vector.load %arg5[%c168_241, %c0_242] : memref<256x640xf32, #tpu.memory_space<vmem>>, vector<3x640xf32>
    tpu.vector_store %arg5[%c168_241, %c0_242], %169 {strides = array<i32>} : memref<256x640xf32, #tpu.memory_space<vmem>>, vector<3x640xf32>,
    %c0_243 = arith.constant 0 : index
    %c0_244 = arith.constant 0 : index
    %c0_245 = arith.constant 0 : index
    %c243 = arith.constant 243 : index
    %171 = vector.load %arg2[%c0_243, %c0_244, %c0_245, %c243] : memref<1x1x3x1024xf32, #tpu.memory_space<vmem>>, vector<1x1x3x640xf32>
    %172 = vector.shape_cast %171 : vector<1x1x3x640xf32> to vector<3x640xf32>
    %c171 = arith.constant 171 : index
    %c0_246 = arith.constant 0 : index
    %173 = vector.load %arg5[%c171, %c0_246] : memref<256x640xf32, #tpu.memory_space<vmem>>, vector<3x640xf32>
    tpu.vector_store %arg5[%c171, %c0_246], %172 {strides = array<i32>} : memref<256x640xf32, #tpu.memory_space<vmem>>, vector<3x640xf32>,
    %c0_247 = arith.constant 0 : index
    %c0_248 = arith.constant 0 : index
    %c0_249 = arith.constant 0 : index
    %c244 = arith.constant 244 : index
    %174 = vector.load %arg2[%c0_247, %c0_248, %c0_249, %c244] : memref<1x1x3x1024xf32, #tpu.memory_space<vmem>>, vector<1x1x3x640xf32>
    %175 = vector.shape_cast %174 : vector<1x1x3x640xf32> to vector<3x640xf32>
    %c174 = arith.constant 174 : index
    %c0_250 = arith.constant 0 : index
    %176 = vector.load %arg5[%c174, %c0_250] : memref<256x640xf32, #tpu.memory_space<vmem>>, vector<3x640xf32>
    tpu.vector_store %arg5[%c174, %c0_250], %175 {strides = array<i32>} : memref<256x640xf32, #tpu.memory_space<vmem>>, vector<3x640xf32>,
    %c0_251 = arith.constant 0 : index
    %c0_252 = arith.constant 0 : index
    %c0_253 = arith.constant 0 : index
    %c245 = arith.constant 245 : index
    %177 = vector.load %arg2[%c0_251, %c0_252, %c0_253, %c245] : memref<1x1x3x1024xf32, #tpu.memory_space<vmem>>, vector<1x1x3x640xf32>
    %178 = vector.shape_cast %177 : vector<1x1x3x640xf32> to vector<3x640xf32>
    %c177 = arith.constant 177 : index
    %c0_254 = arith.constant 0 : index
    %179 = vector.load %arg5[%c177, %c0_254] : memref<256x640xf32, #tpu.memory_space<vmem>>, vector<3x640xf32>
    tpu.vector_store %arg5[%c177, %c0_254], %178 {strides = array<i32>} : memref<256x640xf32, #tpu.memory_space<vmem>>, vector<3x640xf32>,
    %c0_255 = arith.constant 0 : index
    %c0_256 = arith.constant 0 : index
    %c0_257 = arith.constant 0 : index
    %c246 = arith.constant 246 : index
    %180 = vector.load %arg2[%c0_255, %c0_256, %c0_257, %c246] : memref<1x1x3x1024xf32, #tpu.memory_space<vmem>>, vector<1x1x3x640xf32>
    %181 = vector.shape_cast %180 : vector<1x1x3x640xf32> to vector<3x640xf32>
    %c180 = arith.constant 180 : index
    %c0_258 = arith.constant 0 : index
    %182 = vector.load %arg5[%c180, %c0_258] : memref<256x640xf32, #tpu.memory_space<vmem>>, vector<3x640xf32>
    tpu.vector_store %arg5[%c180, %c0_258], %181 {strides = array<i32>} : memref<256x640xf32, #tpu.memory_space<vmem>>, vector<3x640xf32>,
    %c0_259 = arith.constant 0 : index
    %c0_260 = arith.constant 0 : index
    %c0_261 = arith.constant 0 : index
    %c247 = arith.constant 247 : index
    %183 = vector.load %arg2[%c0_259, %c0_260, %c0_261, %c247] : memref<1x1x3x1024xf32, #tpu.memory_space<vmem>>, vector<1x1x3x640xf32>
    %184 = vector.shape_cast %183 : vector<1x1x3x640xf32> to vector<3x640xf32>
    %c183 = arith.constant 183 : index
    %c0_262 = arith.constant 0 : index
    %185 = vector.load %arg5[%c183, %c0_262] : memref<256x640xf32, #tpu.memory_space<vmem>>, vector<3x640xf32>
    tpu.vector_store %arg5[%c183, %c0_262], %184 {strides = array<i32>} : memref<256x640xf32, #tpu.memory_space<vmem>>, vector<3x640xf32>,
    %c0_263 = arith.constant 0 : index
    %c0_264 = arith.constant 0 : index
    %c0_265 = arith.constant 0 : index
    %c248 = arith.constant 248 : index
    %186 = vector.load %arg2[%c0_263, %c0_264, %c0_265, %c248] : memref<1x1x3x1024xf32, #tpu.memory_space<vmem>>, vector<1x1x3x640xf32>
    %187 = vector.shape_cast %186 : vector<1x1x3x640xf32> to vector<3x640xf32>
    %c186 = arith.constant 186 : index
    %c0_266 = arith.constant 0 : index
    %188 = vector.load %arg5[%c186, %c0_266] : memref<256x640xf32, #tpu.memory_space<vmem>>, vector<3x640xf32>
    tpu.vector_store %arg5[%c186, %c0_266], %187 {strides = array<i32>} : memref<256x640xf32, #tpu.memory_space<vmem>>, vector<3x640xf32>,
    %c0_267 = arith.constant 0 : index
    %c0_268 = arith.constant 0 : index
    %c0_269 = arith.constant 0 : index
    %c280 = arith.constant 280 : index
    %189 = vector.load %arg2[%c0_267, %c0_268, %c0_269, %c280] : memref<1x1x3x1024xf32, #tpu.memory_space<vmem>>, vector<1x1x3x640xf32>
    %190 = vector.shape_cast %189 : vector<1x1x3x640xf32> to vector<3x640xf32>
    %c189 = arith.constant 189 : index
    %c0_270 = arith.constant 0 : index
    %191 = vector.load %arg5[%c189, %c0_270] : memref<256x640xf32, #tpu.memory_space<vmem>>, vector<3x640xf32>
    tpu.vector_store %arg5[%c189, %c0_270], %190 {strides = array<i32>} : memref<256x640xf32, #tpu.memory_space<vmem>>, vector<3x640xf32>,
    %c0_271 = arith.constant 0 : index
    %c0_272 = arith.constant 0 : index
    %c0_273 = arith.constant 0 : index
    %c281 = arith.constant 281 : index
    %192 = vector.load %arg2[%c0_271, %c0_272, %c0_273, %c281] : memref<1x1x3x1024xf32, #tpu.memory_space<vmem>>, vector<1x1x3x640xf32>
    %193 = vector.shape_cast %192 : vector<1x1x3x640xf32> to vector<3x640xf32>
    %c192 = arith.constant 192 : index
    %c0_274 = arith.constant 0 : index
    %194 = vector.load %arg5[%c192, %c0_274] : memref<256x640xf32, #tpu.memory_space<vmem>>, vector<3x640xf32>
    tpu.vector_store %arg5[%c192, %c0_274], %193 {strides = array<i32>} : memref<256x640xf32, #tpu.memory_space<vmem>>, vector<3x640xf32>,
    %c0_275 = arith.constant 0 : index
    %c0_276 = arith.constant 0 : index
    %c0_277 = arith.constant 0 : index
    %c282 = arith.constant 282 : index
    %195 = vector.load %arg2[%c0_275, %c0_276, %c0_277, %c282] : memref<1x1x3x1024xf32, #tpu.memory_space<vmem>>, vector<1x1x3x640xf32>
    %196 = vector.shape_cast %195 : vector<1x1x3x640xf32> to vector<3x640xf32>
    %c195 = arith.constant 195 : index
    %c0_278 = arith.constant 0 : index
    %197 = vector.load %arg5[%c195, %c0_278] : memref<256x640xf32, #tpu.memory_space<vmem>>, vector<3x640xf32>
    tpu.vector_store %arg5[%c195, %c0_278], %196 {strides = array<i32>} : memref<256x640xf32, #tpu.memory_space<vmem>>, vector<3x640xf32>,
    %c0_279 = arith.constant 0 : index
    %c0_280 = arith.constant 0 : index
    %c0_281 = arith.constant 0 : index
    %c283 = arith.constant 283 : index
    %198 = vector.load %arg2[%c0_279, %c0_280, %c0_281, %c283] : memref<1x1x3x1024xf32, #tpu.memory_space<vmem>>, vector<1x1x3x640xf32>
    %199 = vector.shape_cast %198 : vector<1x1x3x640xf32> to vector<3x640xf32>
    %c198 = arith.constant 198 : index
    %c0_282 = arith.constant 0 : index
    %200 = vector.load %arg5[%c198, %c0_282] : memref<256x640xf32, #tpu.memory_space<vmem>>, vector<3x640xf32>
    tpu.vector_store %arg5[%c198, %c0_282], %199 {strides = array<i32>} : memref<256x640xf32, #tpu.memory_space<vmem>>, vector<3x640xf32>,
    %c0_283 = arith.constant 0 : index
    %c0_284 = arith.constant 0 : index
    %c0_285 = arith.constant 0 : index
    %c284 = arith.constant 284 : index
    %201 = vector.load %arg2[%c0_283, %c0_284, %c0_285, %c284] : memref<1x1x3x1024xf32, #tpu.memory_space<vmem>>, vector<1x1x3x640xf32>
    %202 = vector.shape_cast %201 : vector<1x1x3x640xf32> to vector<3x640xf32>
    %c201_286 = arith.constant 201 : index
    %c0_287 = arith.constant 0 : index
    %203 = vector.load %arg5[%c201_286, %c0_287] : memref<256x640xf32, #tpu.memory_space<vmem>>, vector<3x640xf32>
    tpu.vector_store %arg5[%c201_286, %c0_287], %202 {strides = array<i32>} : memref<256x640xf32, #tpu.memory_space<vmem>>, vector<3x640xf32>,
    %c0_288 = arith.constant 0 : index
    %c0_289 = arith.constant 0 : index
    %c0_290 = arith.constant 0 : index
    %c285 = arith.constant 285 : index
    %204 = vector.load %arg2[%c0_288, %c0_289, %c0_290, %c285] : memref<1x1x3x1024xf32, #tpu.memory_space<vmem>>, vector<1x1x3x640xf32>
    %205 = vector.shape_cast %204 : vector<1x1x3x640xf32> to vector<3x640xf32>
    %c204_291 = arith.constant 204 : index
    %c0_292 = arith.constant 0 : index
    %206 = vector.load %arg5[%c204_291, %c0_292] : memref<256x640xf32, #tpu.memory_space<vmem>>, vector<3x640xf32>
    tpu.vector_store %arg5[%c204_291, %c0_292], %205 {strides = array<i32>} : memref<256x640xf32, #tpu.memory_space<vmem>>, vector<3x640xf32>,
    %c0_293 = arith.constant 0 : index
    %c0_294 = arith.constant 0 : index
    %c0_295 = arith.constant 0 : index
    %c286 = arith.constant 286 : index
    %207 = vector.load %arg2[%c0_293, %c0_294, %c0_295, %c286] : memref<1x1x3x1024xf32, #tpu.memory_space<vmem>>, vector<1x1x3x640xf32>
    %208 = vector.shape_cast %207 : vector<1x1x3x640xf32> to vector<3x640xf32>
    %c207_296 = arith.constant 207 : index
    %c0_297 = arith.constant 0 : index
    %209 = vector.load %arg5[%c207_296, %c0_297] : memref<256x640xf32, #tpu.memory_space<vmem>>, vector<3x640xf32>
    tpu.vector_store %arg5[%c207_296, %c0_297], %208 {strides = array<i32>} : memref<256x640xf32, #tpu.memory_space<vmem>>, vector<3x640xf32>,
    %c0_298 = arith.constant 0 : index
    %c0_299 = arith.constant 0 : index
    %c0_300 = arith.constant 0 : index
    %c287 = arith.constant 287 : index
    %210 = vector.load %arg2[%c0_298, %c0_299, %c0_300, %c287] : memref<1x1x3x1024xf32, #tpu.memory_space<vmem>>, vector<1x1x3x640xf32>
    %211 = vector.shape_cast %210 : vector<1x1x3x640xf32> to vector<3x640xf32>
    %c210 = arith.constant 210 : index
    %c0_301 = arith.constant 0 : index
    %212 = vector.load %arg5[%c210, %c0_301] : memref<256x640xf32, #tpu.memory_space<vmem>>, vector<3x640xf32>
    tpu.vector_store %arg5[%c210, %c0_301], %211 {strides = array<i32>} : memref<256x640xf32, #tpu.memory_space<vmem>>, vector<3x640xf32>,
    %c0_302 = arith.constant 0 : index
    %c0_303 = arith.constant 0 : index
    %c0_304 = arith.constant 0 : index
    %c288 = arith.constant 288 : index
    %213 = vector.load %arg2[%c0_302, %c0_303, %c0_304, %c288] : memref<1x1x3x1024xf32, #tpu.memory_space<vmem>>, vector<1x1x3x640xf32>
    %214 = vector.shape_cast %213 : vector<1x1x3x640xf32> to vector<3x640xf32>
    %c213 = arith.constant 213 : index
    %c0_305 = arith.constant 0 : index
    %215 = vector.load %arg5[%c213, %c0_305] : memref<256x640xf32, #tpu.memory_space<vmem>>, vector<3x640xf32>
    tpu.vector_store %arg5[%c213, %c0_305], %214 {strides = array<i32>} : memref<256x640xf32, #tpu.memory_space<vmem>>, vector<3x640xf32>,
    %c0_306 = arith.constant 0 : index
    %c0_307 = arith.constant 0 : index
    %c0_308 = arith.constant 0 : index
    %c320 = arith.constant 320 : index
    %216 = vector.load %arg2[%c0_306, %c0_307, %c0_308, %c320] : memref<1x1x3x1024xf32, #tpu.memory_space<vmem>>, vector<1x1x3x640xf32>
    %217 = vector.shape_cast %216 : vector<1x1x3x640xf32> to vector<3x640xf32>
    %c216 = arith.constant 216 : index
    %c0_309 = arith.constant 0 : index
    %218 = vector.load %arg5[%c216, %c0_309] : memref<256x640xf32, #tpu.memory_space<vmem>>, vector<3x640xf32>
    tpu.vector_store %arg5[%c216, %c0_309], %217 {strides = array<i32>} : memref<256x640xf32, #tpu.memory_space<vmem>>, vector<3x640xf32>,
    %c0_310 = arith.constant 0 : index
    %c0_311 = arith.constant 0 : index
    %c0_312 = arith.constant 0 : index
    %c321 = arith.constant 321 : index
    %219 = vector.load %arg2[%c0_310, %c0_311, %c0_312, %c321] : memref<1x1x3x1024xf32, #tpu.memory_space<vmem>>, vector<1x1x3x640xf32>
    %220 = vector.shape_cast %219 : vector<1x1x3x640xf32> to vector<3x640xf32>
    %c219 = arith.constant 219 : index
    %c0_313 = arith.constant 0 : index
    %221 = vector.load %arg5[%c219, %c0_313] : memref<256x640xf32, #tpu.memory_space<vmem>>, vector<3x640xf32>
    tpu.vector_store %arg5[%c219, %c0_313], %220 {strides = array<i32>} : memref<256x640xf32, #tpu.memory_space<vmem>>, vector<3x640xf32>,
    %c0_314 = arith.constant 0 : index
    %c0_315 = arith.constant 0 : index
    %c0_316 = arith.constant 0 : index
    %c322 = arith.constant 322 : index
    %222 = vector.load %arg2[%c0_314, %c0_315, %c0_316, %c322] : memref<1x1x3x1024xf32, #tpu.memory_space<vmem>>, vector<1x1x3x640xf32>
    %223 = vector.shape_cast %222 : vector<1x1x3x640xf32> to vector<3x640xf32>
    %c222 = arith.constant 222 : index
    %c0_317 = arith.constant 0 : index
    %224 = vector.load %arg5[%c222, %c0_317] : memref<256x640xf32, #tpu.memory_space<vmem>>, vector<3x640xf32>
    tpu.vector_store %arg5[%c222, %c0_317], %223 {strides = array<i32>} : memref<256x640xf32, #tpu.memory_space<vmem>>, vector<3x640xf32>,
    %c0_318 = arith.constant 0 : index
    %c0_319 = arith.constant 0 : index
    %c0_320 = arith.constant 0 : index
    %c323 = arith.constant 323 : index
    %225 = vector.load %arg2[%c0_318, %c0_319, %c0_320, %c323] : memref<1x1x3x1024xf32, #tpu.memory_space<vmem>>, vector<1x1x3x640xf32>
    %226 = vector.shape_cast %225 : vector<1x1x3x640xf32> to vector<3x640xf32>
    %c225 = arith.constant 225 : index
    %c0_321 = arith.constant 0 : index
    %227 = vector.load %arg5[%c225, %c0_321] : memref<256x640xf32, #tpu.memory_space<vmem>>, vector<3x640xf32>
    tpu.vector_store %arg5[%c225, %c0_321], %226 {strides = array<i32>} : memref<256x640xf32, #tpu.memory_space<vmem>>, vector<3x640xf32>,
    %c0_322 = arith.constant 0 : index
    %c0_323 = arith.constant 0 : index
    %c0_324 = arith.constant 0 : index
    %c324 = arith.constant 324 : index
    %228 = vector.load %arg2[%c0_322, %c0_323, %c0_324, %c324] : memref<1x1x3x1024xf32, #tpu.memory_space<vmem>>, vector<1x1x3x640xf32>
    %229 = vector.shape_cast %228 : vector<1x1x3x640xf32> to vector<3x640xf32>
    %c228 = arith.constant 228 : index
    %c0_325 = arith.constant 0 : index
    %230 = vector.load %arg5[%c228, %c0_325] : memref<256x640xf32, #tpu.memory_space<vmem>>, vector<3x640xf32>
    tpu.vector_store %arg5[%c228, %c0_325], %229 {strides = array<i32>} : memref<256x640xf32, #tpu.memory_space<vmem>>, vector<3x640xf32>,
    %c0_326 = arith.constant 0 : index
    %c0_327 = arith.constant 0 : index
    %c0_328 = arith.constant 0 : index
    %c325 = arith.constant 325 : index
    %231 = vector.load %arg2[%c0_326, %c0_327, %c0_328, %c325] : memref<1x1x3x1024xf32, #tpu.memory_space<vmem>>, vector<1x1x3x640xf32>
    %232 = vector.shape_cast %231 : vector<1x1x3x640xf32> to vector<3x640xf32>
    %c231 = arith.constant 231 : index
    %c0_329 = arith.constant 0 : index
    %233 = vector.load %arg5[%c231, %c0_329] : memref<256x640xf32, #tpu.memory_space<vmem>>, vector<3x640xf32>
    tpu.vector_store %arg5[%c231, %c0_329], %232 {strides = array<i32>} : memref<256x640xf32, #tpu.memory_space<vmem>>, vector<3x640xf32>,
    %c0_330 = arith.constant 0 : index
    %c0_331 = arith.constant 0 : index
    %c0_332 = arith.constant 0 : index
    %c326 = arith.constant 326 : index
    %234 = vector.load %arg2[%c0_330, %c0_331, %c0_332, %c326] : memref<1x1x3x1024xf32, #tpu.memory_space<vmem>>, vector<1x1x3x640xf32>
    %235 = vector.shape_cast %234 : vector<1x1x3x640xf32> to vector<3x640xf32>
    %c234 = arith.constant 234 : index
    %c0_333 = arith.constant 0 : index
    %236 = vector.load %arg5[%c234, %c0_333] : memref<256x640xf32, #tpu.memory_space<vmem>>, vector<3x640xf32>
    tpu.vector_store %arg5[%c234, %c0_333], %235 {strides = array<i32>} : memref<256x640xf32, #tpu.memory_space<vmem>>, vector<3x640xf32>,
    %c0_334 = arith.constant 0 : index
    %c0_335 = arith.constant 0 : index
    %c0_336 = arith.constant 0 : index
    %c327 = arith.constant 327 : index
    %237 = vector.load %arg2[%c0_334, %c0_335, %c0_336, %c327] : memref<1x1x3x1024xf32, #tpu.memory_space<vmem>>, vector<1x1x3x640xf32>
    %238 = vector.shape_cast %237 : vector<1x1x3x640xf32> to vector<3x640xf32>
    %c237 = arith.constant 237 : index
    %c0_337 = arith.constant 0 : index
    %239 = vector.load %arg5[%c237, %c0_337] : memref<256x640xf32, #tpu.memory_space<vmem>>, vector<3x640xf32>
    tpu.vector_store %arg5[%c237, %c0_337], %238 {strides = array<i32>} : memref<256x640xf32, #tpu.memory_space<vmem>>, vector<3x640xf32>,
    %c0_338 = arith.constant 0 : index
    %c0_339 = arith.constant 0 : index
    %c0_340 = arith.constant 0 : index
    %c328 = arith.constant 328 : index
    %240 = vector.load %arg2[%c0_338, %c0_339, %c0_340, %c328] : memref<1x1x3x1024xf32, #tpu.memory_space<vmem>>, vector<1x1x3x640xf32>
    %241 = vector.shape_cast %240 : vector<1x1x3x640xf32> to vector<3x640xf32>
    %c240_341 = arith.constant 240 : index
    %c0_342 = arith.constant 0 : index
    %242 = vector.load %arg5[%c240_341, %c0_342] : memref<256x640xf32, #tpu.memory_space<vmem>>, vector<3x640xf32>
    tpu.vector_store %arg5[%c240_341, %c0_342], %241 {strides = array<i32>} : memref<256x640xf32, #tpu.memory_space<vmem>>, vector<3x640xf32>,
    %cst = arith.constant 1.000000e+00 : f32
    %243 = vector.broadcast %cst : f32 to vector<1x640xf32>
    %c243_343 = arith.constant 243 : index
    %c0_344 = arith.constant 0 : index
    %244 = vector.load %arg5[%c243_343, %c0_344] : memref<256x640xf32, #tpu.memory_space<vmem>>, vector<1x640xf32>
    tpu.vector_store %arg5[%c243_343, %c0_344], %243 {strides = array<i32>} : memref<256x640xf32, #tpu.memory_space<vmem>>, vector<1x640xf32>,
    %cst_345 = arith.constant 0.000000e+00 : f32
    %245 = vector.broadcast %cst_345 : f32 to vector<12x640xf32>
    %c244_346 = arith.constant 244 : index
    %c0_347 = arith.constant 0 : index
    %246 = vector.load %arg5[%c244_346, %c0_347] : memref<256x640xf32, #tpu.memory_space<vmem>>, vector<12x640xf32>
    tpu.vector_store %arg5[%c244_346, %c0_347], %245 {strides = array<i32>} : memref<256x640xf32, #tpu.memory_space<vmem>>, vector<12x640xf32>,
    %c0_348 = arith.constant 0 : index
    %c0_349 = arith.constant 0 : index
    %247 = vector.load %arg3[%c0_348, %c0_349] : memref<8x256xf32, #tpu.memory_space<vmem>>, vector<8x256xf32>
    %c0_350 = arith.constant 0 : index
    %c0_351 = arith.constant 0 : index
    %248 = vector.load %arg5[%c0_350, %c0_351] : memref<256x640xf32, #tpu.memory_space<vmem>>, vector<256x640xf32>
    %cst_352 = arith.constant dense<0.000000e+00> : vector<8x640xf32>
    %249 = tpu.matmul %247, %248, %cst_352 {dimension_numbers = #tpu.dot_dimension_numbers<[1], [0], [0], [1], [0, 0, 1, 1], [], []>} : vector<8x256xf32>, vector<256x640xf32>, vector<8x640xf32> -> vector<8x640xf32>
    %cst_353 = arith.constant 0.000000e+00 : f32
    %cst_354 = arith.constant 6.000000e+00 : f32
    %250 = vector.broadcast %cst_353 : f32 to vector<8x640xf32>
    %251 = arith.maximumf %250, %249 : vector<8x640xf32>
    %252 = vector.broadcast %cst_354 : f32 to vector<8x640xf32>
    %253 = arith.minimumf %252, %251 : vector<8x640xf32>
    %cst_355 = arith.constant 0.166666672 : f32
    %254 = vector.broadcast %cst_355 : f32 to vector<8x640xf32>
    %255 = arith.mulf %253, %254 : vector<8x640xf32>
    %c0_356 = arith.constant 0 : index
    %c0_357 = arith.constant 0 : index
    %c0_358 = arith.constant 0 : index
    %256 = vector.load %arg4[%c0_356, %c0_357, %c0_358] : memref<1x8x640xf32, #tpu.memory_space<vmem>>, vector<1x8x640xf32>
    %257 = vector.shape_cast %256 : vector<1x8x640xf32> to vector<8x640xf32>
    %258 = vector.shape_cast %255 : vector<8x640xf32> to vector<1x8x640xf32>
    tpu.vector_store %arg4[%c0_356, %c0_357, %c0_358], %258 {strides = array<i32>} : memref<1x8x640xf32, #tpu.memory_space<vmem>>, vector<1x8x640xf32>,
    return
  }
  func.func @transform_0(%arg0: i32, %arg1: i32) -> (i32, i32, i32, i32) {
    %c0_i32 = arith.constant 0 : i32
    %c0_i32_0 = arith.constant 0 : i32
    %c0_i32_1 = arith.constant 0 : i32
    return %arg0, %arg1, %c0_i32, %c0_i32_0 : i32, i32, i32, i32
  }
  func.func @transform_1(%arg0: i32, %arg1: i32) -> (i32, i32) {
    %c0_i32 = arith.constant 0 : i32
    %c0_i32_0 = arith.constant 0 : i32
    %c0_i32_1 = arith.constant 0 : i32
    return %c0_i32, %c0_i32_0 : i32, i32
  }
  func.func @transform_2(%arg0: i32, %arg1: i32) -> (i32, i32, i32) {
    %c0_i32 = arith.constant 0 : i32
    %c0_i32_0 = arith.constant 0 : i32
    return %arg0, %c0_i32, %arg1 : i32, i32, i32
  }
}

</mosaic_0001>

<bundles_post_ra>
// kernel: tpu_custom_call.1
= control target key start
LH: loop header
LB: loop body
LE: loop exit
PB: predicated region body
PF: predicated region fallthrough
CT: control target
= control target key end

     0   :  { %7 = vsyncpa [#allocation4], 0  ;;  %s6166_s0 = inlined_call_operand.vmem [shape: f32[1,2,3,1024], index: 0, kind: input, shape index: {}]   ;;  %s6167_s1 = inlined_call_operand.vmem [shape: f32[8,256], index: 1, kind: input, shape index: {}]   ;;  %s6168_s2 = inlined_call_operand.hbm [shape: f32[1,8,1280], index: 2, kind: output, shape index: {}]  }
   0x1   :  { %9 = vsyncpa [#allocation4 + $0x1], 0  ;;  %s4861_s9 = smov 0   ;;  %s4863_s10 = smov 0  }
   0x2   :  { %s4865_s11 = smov 0   ;;  %s4867_s12 = smov 0  }
   0x3   :  { %s4869_s13 = smov 0   ;;  %s4871_s14 = smov 0  }
   0x4 LB: > { %s4087_s15 = sadd.s32 4294967295, %s4767_s14   ;;  %s4088_s16 = sadd.s32 4294967294, %s4767_s14   ;;  %s4767_s14 = sphi %s4871_s14, %s15_s14   ;;  %s4763_s13 = sphi %s4869_s13, %s6274_s13   ;;  %s4759_s12 = sphi %s4867_s12, %s6273_s12   ;;  %s4755_s11 = sphi %s4865_s11, %s6272_s11   ;;  %s4751_s10 = sphi %s4863_s10, %s6271_s10   ;;  %s4747_s9 = sphi %s4861_s9, %s6270_s9  }
   0x5   : > { %s24_s17 = sadd.s32 1, %s4763_s13  ;;  %s85_s18 = sadd.s32 1, %s4755_s11 }
   0x6   : > { %p25_p0 = scmp.ge.s32.totalorder %s24_s17, 2  ;;  %p95_p1 = scmp.ne.s32.totalorder %s4755_s11, %s4751_s10 }
   0x7   : > { %p96_p2 = scmp.eq.s32.totalorder %s4087_s15, 1  ;;  %p101_p3 = scmp.ne.s32.totalorder %s4751_s10, %s4747_s9 }
   0x8   : > { %s6276_s17 = smov (%p25_p0, %s24_s17), 0  ;;  %p102_p5 = scmp.eq.s32.totalorder %s4088_s16, 1 }
   0x9   : > { %p4901_p4 = por %p96_p2, %p95_p1  ;;  %s81_s20 = ssub.s32 %s4763_s13, %s6276_s17 }
   0xa   : > { %p4091_p6 = scmp.ge.s32.totalorder %s4767_s14, 1  ;;  %p83_p7 = scmp.eq.s32.totalorder %s81_s20, 0 }
   0xb   : > { %p4908_p8 = por %p102_p5, %p101_p3  ;;  %p135_p9 = scmp.lt.s32.totalorder %s4767_s14, 3 }
   0xc   : > { %s4914_s22 = scalar_select %p83_p7, %s4755_s11, %s85_s18  }
   0xd   : > { %p136_p10 = pnand %p4091_p6, %p135_p9 }
   0xe   : > { %p163_p11 = scmp.lt.s32.totalorder (!%p136_p10), %s4759_s12, 1  ;;  %s4769_s28 = smov (!%p136_p10), 127   ;;  %vm212_vm0 = vcmask (!%p136_p10), 1039360   ;;  %vm255_vm1 = vcmask (!%p136_p10), 1031168   ;;  %vm303_vm2 = vcmask (!%p136_p10), 1022976   ;;  %vm340_vm3 = vcmask (!%p136_p10), 1014784  }
   0xf   : > { %139 = sbr.rel (%p136_p10) target bundleno = 1339 (0x53b), region = 28  ;;  %s4770_s29 = smov (!%p136_p10), 126   ;;  %vm383_vm4 = vcmask (!%p136_p10), 1006592   ;;  %vm431_vm5 = vcmask (!%p136_p10), 998400   ;;  %vm474_vm6 = vcmask (!%p136_p10), 990208   ;;  %vm511_vm7 = vcmask (!%p136_p10), 982016  }
  0x10   : > { %s4771_s30 = smov (!%p136_p10), 125   ;;  %s4772_s3 = smov (!%p136_p10), 124   ;;  %vm554_vm8 = vcmask (!%p136_p10), 719872   ;;  %vm597_vm9 = vcmask (!%p136_p10), 711680   ;;  %vm645_vm10 = vcmask (!%p136_p10), 703488   ;;  %vm682_vm11 = vcmask (!%p136_p10), 695296  }
  0x11   : > { %s4773_s4 = smov (!%p136_p10), 123   ;;  %s4774_s5 = smov (!%p136_p10), 122   ;;  %vm725_vm12 = vcmask (!%p136_p10), 687104   ;;  %vm773_vm13 = vcmask (!%p136_p10), 678912   ;;  %vm816_vm14 = vcmask (!%p136_p10), 670720   ;;  %vm853_vm15 = vcmask (!%p136_p10), 662528  }
  0x12   : > { %s4775_s6 = smov (!%p136_p10), 121   ;;  %s4776_s7 = smov (!%p136_p10), 120  }
  0x13   : > { %s4777_s8 = smov (!%p136_p10), 88   ;;  %s4778_s15 = smov (!%p136_p10), 87  }
  0x14   : > { %s4779_s16 = smov (!%p136_p10), 86   ;;  %s4780_s18 = smov (!%p136_p10), 85  }
  0x15   : > { %s4781_s20 = smov (!%p136_p10), 84   ;;  %s4784_s25 = smov (!%p136_p10), 81  }
  0x16   : > { %s164_s23 = scalar_select %p163_p11, %s4759_s12, 1 }
  0x17   : > { %s4785_s26 = smov 80  }
  0x18   : > { %s4097_s24 = sshll.u32 %s164_s23, 5  ;;  %s4782_s23 = smov 83  }
  0x19   : > { %s4921_s27 = scalar_lea.vmem %s6166_s0, %s4097_s24  ;;  %s4783_s24 = smov 82  }
  0x1a   : > { %v186_v0 = vld [vmem:[%s4921_s27 + $0x8] sm:$0x77]  ;;  %v185_v1 = vld [vmem:[%s4921_s27] sm:$0x77]  ;;  %v187_v2 = vld [vmem:[%s4921_s27 + $0x10] sm:$0x77] }
  0x1b   : > { %v196_v3 = vrot.slane %v186_v0, 5  ;;  %v192_v4 = vcombine.high %v186_v0, %v186_v0  ;;  %v194_v5 = vrot.slane %v185_v1, 5  ;;  %v191_v6 = vcombine.high %v185_v1, %v185_v1  ;;  %v228_v10 = vld [vmem:[%s4921_s27] sm:$0x77]  ;;  %v229_v14 = vld [vmem:[%s4921_s27 + $0x8] sm:$0x77] }
  0x1c   : > { %v198_v8 = vrot.slane %v187_v2, 5  ;;  %v193_v9 = vcombine.high %v187_v2, %v187_v2  ;;  %v234_v13 = vcombine.high %v228_v10, %v228_v10  ;;  %v237_v16 = vrot.slane %v228_v10, 2  ;;  %v230_v18 = vld [vmem:[%s4921_s27 + $0x10] sm:$0x77]  ;;  %v276_v22 = vld [vmem:[%s4921_s27] sm:$0x77] }
  0x1d   : > { %204 = vrot.lane.b32.xlu1 %v196_v3, %s4769_s28  ;;  %200 = vrot.lane.b32.xlu0 %v194_v5, %s4769_s28  ;;  %v197_v7 = vrot.slane %v192_v4, 5  ;;  %v195_v12 = vrot.slane %v191_v6, 5  ;;  %v235_v17 = vcombine.high %v229_v14, %v229_v14  ;;  %v239_v20 = vrot.slane %v229_v14, 2  ;;  %v277_v26 = vld [vmem:[%s4921_s27 + $0x8] sm:$0x77] }
  0x1e   : > { %v199_v11 = vrot.slane %v193_v9, 5  ;;  %v238_v15 = vrot.slane %v234_v13, 2  ;;  %v236_v21 = vcombine.high %v230_v18, %v230_v18  ;;  %v241_v24 = vrot.slane %v230_v18, 2  ;;  %v278_v30 = vld [vmem:[%s4921_s27 + $0x10] sm:$0x77] }
  0x1f   : > { %v240_v19 = vrot.slane %v235_v17, 2  ;;  %v282_v25 = vcombine.high %v276_v22, %v276_v22  ;;  %v285_v28 = vrot.slane %v276_v22, 7  ;;  %v283_v29 = vcombine.high %v277_v26, %v277_v26  ;;  %v171_v31 = vld [vmem:[%s4921_s27] sm:$0x77]  ;;  %v172_v33 = vld [vmem:[%s4921_s27 + $0x8] sm:$0x77] }
  0x20   : > { %v242_v23 = vrot.slane %v236_v21, 2  ;;  %v176_v32 = vcombine.high %v171_v31, %v171_v31  ;;  %180 = vst [vmem:[#allocation2] sm:$0x7] %v171_v31  ;;  %v173_v34 = vld [vmem:[%s4921_s27 + $0x10] sm:$0x7]  ;;  %v177_v35 = vcombine.high %v172_v33, %v172_v33  ;;  %v287_v37 = vrot.slane %v277_v26, 7 }
  0x21   : > { %206 = vrot.lane.b32.xlu1 %v197_v7, %s4769_s28  ;;  %208 = vrot.lane.b32.xlu0 %v198_v8, %s4769_s28  ;;  %v286_v27 = vrot.slane %v282_v25, 7  ;;  %182 = vst [vmem:[#allocation2 + $0x10] sm:$0x7] %v172_v33  ;;  %184 = vst [vmem:[#allocation2 + $0x20] sm:$0x7] %v173_v34  ;;  %v288_v36 = vrot.slane %v283_v29, 7  ;;  %v284_v38 = vcombine.high %v278_v30, %v278_v30 }
  0x22   : > { %181 = vst [vmem:[#allocation2 + $0x8] sm:$0x7] %v176_v32  ;;  %183 = vst [vmem:[#allocation2 + $0x18] sm:$0x7] %v177_v35  ;;  %v289_v40 = vrot.slane %v278_v30, 7 }
  0x23   : > { %v290_v39 = vrot.slane %v284_v38, 7  ;;  %v319_v41 = vld [vmem:[%s4921_s27] sm:$0x77]  ;;  %v320_v43 = vld [vmem:[%s4921_s27 + $0x8] sm:$0x77] }
  0x24   : > { %v325_v42 = vcombine.low %v319_v41, %v319_v41  ;;  %v326_v44 = vcombine.low %v320_v43, %v320_v43  ;;  %v321_v45 = vld [vmem:[%s4921_s27 + $0x10] sm:$0x77]  ;;  %v356_v46 = vld [vmem:[%s4921_s27] sm:$0x77]  ;;  %v357_v49 = vld [vmem:[%s4921_s27 + $0x8] sm:$0x77] }
  0x25   : > { %210 = vrot.lane.b32.xlu1 %v199_v11, %s4769_s28  ;;  %202 = vrot.lane.b32.xlu0 %v195_v12, %s4769_s28  ;;  %v327_v47 = vcombine.low %v321_v45, %v321_v45  ;;  %v362_v48 = vcombine.high %v356_v46, %v356_v46  ;;  %v365_v51 = vrot.slane %v356_v46, 1  ;;  %v363_v52 = vcombine.high %v357_v49, %v357_v49  ;;  %v358_v53 = vld [vmem:[%s4921_s27 + $0x10] sm:$0x77]  ;;  %v404_v57 = vld [vmem:[%s4921_s27] sm:$0x77]  ;;  %s4786_s28 = smov 48  }
  0x26   : > { %v367_v55 = vrot.slane %v357_v49, 1  ;;  %v364_v56 = vcombine.high %v358_v53, %v358_v53  ;;  %v369_v59 = vrot.slane %v358_v53, 1  ;;  %v410_v60 = vcombine.high %v404_v57, %v404_v57  ;;  %v405_v61 = vld [vmem:[%s4921_s27 + $0x8] sm:$0x77]  ;;  %v406_v1 = vld [vmem:[%s4921_s27 + $0x10] sm:$0x77] }
  0x27   : > { %v366_v50 = vrot.slane %v362_v48, 1  ;;  %v368_v54 = vrot.slane %v363_v52, 1  ;;  %v413_v63 = vrot.slane %v404_v57, 6  ;;  %v411_v0 = vcombine.high %v405_v61, %v405_v61  ;;  %v447_v5 = vld [vmem:[%s4921_s27] sm:$0x77] }
  0x28   : > { %v370_v58 = vrot.slane %v364_v56, 1  ;;  %v414_v62 = vrot.slane %v410_v60, 6  ;;  %v415_v3 = vrot.slane %v405_v61, 6  ;;  %v412_v4 = vcombine.high %v406_v1, %v406_v1  ;;  %v448_v9 = vld [vmem:[%s4921_s27 + $0x8] sm:$0x77] }
  0x29   : > { %245 = vrot.lane.b32.xlu1 %v238_v15, %s4770_s29  ;;  %243 = vrot.lane.b32.xlu0 %v237_v16, %s4770_s29  ;;  %v416_v2 = vrot.slane %v411_v0, 6  ;;  %v417_v7 = vrot.slane %v406_v1, 6  ;;  %v453_v8 = vcombine.high %v447_v5, %v447_v5  ;;  %v456_v11 = vrot.slane %v447_v5, 3  ;;  %v449_v13 = vld [vmem:[%s4921_s27 + $0x10] sm:$0x77] }
  0x2a   : > { %v418_v6 = vrot.slane %v412_v4, 6  ;;  %v454_v12 = vcombine.high %v448_v9, %v448_v9  ;;  %v458_v15 = vrot.slane %v448_v9, 3  ;;  %v455_v16 = vcombine.high %v449_v13, %v449_v13  ;;  %v491_v21 = vld [vmem:[%s4921_s27 + $0x8] sm:$0x77]  ;;  %v529_v31 = vld [vmem:[%s4921_s27 + $0x10] sm:$0x77] }
  0x2b   : > { %v457_v10 = vrot.slane %v453_v8, 3  ;;  %v460_v18 = vrot.slane %v449_v13, 3  ;;  %v497_v22 = vcombine.high %v491_v21, %v491_v21  ;;  %v535_v34 = vcombine.high %v529_v31, %v529_v31  ;;  %v570_v35 = vld [vmem:[%s4921_s27] sm:$0x77]  ;;  %v620_v57 = vld [vmem:[%s4921_s27 + $0x10] sm:$0x77] }
  0x2c   : > { %v459_v14 = vrot.slane %v454_v12, 3  ;;  %v461_v17 = vrot.slane %v455_v16, 3  ;;  %v576_v38 = vcombine.high %v570_v35, %v570_v35  ;;  %v626_v0 = vcombine.high %v620_v57, %v620_v57  ;;  %v661_v8 = vld [vmem:[%s4921_s27] sm:$0x77]  ;;  %v662_v13 = vld [vmem:[%s4921_s27 + $0x8] sm:$0x77] }
  0x2d   : > { %249 = vrot.lane.b32.xlu1 %v240_v19, %s4770_s29  ;;  %247 = vrot.lane.b32.xlu0 %v239_v20, %s4770_s29  ;;  %v490_v19 = vld [vmem:[%s4921_s27] sm:$0x77]  ;;  %v667_v12 = vcombine.low %v661_v8, %v661_v8 }
  0x2e   : > { %v496_v20 = vcombine.high %v490_v19, %v490_v19 }
  0x31   : > { %253 = vrot.lane.b32.xlu1 %v242_v23, %s4770_s29  ;;  %251 = vrot.lane.b32.xlu0 %v241_v24, %s4770_s29  ;;  %v492_v23 = vld [vmem:[%s4921_s27 + $0x10] sm:$0x77]  ;;  %v527_v24 = vld [vmem:[%s4921_s27] sm:$0x77]  ;;  %s4787_s29 = smov 47  }
  0x32   : > { %v498_v25 = vcombine.high %v492_v23, %v492_v23  ;;  %v533_v26 = vcombine.high %v527_v24, %v527_v24  ;;  %v536_v29 = vrot.slane %v527_v24, 5 }
  0x35   : > { %293 = vrot.lane.b32.xlu1 %v286_v27, %s4771_s30  ;;  %291 = vrot.lane.b32.xlu0 %v285_v28, %s4771_s30  ;;  %v528_v27 = vld [vmem:[%s4921_s27 + $0x8] sm:$0x77]  ;;  %v537_v28 = vrot.slane %v533_v26, 5 }
  0x36   : > { %v534_v30 = vcombine.high %v528_v27, %v528_v27  ;;  %v538_v33 = vrot.slane %v528_v27, 5  ;;  %v699_v27 = vld [vmem:[%s4921_s27 + $0x8] sm:$0x77] }
  0x38   : > { %v539_v32 = vrot.slane %v534_v30, 5 }
  0x39   : > { %297 = vrot.lane.b32.xlu1 %v288_v36, %s4771_s30  ;;  %295 = vrot.lane.b32.xlu0 %v287_v37, %s4771_s30  ;;  %v541_v36 = vrot.slane %v535_v34, 5  ;;  %v540_v37 = vrot.slane %v529_v31, 5  ;;  %v700_v34 = vld [vmem:[%s4921_s27 + $0x10] sm:$0x77] }
  0x3d   : > { %301 = vrot.lane.b32.xlu1 %v290_v39, %s4771_s30  ;;  %299 = vrot.lane.b32.xlu0 %v289_v40, %s4771_s30  ;;  %v571_v39 = vld [vmem:[%s4921_s27 + $0x8] sm:$0x77]  ;;  %v580_v40 = vrot.slane %v576_v38, 2  ;;  %s4788_s30 = smov 46  }
  0x41   : > { %330 = vrot.lane.b32.xlu1 %v319_v41, %s4772_s3  ;;  %328 = vrot.lane.b32.xlu0 %v325_v42, %s4772_s3  ;;  %v579_v41 = vrot.slane %v570_v35, 2  ;;  %v577_v42 = vcombine.high %v571_v39, %v571_v39 }
  0x45   : > { %334 = vrot.lane.b32.xlu1 %v320_v43, %s4772_s3  ;;  %332 = vrot.lane.b32.xlu0 %v326_v44, %s4772_s3  ;;  %v572_v43 = vld [vmem:[%s4921_s27 + $0x10] sm:$0x77]  ;;  %v582_v44 = vrot.slane %v577_v42, 2  ;;  %v746_v42 = vld [vmem:[%s4921_s27] sm:$0x77] }
  0x46   : > { %v578_v46 = vcombine.high %v572_v43, %v572_v43  ;;  %v583_v49 = vrot.slane %v572_v43, 2 }
  0x48   : > { %v584_v48 = vrot.slane %v578_v46, 2 }
  0x49   : > { %338 = vrot.lane.b32.xlu1 %v321_v45, %s4772_s3  ;;  %336 = vrot.lane.b32.xlu0 %v327_v47, %s4772_s3  ;;  %v581_v45 = vrot.slane %v571_v39, 2  ;;  %v618_v47 = vld [vmem:[%s4921_s27] sm:$0x77]  ;;  %s4789_s3 = smov 45  }
  0x4d   : > { %373 = vrot.lane.b32.xlu1 %v366_v50, %s4773_s4  ;;  %371 = vrot.lane.b32.xlu0 %v365_v51, %s4773_s4  ;;  %v624_v50 = vcombine.high %v618_v47, %v618_v47  ;;  %v619_v51 = vld [vmem:[%s4921_s27 + $0x8] sm:$0x77] }
  0x4e   : > { %v625_v56 = vcombine.high %v619_v51, %v619_v51 }
  0x51   : > { %377 = vrot.lane.b32.xlu1 %v368_v54, %s4773_s4  ;;  %375 = vrot.lane.b32.xlu0 %v367_v55, %s4773_s4  ;;  %v628_v54 = vrot.slane %v624_v50, 7  ;;  %v627_v55 = vrot.slane %v618_v47, 7  ;;  %v747_v50 = vld [vmem:[%s4921_s27 + $0x8] sm:$0x77] }
  0x55   : > { %381 = vrot.lane.b32.xlu1 %v370_v58, %s4773_s4  ;;  %379 = vrot.lane.b32.xlu0 %v369_v59, %s4773_s4  ;;  %s4790_s4 = smov 44  }
  0x59   : > { %421 = vrot.lane.b32.xlu1 %v414_v62, %s4774_s5  ;;  %419 = vrot.lane.b32.xlu0 %v413_v63, %s4774_s5  ;;  %v630_v62 = vrot.slane %v625_v56, 7  ;;  %v629_v63 = vrot.slane %v619_v51, 7  ;;  %v753_v56 = vcombine.high %v747_v50, %v747_v50 }
  0x5d   : > { %425 = vrot.lane.b32.xlu1 %v416_v2, %s4774_s5  ;;  %423 = vrot.lane.b32.xlu0 %v415_v3, %s4774_s5 }
  0x61   : > { %429 = vrot.lane.b32.xlu1 %v418_v6, %s4774_s5  ;;  %427 = vrot.lane.b32.xlu0 %v417_v7, %s4774_s5  ;;  %v632_v6 = vrot.slane %v626_v0, 7  ;;  %v631_v7 = vrot.slane %v620_v57, 7  ;;  %v748_v57 = vld [vmem:[%s4921_s27 + $0x10] sm:$0x77]  ;;  %s4791_s5 = smov 43  }
  0x62   : > { %v754_v0 = vcombine.high %v748_v57, %v748_v57 }
  0x65   : > { %464 = vrot.lane.b32.xlu1 %v457_v10, %s4775_s6  ;;  %462 = vrot.lane.b32.xlu0 %v456_v11, %s4775_s6 }
  0x69   : > { %468 = vrot.lane.b32.xlu1 %v459_v14, %s4775_s6  ;;  %466 = vrot.lane.b32.xlu0 %v458_v15, %s4775_s6 }
  0x6d   : > { %472 = vrot.lane.b32.xlu1 %v461_v17, %s4775_s6  ;;  %470 = vrot.lane.b32.xlu0 %v460_v18, %s4775_s6  ;;  %v668_v18 = vcombine.low %v662_v13, %v662_v13  ;;  %s4792_s6 = smov 42  }
  0x71   : > { %501 = vrot.lane.b32.xlu1 %v496_v20, %s4776_s7  ;;  %499 = vrot.lane.b32.xlu0 %v490_v19, %s4776_s7  ;;  %v663_v19 = vld [vmem:[%s4921_s27 + $0x10] sm:$0x77]  ;;  %v698_v20 = vld [vmem:[%s4921_s27] sm:$0x77] }
  0x72   : > { %v704_v26 = vcombine.high %v698_v20, %v698_v20 }
  0x74   : > { %v708_v31 = vrot.slane %v704_v26, 1 }
  0x75   : > { %505 = vrot.lane.b32.xlu1 %v497_v22, %s4776_s7  ;;  %503 = vrot.lane.b32.xlu0 %v491_v21, %s4776_s7 }
  0x79   : > { %509 = vrot.lane.b32.xlu1 %v498_v25, %s4776_s7  ;;  %507 = vrot.lane.b32.xlu0 %v492_v23, %s4776_s7  ;;  %v669_v25 = vcombine.low %v663_v19, %v663_v19  ;;  %s4793_s7 = smov 41  }
  0x7d   : > { %544 = vrot.lane.b32.xlu1 %v537_v28, %s4777_s8  ;;  %542 = vrot.lane.b32.xlu0 %v536_v29, %s4777_s8 }
  0x81   : > { %548 = vrot.lane.b32.xlu1 %v539_v32, %s4777_s8  ;;  %546 = vrot.lane.b32.xlu0 %v538_v33, %s4777_s8  ;;  %v707_v32 = vrot.slane %v698_v20, 1  ;;  %v705_v33 = vcombine.high %v699_v27, %v699_v27 }
  0x83   : > { %v710_v39 = vrot.slane %v705_v33, 1 }
  0x85   : > { %552 = vrot.lane.b32.xlu1 %v541_v36, %s4777_s8  ;;  %550 = vrot.lane.b32.xlu0 %v540_v37, %s4777_s8 }
  0x89   : > { %587 = vrot.lane.b32.xlu1 %v580_v40, %s4778_s15  ;;  %585 = vrot.lane.b32.xlu0 %v579_v41, %s4778_s15  ;;  %v709_v40 = vrot.slane %v699_v27, 1  ;;  %v706_v41 = vcombine.high %v700_v34, %v700_v34 }
  0x8b   : > { %v712_v47 = vrot.slane %v706_v41, 1  ;;  %v833_v41 = vld [vmem:[%s4921_s27 + $0x8] sm:$0x77] }
  0x8d   : > { %591 = vrot.lane.b32.xlu1 %v582_v44, %s4778_s15  ;;  %589 = vrot.lane.b32.xlu0 %v581_v45, %s4778_s15 }
  0x8f   : > { %v205_v52 = vpop.permute.xlu1 %204  ;;  %v201_v53 = vpop.permute.xlu0 %200 }
  0x91   : > { %595 = vrot.lane.b32.xlu1 %v584_v48, %s4778_s15  ;;  %593 = vrot.lane.b32.xlu0 %v583_v49, %s4778_s15  ;;  %v711_v48 = vrot.slane %v700_v34, 1  ;;  %v752_v49 = vcombine.high %v746_v42, %v746_v42  ;;  %s4794_s15 = smov 40  }
  0x93   : > { %v207_v58 = vpop.permute.xlu1 %206  ;;  %v209_v59 = vpop.permute.xlu0 %208 }
  0x94   : > { %v215_v60 = vsel %vm212_vm0, %v205_v52, %v207_v58  ;;  %v216_v61 = vsel %vm212_vm0, %v207_v58, %v209_v59 }
  0x95   : > { %225 = vst [vmem:[#allocation2 + $0x10] sm:$0x38] %v215_v60  ;;  %226 = vst [vmem:[#allocation2 + $0x18] sm:$0x38] %v216_v61  ;;  %635 = vrot.lane.b32.xlu1 %v628_v54, %s4779_s16  ;;  %633 = vrot.lane.b32.xlu0 %v627_v55, %s4779_s16  ;;  %v756_v54 = vrot.slane %v752_v49, 6  ;;  %v755_v55 = vrot.slane %v746_v42, 6 }
  0x97   : > { %v211_v1 = vpop.permute.xlu1 %210  ;;  %v203_v2 = vpop.permute.xlu0 %202 }
  0x98   : > { %v217_v3 = vsel %vm212_vm0, %v209_v59, %v211_v1  ;;  %v213_v4 = vsel %vm212_vm0, %v201_v53, %v203_v2  ;;  %v214_v5 = vsel %vm212_vm0, %v203_v2, %v205_v52  ;;  %v789_v1 = vld [vmem:[%s4921_s27] sm:$0x77]  ;;  %vm896_vm0 = vcmask 654336  }
  0x99   : > { %227 = vst [vmem:[#allocation2 + $0x20] sm:$0x38] %v217_v3  ;;  %223 = vst [vmem:[#allocation2] sm:$0x38] %v213_v4  ;;  %639 = vrot.lane.b32.xlu1 %v630_v62, %s4779_s16  ;;  %637 = vrot.lane.b32.xlu0 %v629_v63, %s4779_s16  ;;  %v758_v62 = vrot.slane %v753_v56, 6  ;;  %v757_v63 = vrot.slane %v747_v50, 6 }
  0x9a   : > { %224 = vst [vmem:[#allocation2 + $0x8] sm:$0x38] %v214_v5 }
  0x9b   : > { %v246_v9 = vpop.permute.xlu1 %245  ;;  %v244_v10 = vpop.permute.xlu0 %243 }
  0x9c   : > { %v256_v11 = vsel %vm255_vm1, %v244_v10, %v246_v9 }
  0x9d   : > { %266 = vst [vmem:[#allocation2 + $0x28] ss:$-36 sps:$4 sm:$0xc1] %v256_v11   ;;  %643 = vrot.lane.b32.xlu1 %v632_v6, %s4779_s16  ;;  %641 = vrot.lane.b32.xlu0 %v631_v7, %s4779_s16  ;;  %v760_v6 = vrot.slane %v754_v0, 6  ;;  %v759_v7 = vrot.slane %v748_v57, 6  ;;  %s6171_s16 = smov 8  }
  0x9f   : > { %v250_v14 = vpop.permute.xlu1 %249  ;;  %v248_v15 = vpop.permute.xlu0 %247 }
  0xa0   : > { %v257_v16 = vsel %vm255_vm1, %v246_v9, %v248_v15  ;;  %v258_v17 = vsel %vm255_vm1, %v248_v15, %v250_v14  ;;  %v790_v9 = vld [vmem:[%s4921_s27 + $0x8] sm:$0x77] }
  0xa1   : > { %267 = vst [vmem:[#allocation2 + $0x30] ss:$-36 sps:$4 sm:$0xc1] %v257_v16   ;;  %268 = vst [vmem:[#allocation2 + $0x38] ss:$-36 sps:$4 sm:$0xc1] %v258_v17   ;;  %672 = vrot.lane.b32.xlu1 %v661_v8, %s4780_s18  ;;  %670 = vrot.lane.b32.xlu0 %v667_v12, %s4780_s18  ;;  %v795_v8 = vcombine.high %v789_v1, %v789_v1  ;;  %v796_v15 = vcombine.high %v790_v9, %v790_v9 }
  0xa2   : > { %v791_v16 = vld [vmem:[%s4921_s27 + $0x10] sm:$0x77] }
  0xa3   : > { %v254_v21 = vpop.permute.xlu1 %253  ;;  %v252_v22 = vpop.permute.xlu0 %251 }
  0xa4   : > { %v259_v23 = vsel %vm255_vm1, %v250_v14, %v252_v22  ;;  %v260_v24 = vsel %vm255_vm1, %v252_v22, %v254_v21  ;;  %v798_v14 = vrot.slane %v789_v1, 3  ;;  %v801_v21 = vrot.slane %v796_v15, 3 }
  0xa5   : > { %269 = vst [vmem:[#allocation2 + $0x40] ss:$-36 sps:$4 sm:$0xc1] %v259_v23   ;;  %270 = vst [vmem:[#allocation2 + $0x48] ss:$-36 sps:$4 sm:$0xc1] %v260_v24   ;;  %676 = vrot.lane.b32.xlu1 %v662_v13, %s4780_s18  ;;  %674 = vrot.lane.b32.xlu0 %v668_v18, %s4780_s18  ;;  %v797_v23 = vcombine.high %v791_v16, %v791_v16 }
  0xa6   : > { %v799_v13 = vrot.slane %v795_v8, 3  ;;  %v800_v22 = vrot.slane %v790_v9, 3  ;;  %vm939_vm1 = vcmask 392192  }
  0xa7   : > { %v294_v28 = vpop.permute.xlu1 %293  ;;  %v292_v29 = vpop.permute.xlu0 %291 }
  0xa8   : > { %v304_v30 = vsel %vm303_vm2, %v292_v29, %v294_v28  ;;  %v802_v29 = vrot.slane %v791_v16, 3  ;;  %v3601_v50 = vld [vmem:[#allocation2 + $0x10] sm:$0xff] }
  0xa9   : > { %314 = vst [vmem:[#allocation2 + $0x28] sm:$0xe] %v304_v30  ;;  %680 = vrot.lane.b32.xlu1 %v663_v19, %s4780_s18  ;;  %678 = vrot.lane.b32.xlu0 %v669_v25, %s4780_s18  ;;  %v832_v30 = vld [vmem:[%s4921_s27] sm:$0x77]  ;;  %s4796_s18 = smov 7  }
  0xab   : > { %v298_v35 = vpop.permute.xlu1 %297  ;;  %v296_v36 = vpop.permute.xlu0 %295 }
  0xac   : > { %v305_v37 = vsel %vm303_vm2, %v294_v28, %v296_v36  ;;  %v306_v38 = vsel %vm303_vm2, %v296_v36, %v298_v35  ;;  %v803_v28 = vrot.slane %v797_v23, 3 }
  0xad   : > { %315 = vst [vmem:[#allocation2 + $0x30] sm:$0xe] %v305_v37  ;;  %316 = vst [vmem:[#allocation2 + $0x38] sm:$0xe] %v306_v38  ;;  %715 = vrot.lane.b32.xlu1 %v708_v31, %s4781_s20  ;;  %713 = vrot.lane.b32.xlu0 %v707_v32, %s4781_s20  ;;  %v3599_v38 = vld [vmem:[#allocation2] sm:$0xff] }
  0xaf   : > { %v302_v43 = vpop.permute.xlu1 %301  ;;  %v300_v44 = vpop.permute.xlu0 %299 }
  0xb0   : > { %v307_v45 = vsel %vm303_vm2, %v298_v35, %v300_v44  ;;  %v308_v46 = vsel %vm303_vm2, %v300_v44, %v302_v43  ;;  %v3600_v35 = vld [vmem:[#allocation2 + $0x8] sm:$0xff]  ;;  %vm987_vm2 = vcmask 384000  }
  0xb1   : > { %317 = vst [vmem:[#allocation2 + $0x40] sm:$0xe] %v307_v45  ;;  %318 = vst [vmem:[#allocation2 + $0x48] sm:$0xe] %v308_v46  ;;  %719 = vrot.lane.b32.xlu1 %v710_v39, %s4781_s20  ;;  %717 = vrot.lane.b32.xlu0 %v709_v40, %s4781_s20  ;;  %v838_v39 = vcombine.high %v832_v30, %v832_v30 }
  0xb3   : > { %v331_v51 = vpop.permute.xlu1 %330  ;;  %v329_v52 = vpop.permute.xlu0 %328 }
  0xb4   : > { %v341_v53 = vsel %vm340_vm3, %v329_v52, %v331_v51 }
  0xb5   : > { %351 = vst [vmem:[#allocation2 + $0x28] sm:$0x70] %v341_v53  ;;  %723 = vrot.lane.b32.xlu1 %v712_v47, %s4781_s20  ;;  %721 = vrot.lane.b32.xlu0 %v711_v48, %s4781_s20  ;;  %v3602_v47 = vld [vmem:[#allocation2 + $0x18] sm:$0xff]  ;;  %v834_v53 = vld [vmem:[%s4921_s27 + $0x10] sm:$0x77]  ;;  %s4797_s20 = smov 6  }
  0xb7   : > { %v335_v58 = vpop.permute.xlu1 %334  ;;  %v333_v59 = vpop.permute.xlu0 %332 }
  0xb8   : > { %v342_v60 = vsel %vm340_vm3, %v331_v51, %v333_v59  ;;  %v343_v61 = vsel %vm340_vm3, %v333_v59, %v335_v58  ;;  %v839_v51 = vcombine.high %v833_v41, %v833_v41  ;;  %v840_v59 = vcombine.high %v834_v53, %v834_v53 }
  0xb9   : > { %352 = vst [vmem:[#allocation2 + $0x30] sm:$0x70] %v342_v60  ;;  %353 = vst [vmem:[#allocation2 + $0x38] sm:$0x70] %v343_v61  ;;  %763 = vrot.lane.b32.xlu1 %v756_v54, %s4782_s23  ;;  %761 = vrot.lane.b32.xlu0 %v755_v55, %s4782_s23  ;;  %v869_v54 = vld [vmem:[%s4921_s27] sm:$0x77] }
  0xba   : > { %v875_v60 = vcombine.high %v869_v54, %v869_v54  ;;  %v870_v61 = vld [vmem:[%s4921_s27 + $0x8] sm:$0x77] }
  0xbb   : > { %v339_v2 = vpop.permute.xlu1 %338  ;;  %v337_v3 = vpop.permute.xlu0 %336 }
  0xbc   : > { %v344_v4 = vsel %vm340_vm3, %v335_v58, %v337_v3  ;;  %v345_v5 = vsel %vm340_vm3, %v337_v3, %v339_v2  ;;  %v879_v1 = vrot.slane %v875_v60, 5  ;;  %v878_v2 = vrot.slane %v869_v54, 5 }
  0xbd   : > { %354 = vst [vmem:[#allocation2 + $0x40] sm:$0x70] %v344_v4  ;;  %355 = vst [vmem:[#allocation2 + $0x48] sm:$0x70] %v345_v5  ;;  %767 = vrot.lane.b32.xlu1 %v758_v62, %s4782_s23  ;;  %765 = vrot.lane.b32.xlu0 %v757_v63, %s4782_s23  ;;  %v876_v3 = vcombine.high %v870_v61, %v870_v61  ;;  %v871_v4 = vld [vmem:[%s4921_s27 + $0x10] sm:$0x77] }
  0xbe   : > { %vm1024_vm3 = vcmask 375808  }
  0xbf   : > { %v374_v10 = vpop.permute.xlu1 %373  ;;  %v372_v11 = vpop.permute.xlu0 %371  ;;  %v881_v9 = vrot.slane %v876_v3, 5 }
  0xc0   : > { %v384_v12 = vsel %vm383_vm4, %v372_v11, %v374_v10  ;;  %v877_v11 = vcombine.high %v871_v4, %v871_v4 }
  0xc1   : > { %394 = vst [vmem:[#allocation2 + $0x50] ss:$-36 sps:$4 sm:$0x83] %v384_v12   ;;  %771 = vrot.lane.b32.xlu1 %v760_v6, %s4782_s23  ;;  %769 = vrot.lane.b32.xlu0 %v759_v7, %s4782_s23  ;;  %v912_v12 = vld [vmem:[%s4921_s27] sm:$0x77]  ;;  %s4798_s23 = smov 5  }
  0xc3   : > { %v378_v17 = vpop.permute.xlu1 %377  ;;  %v376_v18 = vpop.permute.xlu0 %375 }
  0xc4   : > { %v385_v19 = vsel %vm383_vm4, %v374_v10, %v376_v18  ;;  %v386_v20 = vsel %vm383_vm4, %v376_v18, %v378_v17  ;;  %v880_v10 = vrot.slane %v870_v61, 5  ;;  %v882_v18 = vrot.slane %v871_v4, 5 }
  0xc5   : > { %395 = vst [vmem:[#allocation2 + $0x58] ss:$-36 sps:$4 sm:$0x83] %v385_v19   ;;  %396 = vst [vmem:[#allocation2 + $0x60] ss:$-36 sps:$4 sm:$0x83] %v386_v20   ;;  %806 = vrot.lane.b32.xlu1 %v799_v13, %s4783_s24  ;;  %804 = vrot.lane.b32.xlu0 %v798_v14, %s4783_s24  ;;  %v918_v19 = vcombine.high %v912_v12, %v912_v12 }
  0xc6   : > { %v913_v20 = vld [vmem:[%s4921_s27 + $0x8] sm:$0x77] }
  0xc7   : > { %v382_v24 = vpop.permute.xlu1 %381  ;;  %v380_v25 = vpop.permute.xlu0 %379 }
  0xc8   : > { %v387_v26 = vsel %vm383_vm4, %v378_v17, %v380_v25  ;;  %v388_v27 = vsel %vm383_vm4, %v380_v25, %v382_v24  ;;  %v3604_v33 = vld [vmem:[#allocation2 + $0x28] sm:$0xff]  ;;  %v883_v17 = vrot.slane %v877_v11, 5  ;;  %v922_v24 = vrot.slane %v918_v19, 2  ;;  %v1005_v11 = vld [vmem:[%s4921_s27 + $0x10] sm:$0x77] }
  0xc9   : > { %397 = vst [vmem:[#allocation2 + $0x68] ss:$-36 sps:$4 sm:$0x83] %v387_v26   ;;  %398 = vst [vmem:[#allocation2 + $0x70] ss:$-36 sps:$4 sm:$0x83] %v388_v27   ;;  %810 = vrot.lane.b32.xlu1 %v801_v21, %s4783_s24  ;;  %808 = vrot.lane.b32.xlu0 %v800_v22, %s4783_s24  ;;  %v4136_v40 = vpack.c.bf16 %v3604_v33, %v3599_v38  ;;  %v919_v26 = vcombine.high %v913_v20, %v913_v20 }
  0xca   : > { %v921_v25 = vrot.slane %v912_v12, 2  ;;  %v914_v27 = vld [vmem:[%s4921_s27 + $0x10] sm:$0x77]  ;;  %v923_v33 = vrot.slane %v913_v20, 2  ;;  %v1040_v12 = vld [vmem:[%s4921_s27] sm:$0x77] }
  0xcb   : > { %v422_v31 = vpop.permute.xlu1 %421  ;;  %v420_v32 = vpop.permute.xlu0 %419  ;;  %v1041_v19 = vld [vmem:[%s4921_s27 + $0x8] sm:$0x77]  ;;  %vm1067_vm4 = vcmask 367616  }
  0xcc   : > { %v432_v34 = vsel %vm431_vm5, %v420_v32, %v422_v31  ;;  %v3605_v36 = vld [vmem:[#allocation2 + $0x30] sm:$0xff]  ;;  %v3606_v44 = vld [vmem:[#allocation2 + $0x38] sm:$0xff]  ;;  %v924_v32 = vrot.slane %v919_v26, 2 }
  0xcd   : > { %442 = vst [vmem:[#allocation2 + $0x50] sm:$0x1c] %v432_v34  ;;  %814 = vrot.lane.b32.xlu1 %v803_v28, %s4783_s24  ;;  %812 = vrot.lane.b32.xlu0 %v802_v29, %s4783_s24  ;;  %v4134_v37 = vpack.c.bf16 %v3605_v36, %v3600_v35  ;;  %v4200_v52 = vpack.c.bf16 %v3606_v44, %v3601_v50  ;;  %v960_v35 = vld [vmem:[%s4921_s27] sm:$0x77]  ;;  %v962_v50 = vld [vmem:[%s4921_s27 + $0x10] sm:$0x77] }
  0xce   : > { %v920_v34 = vcombine.high %v914_v27, %v914_v27  ;;  %s4799_s24 = smov 4  }
  0xcf   : > { %v426_v42 = vpop.permute.xlu1 %425  ;;  %v424_v43 = vpop.permute.xlu0 %423  ;;  %4135 = vmatprep.subr.bf16.mxu0 %v4134_v37 }
  0xd0   : > { %v433_v45 = vsel %vm431_vm5, %v422_v31, %v424_v43  ;;  %v434_v46 = vsel %vm431_vm5, %v424_v43, %v426_v42  ;;  %4137 = vmatpush1.bf16.msra.mxu0 %v4136_v40  ;;  %v3607_v48 = vld [vmem:[#allocation2 + $0x40] sm:$0xff]  ;;  %v926_v40 = vrot.slane %v920_v34, 2  ;;  %v961_v43 = vld [vmem:[%s4921_s27 + $0x8] sm:$0x77] }
  0xd1   : > { %443 = vst [vmem:[#allocation2 + $0x58] sm:$0x1c] %v433_v45  ;;  %444 = vst [vmem:[#allocation2 + $0x60] sm:$0x1c] %v434_v46  ;;  %843 = vrot.lane.b32.xlu1 %v838_v39, %s4784_s25  ;;  %841 = vrot.lane.b32.xlu0 %v832_v30, %s4784_s25  ;;  %v4198_v49 = vpack.c.bf16 %v3607_v48, %v3602_v47  ;;  %v969_v48 = vrot.slane %v960_v35, 7 }
  0xd3   : > { %v430_v55 = vpop.permute.xlu1 %429  ;;  %v428_v56 = vpop.permute.xlu0 %427  ;;  %4199 = vmatprep.subr.bf16.mxu1 %v4198_v49  ;;  %v967_v49 = vcombine.high %v961_v43, %v961_v43 }
  0xd4   : > { %v435_v57 = vsel %vm431_vm5, %v426_v42, %v428_v56  ;;  %v436_v58 = vsel %vm431_vm5, %v428_v56, %v430_v55  ;;  %4201 = vmatpush1.bf16.msra.mxu1 %v4200_v52  ;;  %v966_v42 = vcombine.high %v960_v35, %v960_v35  ;;  %v971_v56 = vrot.slane %v961_v43, 7 }
  0xd5   : > { %445 = vst [vmem:[#allocation2 + $0x68] sm:$0x1c] %v435_v57  ;;  %446 = vst [vmem:[#allocation2 + $0x70] sm:$0x1c] %v436_v58  ;;  %847 = vrot.lane.b32.xlu1 %v839_v51, %s4784_s25  ;;  %845 = vrot.lane.b32.xlu0 %v833_v41, %s4784_s25  ;;  %v925_v41 = vrot.slane %v914_v27, 2  ;;  %v972_v55 = vrot.slane %v967_v49, 7  ;;  %v968_v57 = vcombine.high %v962_v50, %v962_v50 }
  0xd6   : > { %v970_v47 = vrot.slane %v966_v42, 7  ;;  %v1051_v43 = vrot.slane %v1041_v19, 1  ;;  %vm1115_vm5 = vcmask 359424  }
  0xd7   : > { %v465_v62 = vpop.permute.xlu1 %464  ;;  %v463_v63 = vpop.permute.xlu0 %462 }
  0xd8   : > { %v475_v0 = vsel %vm474_vm6, %v463_v63, %v465_v62  ;;  %v973_v63 = vrot.slane %v962_v50, 7 }
  0xd9   : > { %485 = vst [vmem:[#allocation2 + $0x50] sm:$0xe0] %v475_v0  ;;  %851 = vrot.lane.b32.xlu1 %v840_v59, %s4784_s25  ;;  %849 = vrot.lane.b32.xlu0 %v834_v53, %s4784_s25  ;;  %v1003_v0 = vld [vmem:[%s4921_s27] sm:$0x77]  ;;  %s4800_s25 = smov 3  }
  0xda   : > { %v1009_v4 = vcombine.low %v1003_v0, %v1003_v0 }
  0xdb   : > { %v469_v5 = vpop.permute.xlu1 %468  ;;  %v467_v6 = vpop.permute.xlu0 %466 }
  0xdc   : > { %v476_v7 = vsel %vm474_vm6, %v465_v62, %v467_v6  ;;  %v477_v8 = vsel %vm474_vm6, %v467_v6, %v469_v5  ;;  %v974_v62 = vrot.slane %v968_v57, 7 }
  0xdd   : > { %486 = vst [vmem:[#allocation2 + $0x58] sm:$0xe0] %v476_v7  ;;  %487 = vst [vmem:[#allocation2 + $0x60] sm:$0xe0] %v477_v8  ;;  %886 = vrot.lane.b32.xlu1 %v879_v1, %s4785_s26  ;;  %884 = vrot.lane.b32.xlu0 %v878_v2, %s4785_s26 }
  0xdf   : > { %v473_v13 = vpop.permute.xlu1 %472  ;;  %v471_v14 = vpop.permute.xlu0 %470 }
  0xe0   : > { %v478_v15 = vsel %vm474_vm6, %v469_v5, %v471_v14  ;;  %v479_v16 = vsel %vm474_vm6, %v471_v14, %v473_v13  ;;  %v1004_v5 = vld [vmem:[%s4921_s27 + $0x8] sm:$0x77]  ;;  %v3609_v27 = vld [vmem:[#allocation2 + $0x50] sm:$0xff]  ;;  %vm1158_vm6 = vcmask 351232  }
  0xe1   : > { %488 = vst [vmem:[#allocation2 + $0x68] sm:$0xe0] %v478_v15  ;;  %489 = vst [vmem:[#allocation2 + $0x70] sm:$0xe0] %v479_v16  ;;  %890 = vrot.lane.b32.xlu1 %v881_v9, %s4785_s26  ;;  %888 = vrot.lane.b32.xlu0 %v880_v10, %s4785_s26  ;;  %v1010_v10 = vcombine.low %v1004_v5, %v1004_v5 }
  0xe3   : > { %v502_v21 = vpop.permute.xlu1 %501  ;;  %v500_v22 = vpop.permute.xlu0 %499 }
  0xe4   : > { %v512_v23 = vsel %vm511_vm7, %v500_v22, %v502_v21 }
  0xe5   : > { %522 = vst [vmem:[#allocation2 + $0x78] sm:$0x7] %v512_v23  ;;  %894 = vrot.lane.b32.xlu1 %v883_v17, %s4785_s26  ;;  %892 = vrot.lane.b32.xlu0 %v882_v18, %s4785_s26  ;;  %v1011_v17 = vcombine.low %v1005_v11, %v1005_v11  ;;  %v1046_v18 = vcombine.high %v1040_v12, %v1040_v12  ;;  %s4801_s26 = smov 2  }
  0xe7   : > { %v506_v28 = vpop.permute.xlu1 %505  ;;  %v504_v29 = vpop.permute.xlu0 %503 }
  0xe8   : > { %v513_v30 = vsel %vm511_vm7, %v502_v21, %v504_v29  ;;  %v514_v31 = vsel %vm511_vm7, %v504_v29, %v506_v28  ;;  %v1049_v29 = vrot.slane %v1040_v12, 1 }
  0xe9   : > { %523 = vst [vmem:[#allocation2 + $0x80] sm:$0x7] %v513_v30  ;;  %524 = vst [vmem:[#allocation2 + $0x88] sm:$0x7] %v514_v31  ;;  %929 = vrot.lane.b32.xlu1 %v922_v24, %s4786_s28  ;;  %927 = vrot.lane.b32.xlu0 %v921_v25, %s4786_s28  ;;  %v3610_v24 = vld [vmem:[#allocation2 + $0x58] sm:$0xff]  ;;  %v1047_v30 = vcombine.high %v1041_v19, %v1041_v19 }
  0xeb   : > { %v510_v36 = vpop.permute.xlu1 %509  ;;  %v508_v37 = vpop.permute.xlu0 %507  ;;  %v1052_v42 = vrot.slane %v1047_v30, 1 }
  0xec   : > { %v515_v38 = vsel %vm511_vm7, %v506_v28, %v508_v37  ;;  %v516_v39 = vsel %vm511_vm7, %v508_v37, %v510_v36  ;;  %v1050_v28 = vrot.slane %v1046_v18, 1  ;;  %vm1195_vm7 = vcmask 343040  }
  0xed   : > { %525 = vst [vmem:[#allocation2 + $0x90] sm:$0x7] %v515_v38  ;;  %526 = vst [vmem:[#allocation2 + $0x98] sm:$0x7] %v516_v39  ;;  %933 = vrot.lane.b32.xlu1 %v924_v32, %s4786_s28  ;;  %931 = vrot.lane.b32.xlu0 %v923_v33, %s4786_s28  ;;  %v1042_v32 = vld [vmem:[%s4921_s27 + $0x10] sm:$0x77] }
  0xee   : > { %v3612_v38 = vld [vmem:[#allocation2 + $0x68] sm:$0xff] }
  0xef   : > { %v545_v44 = vpop.permute.xlu1 %544  ;;  %v543_v45 = vpop.permute.xlu0 %542 }
  0xf0   : > { %v555_v46 = vsel %vm554_vm8, %v543_v45, %v545_v44 }
  0xf1   : > { %565 = vst [vmem:[#allocation2 + $0x78] sm:$0x38] %v555_v46  ;;  %937 = vrot.lane.b32.xlu1 %v926_v40, %s4786_s28  ;;  %935 = vrot.lane.b32.xlu0 %v925_v41, %s4786_s28  ;;  %v3611_v41 = vld [vmem:[#allocation2 + $0x60] sm:$0xff] }
  0xf2   : > { %v1088_v46 = vld [vmem:[%s4921_s27] sm:$0x77] }
  0xf3   : > { %v549_v51 = vpop.permute.xlu1 %548  ;;  %v547_v52 = vpop.permute.xlu0 %546 }
  0xf4   : > { %v556_v53 = vsel %vm554_vm8, %v545_v44, %v547_v52  ;;  %v557_v54 = vsel %vm554_vm8, %v547_v52, %v549_v51  ;;  %v1048_v44 = vcombine.high %v1042_v32, %v1042_v32  ;;  %v1053_v52 = vrot.slane %v1042_v32, 1 }
  0xf5   : > { %566 = vst [vmem:[#allocation2 + $0x80] sm:$0x38] %v556_v53  ;;  %567 = vst [vmem:[#allocation2 + $0x88] sm:$0x38] %v557_v54  ;;  %977 = vrot.lane.b32.xlu1 %v970_v47, %s4787_s29  ;;  %975 = vrot.lane.b32.xlu0 %v969_v48, %s4787_s29  ;;  %v1094_v53 = vcombine.high %v1088_v46, %v1088_v46  ;;  %v1089_v54 = vld [vmem:[%s4921_s27 + $0x8] sm:$0x77] }
  0xf7   : > { %v553_v58 = vpop.permute.xlu1 %552  ;;  %v551_v59 = vpop.permute.xlu0 %550 }
  0xf8   : > { %v558_v60 = vsel %vm554_vm8, %v549_v51, %v551_v59  ;;  %v559_v61 = vsel %vm554_vm8, %v551_v59, %v553_v58  ;;  %v1054_v51 = vrot.slane %v1048_v44, 1  ;;  %v1098_v58 = vrot.slane %v1094_v53, 6  ;;  %v1212_v53 = vld [vmem:[%s4921_s27 + $0x8] sm:$0x77] }
  0xf9   : > { %568 = vst [vmem:[#allocation2 + $0x90] sm:$0x38] %v558_v60  ;;  %569 = vst [vmem:[#allocation2 + $0x98] sm:$0x38] %v559_v61  ;;  %981 = vrot.lane.b32.xlu1 %v972_v55, %s4787_s29  ;;  %979 = vrot.lane.b32.xlu0 %v971_v56, %s4787_s29  ;;  %v1097_v59 = vrot.slane %v1088_v46, 6  ;;  %v1095_v60 = vcombine.high %v1089_v54, %v1089_v54 }
  0xfa   : > { %v1090_v61 = vld [vmem:[%s4921_s27 + $0x10] sm:$0x77]  ;;  %v1211_v46 = vld [vmem:[%s4921_s27] sm:$0x77] }
  0xfb   : > { %v588_v1 = vpop.permute.xlu1 %587  ;;  %v586_v2 = vpop.permute.xlu0 %585 }
  0xfc   : > { %v598_v3 = vsel %vm597_vm9, %v586_v2, %v588_v1  ;;  %v1100_v2 = vrot.slane %v1095_v60, 6  ;;  %v1213_v60 = vld [vmem:[%s4921_s27 + $0x10] sm:$0x77] }
  0xfd   : > { %608 = vst [vmem:[#allocation2 + $0xa0] ss:$-36 sps:$4 sm:$0xc1] %v598_v3   ;;  %985 = vrot.lane.b32.xlu1 %v974_v62, %s4787_s29  ;;  %983 = vrot.lane.b32.xlu0 %v973_v63, %s4787_s29  ;;  %v1099_v3 = vrot.slane %v1089_v54, 6  ;;  %s4802_s29 = smov 1  }
  0xff   : > { %v592_v6 = vpop.permute.xlu1 %591  ;;  %v590_v7 = vpop.permute.xlu0 %589 }
 0x100   : > { %v599_v8 = vsel %vm597_vm9, %v588_v1, %v590_v7  ;;  %v600_v9 = vsel %vm597_vm9, %v590_v7, %v592_v6 }
 0x101   : > { %609 = vst [vmem:[#allocation2 + $0xa8] ss:$-36 sps:$4 sm:$0xc1] %v599_v8   ;;  %610 = vst [vmem:[#allocation2 + $0xb0] ss:$-36 sps:$4 sm:$0xc1] %v600_v9   ;;  %1014 = vrot.lane.b32.xlu1 %v1003_v0, %s4788_s30  ;;  %1012 = vrot.lane.b32.xlu0 %v1009_v4, %s4788_s30  ;;  %v1096_v4 = vcombine.high %v1090_v61, %v1090_v61 }
 0x103   : > { %v596_v13 = vpop.permute.xlu1 %595  ;;  %v594_v14 = vpop.permute.xlu0 %593 }
 0x104   : > { %v601_v15 = vsel %vm597_vm9, %v592_v6, %v594_v14  ;;  %v602_v16 = vsel %vm597_vm9, %v594_v14, %v596_v13  ;;  %v3614_v22 = vld [vmem:[#allocation2 + $0x78] sm:$0xff]  ;;  %v1132_v13 = vld [vmem:[%s4921_s27 + $0x8] sm:$0x77]  ;;  %vm1238_vm9 = vcmask 334848  }
 0x105   : > { %611 = vst [vmem:[#allocation2 + $0xb8] ss:$-36 sps:$4 sm:$0xc1] %v601_v15   ;;  %612 = vst [vmem:[#allocation2 + $0xc0] ss:$-36 sps:$4 sm:$0xc1] %v602_v16   ;;  %1018 = vrot.lane.b32.xlu1 %v1004_v5, %s4788_s30  ;;  %1016 = vrot.lane.b32.xlu0 %v1010_v10, %s4788_s30  ;;  %v4140_v31 = vpack.c.bf16 %v3614_v22, %v3609_v27  ;;  %v1138_v19 = vcombine.high %v1132_v13, %v1132_v13 }
 0x106   : > { %v1131_v5 = vld [vmem:[%s4921_s27] sm:$0x77]  ;;  %v1102_v10 = vrot.slane %v1096_v4, 6 }
 0x107   : > { %v636_v20 = vpop.permute.xlu1 %635  ;;  %v634_v21 = vpop.permute.xlu0 %633  ;;  %v1137_v12 = vcombine.high %v1131_v5, %v1131_v5  ;;  %v1140_v18 = vrot.slane %v1131_v5, 3  ;;  %v1254_v4 = vld [vmem:[%s4921_s27] sm:$0x77] }
 0x108   : > { %v646_v23 = vsel %vm645_vm10, %v634_v21, %v636_v20  ;;  %v3615_v25 = vld [vmem:[#allocation2 + $0x80] sm:$0xff]  ;;  %v3616_v35 = vld [vmem:[#allocation2 + $0x88] sm:$0xff] }
 0x109   : > { %656 = vst [vmem:[#allocation2 + $0xa0] sm:$0xe] %v646_v23  ;;  %1022 = vrot.lane.b32.xlu1 %v1005_v11, %s4788_s30  ;;  %1020 = vrot.lane.b32.xlu0 %v1011_v17, %s4788_s30  ;;  %v4138_v26 = vpack.c.bf16 %v3615_v25, %v3610_v24  ;;  %v4204_v45 = vpack.c.bf16 %v3616_v35, %v3611_v41  ;;  %v1101_v11 = vrot.slane %v1090_v61, 6  ;;  %v1141_v17 = vrot.slane %v1137_v12, 3  ;;  %v1255_v12 = vld [vmem:[%s4921_s27 + $0x8] sm:$0x77] }
 0x10a   : > { %v1143_v25 = vrot.slane %v1138_v19, 3  ;;  %s6191_s30 = smov 96  }
 0x10b   : > { %v640_v33 = vpop.permute.xlu1 %639  ;;  %v638_v34 = vpop.permute.xlu0 %637  ;;  %4139 = vmatprep.subr.bf16.mxu0 %v4138_v26  ;;  %v1142_v26 = vrot.slane %v1132_v13, 3 }
 0x10c   : > { %v647_v36 = vsel %vm645_vm10, %v636_v20, %v638_v34  ;;  %v648_v37 = vsel %vm645_vm10, %v638_v34, %v640_v33  ;;  %4141 = vmatpush1.bf16.msra.mxu0 %v4140_v31  ;;  %v3617_v39 = vld [vmem:[#allocation2 + $0x90] sm:$0xff]  ;;  %v1174_v34 = vld [vmem:[%s4921_s27] sm:$0x77] }
 0x10d   : > { %657 = vst [vmem:[#allocation2 + $0xa8] sm:$0xe] %v647_v36  ;;  %658 = vst [vmem:[#allocation2 + $0xb0] sm:$0xe] %v648_v37  ;;  %1057 = vrot.lane.b32.xlu1 %v1050_v28, %s4789_s3  ;;  %1055 = vrot.lane.b32.xlu0 %v1049_v29, %s4789_s3  ;;  %v4202_v40 = vpack.c.bf16 %v3617_v39, %v3612_v38  ;;  %v1133_v20 = vld [vmem:[%s4921_s27 + $0x10] sm:$0x77]  ;;  %v1180_v38 = vcombine.high %v1174_v34, %v1174_v34 }
 0x10e   : > { %v1139_v27 = vcombine.high %v1133_v20, %v1133_v20  ;;  %v1175_v39 = vld [vmem:[%s4921_s27 + $0x8] sm:$0x77] }
 0x10f   : > { %v644_v47 = vpop.permute.xlu1 %643  ;;  %v642_v48 = vpop.permute.xlu0 %641  ;;  %4203 = vmatprep.subr.bf16.mxu1 %v4202_v40  ;;  %v1181_v44 = vcombine.high %v1175_v39, %v1175_v39 }
 0x110   : > { %v649_v49 = vsel %vm645_vm10, %v640_v33, %v642_v48  ;;  %v650_v50 = vsel %vm645_vm10, %v642_v48, %v644_v47  ;;  %4205 = vmatpush1.bf16.msra.mxu1 %v4204_v45  ;;  %v1145_v32 = vrot.slane %v1139_v27, 3  ;;  %v1144_v33 = vrot.slane %v1133_v20, 3  ;;  %v1176_v45 = vld [vmem:[%s4921_s27 + $0x10] sm:$0x77] }
 0x111   : > { %659 = vst [vmem:[#allocation2 + $0xb8] sm:$0xe] %v649_v49  ;;  %660 = vst [vmem:[#allocation2 + $0xc0] sm:$0xe] %v650_v50  ;;  %1061 = vrot.lane.b32.xlu1 %v1052_v42, %s4789_s3  ;;  %1059 = vrot.lane.b32.xlu0 %v1051_v43, %s4789_s3  ;;  %vm1281_vm10 = vcmask 326656  }
 0x113   : > { %v673_v55 = vpop.permute.xlu1 %672  ;;  %v671_v56 = vpop.permute.xlu0 %670 }
 0x114   : > { %v683_v57 = vsel %vm682_vm11, %v671_v56, %v673_v55 }
 0x115   : > { %693 = vst [vmem:[#allocation2 + $0xa0] sm:$0x70] %v683_v57  ;;  %1065 = vrot.lane.b32.xlu1 %v1054_v51, %s4789_s3  ;;  %1063 = vrot.lane.b32.xlu0 %v1053_v52, %s4789_s3  ;;  %v1182_v51 = vcombine.high %v1176_v45, %v1176_v45  ;;  %v1217_v52 = vcombine.high %v1211_v46, %v1211_v46  ;;  %s4804_s3 = smov 95  }
 0x117   : > { %v677_v62 = vpop.permute.xlu1 %676  ;;  %v675_v63 = vpop.permute.xlu0 %674  ;;  %v1221_v57 = vrot.slane %v1217_v52, 5 }
 0x118   : > { %v684_v0 = vsel %vm682_vm11, %v673_v55, %v675_v63  ;;  %v685_v1 = vsel %vm682_vm11, %v675_v63, %v677_v62 }
 0x119   : > { %694 = vst [vmem:[#allocation2 + $0xa8] sm:$0x70] %v684_v0  ;;  %695 = vst [vmem:[#allocation2 + $0xb0] sm:$0x70] %v685_v1  ;;  %1105 = vrot.lane.b32.xlu1 %v1098_v58, %s4790_s4  ;;  %1103 = vrot.lane.b32.xlu0 %v1097_v59, %s4790_s4  ;;  %v1220_v58 = vrot.slane %v1211_v46, 5  ;;  %v1218_v59 = vcombine.high %v1212_v53, %v1212_v53 }
 0x11b   : > { %v681_v6 = vpop.permute.xlu1 %680  ;;  %v679_v7 = vpop.permute.xlu0 %678  ;;  %v1223_v1 = vrot.slane %v1218_v59, 5 }
 0x11c   : > { %v686_v8 = vsel %vm682_vm11, %v677_v62, %v679_v7  ;;  %v687_v9 = vsel %vm682_vm11, %v679_v7, %v681_v6  ;;  %vm6200_vm11 = vcmask 64512  }
 0x11d   : > { %696 = vst [vmem:[#allocation2 + $0xb8] sm:$0x70] %v686_v8  ;;  %697 = vst [vmem:[#allocation2 + $0xc0] sm:$0x70] %v687_v9  ;;  %1109 = vrot.lane.b32.xlu1 %v1100_v2, %s4790_s4  ;;  %1107 = vrot.lane.b32.xlu0 %v1099_v3, %s4790_s4  ;;  %v1222_v2 = vrot.slane %v1212_v53, 5  ;;  %v1219_v3 = vcombine.high %v1213_v60, %v1213_v60 }
 0x11f   : > { %v716_v14 = vpop.permute.xlu1 %715  ;;  %v714_v15 = vpop.permute.xlu0 %713  ;;  %v1225_v9 = vrot.slane %v1219_v3, 5 }
 0x120   : > { %v726_v16 = vsel %vm725_vm12, %v714_v15, %v716_v14 }
 0x121   : > { %736 = vst [vmem:[#allocation2 + $0xc8] ss:$-36 sps:$4 sm:$0x83] %v726_v16   ;;  %1113 = vrot.lane.b32.xlu1 %v1102_v10, %s4790_s4  ;;  %1111 = vrot.lane.b32.xlu0 %v1101_v11, %s4790_s4  ;;  %v1224_v10 = vrot.slane %v1213_v60, 5  ;;  %v1260_v11 = vcombine.high %v1254_v4, %v1254_v4  ;;  %s4805_s4 = smov 94  }
 0x123   : > { %v720_v21 = vpop.permute.xlu1 %719  ;;  %v718_v22 = vpop.permute.xlu0 %717 }
 0x124   : > { %v727_v23 = vsel %vm725_vm12, %v716_v14, %v718_v22  ;;  %v728_v24 = vsel %vm725_vm12, %v718_v22, %v720_v21  ;;  %v1263_v22 = vrot.slane %v1254_v4, 2  ;;  %v1345_v4 = vld [vmem:[%s4921_s27] sm:$0x77] }
 0x125   : > { %737 = vst [vmem:[#allocation2 + $0xd0] ss:$-36 sps:$4 sm:$0x83] %v727_v23   ;;  %738 = vst [vmem:[#allocation2 + $0xd8] ss:$-36 sps:$4 sm:$0x83] %v728_v24   ;;  %1148 = vrot.lane.b32.xlu1 %v1141_v17, %s4791_s5  ;;  %1146 = vrot.lane.b32.xlu0 %v1140_v18, %s4791_s5  ;;  %v1261_v23 = vcombine.high %v1255_v12, %v1255_v12 }
 0x127   : > { %v724_v28 = vpop.permute.xlu1 %723  ;;  %v722_v29 = vpop.permute.xlu0 %721 }
 0x128   : > { %v729_v30 = vsel %vm725_vm12, %v720_v21, %v722_v29  ;;  %v730_v31 = vsel %vm725_vm12, %v722_v29, %v724_v28  ;;  %v3619_v20 = vld [vmem:[#allocation2 + $0xa0] sm:$0xff]  ;;  %v1264_v21 = vrot.slane %v1260_v11, 2  ;;  %vm1366_vm12 = vcmask 56320  }
 0x129   : > { %739 = vst [vmem:[#allocation2 + $0xe0] ss:$-36 sps:$4 sm:$0x83] %v729_v30   ;;  %740 = vst [vmem:[#allocation2 + $0xe8] ss:$-36 sps:$4 sm:$0x83] %v730_v31   ;;  %1152 = vrot.lane.b32.xlu1 %v1143_v25, %s4791_s5  ;;  %1150 = vrot.lane.b32.xlu0 %v1142_v26, %s4791_s5 }
 0x12a   : > { %v1256_v25 = vld [vmem:[%s4921_s27 + $0x10] sm:$0x77] }
 0x12b   : > { %v764_v35 = vpop.permute.xlu1 %763  ;;  %v762_v36 = vpop.permute.xlu0 %761 }
 0x12c   : > { %v774_v37 = vsel %vm773_vm13, %v762_v36, %v764_v35  ;;  %v3620_v17 = vld [vmem:[#allocation2 + $0xa8] sm:$0xff]  ;;  %v1265_v36 = vrot.slane %v1255_v12, 2 }
 0x12d   : > { %784 = vst [vmem:[#allocation2 + $0xc8] sm:$0x1c] %v774_v37  ;;  %1156 = vrot.lane.b32.xlu1 %v1145_v32, %s4791_s5  ;;  %1154 = vrot.lane.b32.xlu0 %v1144_v33, %s4791_s5  ;;  %v1262_v37 = vcombine.high %v1256_v25, %v1256_v25  ;;  %s4806_s5 = smov 93  }
 0x12f   : > { %v768_v40 = vpop.permute.xlu1 %767  ;;  %v766_v41 = vpop.permute.xlu0 %765 }
 0x130   : > { %v775_v42 = vsel %vm773_vm13, %v764_v35, %v766_v41  ;;  %v776_v43 = vsel %vm773_vm13, %v766_v41, %v768_v40  ;;  %v3622_v31 = vld [vmem:[#allocation2 + $0xb8] sm:$0xff]  ;;  %v1266_v35 = vrot.slane %v1261_v23, 2  ;;  %v1383_v23 = vld [vmem:[%s4921_s27 + $0x8] sm:$0x77] }
 0x131   : > { %785 = vst [vmem:[#allocation2 + $0xd0] sm:$0x1c] %v775_v42  ;;  %786 = vst [vmem:[#allocation2 + $0xd8] sm:$0x1c] %v776_v43  ;;  %1185 = vrot.lane.b32.xlu1 %v1180_v38, %s4792_s6  ;;  %1183 = vrot.lane.b32.xlu0 %v1174_v34, %s4792_s6  ;;  %v3621_v34 = vld [vmem:[#allocation2 + $0xb0] sm:$0xff] }
 0x133   : > { %v772_v47 = vpop.permute.xlu1 %771  ;;  %v770_v48 = vpop.permute.xlu0 %769 }
 0x134   : > { %v777_v49 = vsel %vm773_vm13, %v768_v40, %v770_v48  ;;  %v778_v50 = vsel %vm773_vm13, %v770_v48, %v772_v47  ;;  %v1303_v47 = vld [vmem:[%s4921_s27 + $0x8] sm:$0x77]  ;;  %vm1409_vm13 = vcmask 48128  }
 0x135   : > { %787 = vst [vmem:[#allocation2 + $0xe0] sm:$0x1c] %v777_v49  ;;  %788 = vst [vmem:[#allocation2 + $0xe8] sm:$0x1c] %v778_v50  ;;  %1189 = vrot.lane.b32.xlu1 %v1181_v44, %s4792_s6  ;;  %1187 = vrot.lane.b32.xlu0 %v1175_v39, %s4792_s6  ;;  %v1302_v39 = vld [vmem:[%s4921_s27] sm:$0x77]  ;;  %v1309_v53 = vcombine.high %v1303_v47, %v1303_v47 }
 0x136   : > { %v1268_v44 = vrot.slane %v1262_v37, 2  ;;  %v1308_v46 = vcombine.high %v1302_v39, %v1302_v39  ;;  %v1311_v52 = vrot.slane %v1302_v39, 7  ;;  %v1313_v60 = vrot.slane %v1303_v47, 7 }
 0x137   : > { %v807_v54 = vpop.permute.xlu1 %806  ;;  %v805_v55 = vpop.permute.xlu0 %804  ;;  %v1314_v59 = vrot.slane %v1309_v53, 7  ;;  %v1432_v53 = vld [vmem:[%s4921_s27 + $0x10] sm:$0x77] }
 0x138   : > { %v817_v56 = vsel %vm816_vm14, %v805_v55, %v807_v54 }
 0x139   : > { %827 = vst [vmem:[#allocation2 + $0xc8] sm:$0xe0] %v817_v56  ;;  %1193 = vrot.lane.b32.xlu1 %v1182_v51, %s4792_s6  ;;  %1191 = vrot.lane.b32.xlu0 %v1176_v45, %s4792_s6  ;;  %v1267_v45 = vrot.slane %v1256_v25, 2  ;;  %v1312_v51 = vrot.slane %v1308_v46, 7  ;;  %v1431_v46 = vld [vmem:[%s4921_s27 + $0x8] sm:$0x77] }
 0x13a   : > { %s4807_s6 = smov 92  }
 0x13b   : > { %v811_v61 = vpop.permute.xlu1 %810  ;;  %v809_v62 = vpop.permute.xlu0 %808 }
 0x13c   : > { %v818_v63 = vsel %vm816_vm14, %v807_v54, %v809_v62  ;;  %v819_v0 = vsel %vm816_vm14, %v809_v62, %v811_v61  ;;  %v1304_v54 = vld [vmem:[%s4921_s27 + $0x10] sm:$0x77] }
 0x13d   : > { %828 = vst [vmem:[#allocation2 + $0xd0] sm:$0xe0] %v818_v63  ;;  %829 = vst [vmem:[#allocation2 + $0xd8] sm:$0xe0] %v819_v0  ;;  %1228 = vrot.lane.b32.xlu1 %v1221_v57, %s4793_s7  ;;  %1226 = vrot.lane.b32.xlu0 %v1220_v58, %s4793_s7  ;;  %v1315_v3 = vrot.slane %v1304_v54, 7 }
 0x13f   : > { %v815_v5 = vpop.permute.xlu1 %814  ;;  %v813_v6 = vpop.permute.xlu0 %812 }
 0x140   : > { %v820_v7 = vsel %vm816_vm14, %v811_v61, %v813_v6  ;;  %v821_v8 = vsel %vm816_vm14, %v813_v6, %v815_v5  ;;  %v3624_v15 = vld [vmem:[#allocation2 + $0xc8] sm:$0xff]  ;;  %v1310_v61 = vcombine.high %v1304_v54, %v1304_v54  ;;  %vm1457_vm14 = vcmask 39936  }
 0x141   : > { %830 = vst [vmem:[#allocation2 + $0xe0] sm:$0xe0] %v820_v7  ;;  %831 = vst [vmem:[#allocation2 + $0xe8] sm:$0xe0] %v821_v8  ;;  %1232 = vrot.lane.b32.xlu1 %v1223_v1, %s4793_s7  ;;  %1230 = vrot.lane.b32.xlu0 %v1222_v2, %s4793_s7  ;;  %v4144_v24 = vpack.c.bf16 %v3624_v15, %v3619_v20  ;;  %v1351_v8 = vcombine.low %v1345_v4, %v1345_v4  ;;  %v1347_v15 = vld [vmem:[%s4921_s27 + $0x10] sm:$0x77] }
 0x142   : > { %v1316_v2 = vrot.slane %v1310_v61, 7  ;;  %v1473_v61 = vld [vmem:[%s4921_s27] sm:$0x77] }
 0x143   : > { %v844_v13 = vpop.permute.xlu1 %843  ;;  %v842_v14 = vpop.permute.xlu0 %841 }
 0x144   : > { %v854_v16 = vsel %vm853_vm15, %v842_v14, %v844_v13  ;;  %v3625_v18 = vld [vmem:[#allocation2 + $0xd0] sm:$0xff]  ;;  %v3626_v28 = vld [vmem:[#allocation2 + $0xd8] sm:$0xff] }
 0x145   : > { %864 = vst [vmem:[#allocation2 + $0xf0] sm:$0x7] %v854_v16  ;;  %1236 = vrot.lane.b32.xlu1 %v1225_v9, %s4793_s7  ;;  %1234 = vrot.lane.b32.xlu0 %v1224_v10, %s4793_s7  ;;  %v4142_v19 = vpack.c.bf16 %v3625_v18, %v3620_v17  ;;  %v4208_v38 = vpack.c.bf16 %v3626_v28, %v3621_v34  ;;  %v1346_v9 = vld [vmem:[%s4921_s27 + $0x8] sm:$0x77]  ;;  %v1382_v16 = vld [vmem:[%s4921_s27] sm:$0x77] }
 0x146   : > { %v1352_v14 = vcombine.low %v1346_v9, %v1346_v9  ;;  %v1391_v28 = vrot.slane %v1382_v16, 1  ;;  %s4808_s7 = smov 91  }
 0x147   : > { %v848_v26 = vpop.permute.xlu1 %847  ;;  %v846_v27 = vpop.permute.xlu0 %845  ;;  %4143 = vmatprep.subr.bf16.mxu0 %v4142_v19 }
 0x148   : > { %v855_v29 = vsel %vm853_vm15, %v844_v13, %v846_v27  ;;  %v856_v30 = vsel %vm853_vm15, %v846_v27, %v848_v26  ;;  %4145 = vmatpush1.bf16.msra.mxu0 %v4144_v24  ;;  %v3627_v32 = vld [vmem:[#allocation2 + $0xe0] sm:$0xff] }
 0x149   : > { %865 = vst [vmem:[#allocation2 + $0xf8] sm:$0x7] %v855_v29  ;;  %866 = vst [vmem:[#allocation2 + $0x100] sm:$0x7] %v856_v30  ;;  %1271 = vrot.lane.b32.xlu1 %v1264_v21, %s4794_s15  ;;  %1269 = vrot.lane.b32.xlu0 %v1263_v22, %s4794_s15  ;;  %v4206_v33 = vpack.c.bf16 %v3627_v32, %v3622_v31  ;;  %v1353_v21 = vcombine.low %v1347_v15, %v1347_v15  ;;  %v1384_v30 = vld [vmem:[%s4921_s27 + $0x10] sm:$0x77] }
 0x14a   : > { %v1388_v22 = vcombine.high %v1382_v16, %v1382_v16  ;;  %v1389_v29 = vcombine.high %v1383_v23, %v1383_v23  ;;  %v1390_v37 = vcombine.high %v1384_v30, %v1384_v30 }
 0x14b   : > { %v852_v40 = vpop.permute.xlu1 %851  ;;  %v850_v41 = vpop.permute.xlu0 %849  ;;  %4207 = vmatprep.subr.bf16.mxu1 %v4206_v33 }
 0x14c   : > { %v857_v42 = vsel %vm853_vm15, %v848_v26, %v850_v41  ;;  %v858_v43 = vsel %vm853_vm15, %v850_v41, %v852_v40  ;;  %4209 = vmatpush1.bf16.msra.mxu1 %v4208_v38  ;;  %v1392_v27 = vrot.slane %v1388_v22, 1  ;;  %v1430_v38 = vld [vmem:[%s4921_s27] sm:$0x77]  ;;  %vm1500_vm15 = vcmask 31744  }
 0x14d   : > { %867 = vst [vmem:[#allocation2 + $0x108] sm:$0x7] %v857_v42  ;;  %868 = vst [vmem:[#allocation2 + $0x110] sm:$0x7] %v858_v43  ;;  %1275 = vrot.lane.b32.xlu1 %v1266_v35, %s4794_s15  ;;  %1273 = vrot.lane.b32.xlu0 %v1265_v36, %s4794_s15  ;;  %v1394_v35 = vrot.slane %v1389_v29, 1  ;;  %v1393_v36 = vrot.slane %v1383_v23, 1 }
 0x14e   : > { %v1396_v43 = vrot.slane %v1390_v37, 1  ;;  %v1517_v37 = vld [vmem:[%s4921_s27 + $0x8] sm:$0x77] }
 0x14f   : > { %v887_v48 = vpop.permute.xlu1 %886  ;;  %v885_v49 = vpop.permute.xlu0 %884 }
 0x150   : > { %v897_v50 = vsel %vm896_vm0, %v885_v49, %v887_v48 }
 0x151   : > { %907 = vst [vmem:[#allocation2 + $0xf0] sm:$0x38] %v897_v50  ;;  %1279 = vrot.lane.b32.xlu1 %v1268_v44, %s4794_s15  ;;  %1277 = vrot.lane.b32.xlu0 %v1267_v45, %s4794_s15  ;;  %v1395_v44 = vrot.slane %v1384_v30, 1  ;;  %v1436_v45 = vcombine.high %v1430_v38, %v1430_v38  ;;  %s4809_s15 = smov 90  }
 0x153   : > { %v891_v55 = vpop.permute.xlu1 %890  ;;  %v889_v56 = vpop.permute.xlu0 %888  ;;  %v1440_v50 = vrot.slane %v1436_v45, 6 }
 0x154   : > { %v898_v57 = vsel %vm896_vm0, %v887_v48, %v889_v56  ;;  %v899_v58 = vsel %vm896_vm0, %v889_v56, %v891_v55 }
 0x155   : > { %908 = vst [vmem:[#allocation2 + $0xf8] sm:$0x38] %v898_v57  ;;  %909 = vst [vmem:[#allocation2 + $0x100] sm:$0x38] %v899_v58  ;;  %1319 = vrot.lane.b32.xlu1 %v1312_v51, %s6171_s16  ;;  %1317 = vrot.lane.b32.xlu0 %v1311_v52, %s6171_s16  ;;  %v1439_v51 = vrot.slane %v1430_v38, 6  ;;  %v1437_v52 = vcombine.high %v1431_v46, %v1431_v46 }
 0x157   : > { %v895_v62 = vpop.permute.xlu1 %894  ;;  %v893_v63 = vpop.permute.xlu0 %892  ;;  %v1442_v58 = vrot.slane %v1437_v52, 6 }
 0x158   : > { %v900_v0 = vsel %vm896_vm0, %v891_v55, %v893_v63  ;;  %v901_v1 = vsel %vm896_vm0, %v893_v63, %v895_v62  ;;  %vm1537_vm0 = vcmask 23552  }
 0x159   : > { %910 = vst [vmem:[#allocation2 + $0x108] sm:$0x38] %v900_v0  ;;  %911 = vst [vmem:[#allocation2 + $0x110] sm:$0x38] %v901_v1  ;;  %1323 = vrot.lane.b32.xlu1 %v1314_v59, %s6171_s16  ;;  %1321 = vrot.lane.b32.xlu0 %v1313_v60, %s6171_s16  ;;  %v1441_v59 = vrot.slane %v1431_v46, 6  ;;  %v1438_v60 = vcombine.high %v1432_v53, %v1432_v53 }
 0x15b   : > { %v930_v5 = vpop.permute.xlu1 %929  ;;  %v928_v6 = vpop.permute.xlu0 %927 }
 0x15c   : > { %v940_v7 = vsel %vm939_vm1, %v928_v6, %v930_v5 }
 0x15d   : > { %950 = vst [vmem:[#allocation2 + $0x118] ss:$-36 sps:$4 sm:$0xc1] %v940_v7   ;;  %1327 = vrot.lane.b32.xlu1 %v1316_v2, %s6171_s16  ;;  %1325 = vrot.lane.b32.xlu0 %v1315_v3, %s6171_s16  ;;  %v1444_v2 = vrot.slane %v1438_v60, 6  ;;  %v1443_v3 = vrot.slane %v1432_v53, 6 }
 0x15f   : > { %v934_v10 = vpop.permute.xlu1 %933  ;;  %v932_v11 = vpop.permute.xlu0 %931 }
 0x160   : > { %v941_v12 = vsel %vm939_vm1, %v930_v5, %v932_v11  ;;  %v942_v13 = vsel %vm939_vm1, %v932_v11, %v934_v10  ;;  %v1474_v5 = vld [vmem:[%s4921_s27 + $0x8] sm:$0x77] }
 0x161   : > { %951 = vst [vmem:[#allocation2 + $0x120] ss:$-36 sps:$4 sm:$0xc1] %v941_v12   ;;  %952 = vst [vmem:[#allocation2 + $0x128] ss:$-36 sps:$4 sm:$0xc1] %v942_v13   ;;  %1356 = vrot.lane.b32.xlu1 %v1345_v4, %s4796_s18  ;;  %1354 = vrot.lane.b32.xlu0 %v1351_v8, %s4796_s18  ;;  %v1479_v4 = vcombine.high %v1473_v61, %v1473_v61  ;;  %v1480_v11 = vcombine.high %v1474_v5, %v1474_v5 }
 0x162   : > { %v1475_v12 = vld [vmem:[%s4921_s27 + $0x10] sm:$0x77] }
 0x163   : > { %v938_v17 = vpop.permute.xlu1 %937  ;;  %v936_v18 = vpop.permute.xlu0 %935 }
 0x164   : > { %v943_v19 = vsel %vm939_vm1, %v934_v10, %v936_v18  ;;  %v944_v20 = vsel %vm939_vm1, %v936_v18, %v938_v17  ;;  %v1482_v10 = vrot.slane %v1473_v61, 3  ;;  %v1485_v17 = vrot.slane %v1480_v11, 3 }
 0x165   : > { %953 = vst [vmem:[#allocation2 + $0x130] ss:$-36 sps:$4 sm:$0xc1] %v943_v19   ;;  %954 = vst [vmem:[#allocation2 + $0x138] ss:$-36 sps:$4 sm:$0xc1] %v944_v20   ;;  %1360 = vrot.lane.b32.xlu1 %v1346_v9, %s4796_s18  ;;  %1358 = vrot.lane.b32.xlu0 %v1352_v14, %s4796_s18  ;;  %v1481_v19 = vcombine.high %v1475_v12, %v1475_v12 }
 0x166   : > { %v1483_v9 = vrot.slane %v1479_v4, 3  ;;  %v1484_v18 = vrot.slane %v1474_v5, 3 }
 0x167   : > { %v978_v24 = vpop.permute.xlu1 %977  ;;  %v976_v25 = vpop.permute.xlu0 %975 }
 0x168   : > { %v988_v26 = vsel %vm987_vm2, %v976_v25, %v978_v24  ;;  %v1486_v25 = vrot.slane %v1475_v12, 3  ;;  %v3631_v46 = vld [vmem:[#allocation2 + $0x100] sm:$0xff] }
 0x169   : > { %998 = vst [vmem:[#allocation2 + $0x118] sm:$0xe] %v988_v26  ;;  %1364 = vrot.lane.b32.xlu1 %v1347_v15, %s4796_s18  ;;  %1362 = vrot.lane.b32.xlu0 %v1353_v21, %s4796_s18  ;;  %v1516_v26 = vld [vmem:[%s4921_s27] sm:$0x77]  ;;  %s4810_s18 = smov 89  }
 0x16b   : > { %v982_v31 = vpop.permute.xlu1 %981  ;;  %v980_v32 = vpop.permute.xlu0 %979 }
 0x16c   : > { %v989_v33 = vsel %vm987_vm2, %v978_v24, %v980_v32  ;;  %v990_v34 = vsel %vm987_vm2, %v980_v32, %v982_v31  ;;  %v1487_v24 = vrot.slane %v1481_v19, 3 }
 0x16d   : > { %999 = vst [vmem:[#allocation2 + $0x120] sm:$0xe] %v989_v33  ;;  %1000 = vst [vmem:[#allocation2 + $0x128] sm:$0xe] %v990_v34  ;;  %1399 = vrot.lane.b32.xlu1 %v1392_v27, %s4797_s20  ;;  %1397 = vrot.lane.b32.xlu0 %v1391_v28, %s4797_s20  ;;  %v3629_v34 = vld [vmem:[#allocation2 + $0xf0] sm:$0xff] }
 0x16f   : > { %v986_v39 = vpop.permute.xlu1 %985  ;;  %v984_v40 = vpop.permute.xlu0 %983 }
 0x170   : > { %v991_v41 = vsel %vm987_vm2, %v982_v31, %v984_v40  ;;  %v992_v42 = vsel %vm987_vm2, %v984_v40, %v986_v39  ;;  %v3630_v31 = vld [vmem:[#allocation2 + $0xf8] sm:$0xff]  ;;  %vm1580_vm2 = vcmask 15360  }
 0x171   : > { %1001 = vst [vmem:[#allocation2 + $0x130] sm:$0xe] %v991_v41  ;;  %1002 = vst [vmem:[#allocation2 + $0x138] sm:$0xe] %v992_v42  ;;  %1403 = vrot.lane.b32.xlu1 %v1394_v35, %s4797_s20  ;;  %1401 = vrot.lane.b32.xlu0 %v1393_v36, %s4797_s20  ;;  %v1522_v35 = vcombine.high %v1516_v26, %v1516_v26 }
 0x173   : > { %v1015_v47 = vpop.permute.xlu1 %1014  ;;  %v1013_v48 = vpop.permute.xlu0 %1012 }
 0x174   : > { %v1025_v49 = vsel %vm1024_vm3, %v1013_v48, %v1015_v47 }
 0x175   : > { %1035 = vst [vmem:[#allocation2 + $0x118] sm:$0x70] %v1025_v49  ;;  %1407 = vrot.lane.b32.xlu1 %v1396_v43, %s4797_s20  ;;  %1405 = vrot.lane.b32.xlu0 %v1395_v44, %s4797_s20  ;;  %v3632_v43 = vld [vmem:[#allocation2 + $0x108] sm:$0xff]  ;;  %v1518_v49 = vld [vmem:[%s4921_s27 + $0x10] sm:$0x77]  ;;  %s4811_s20 = smov 56  }
 0x177   : > { %v1019_v54 = vpop.permute.xlu1 %1018  ;;  %v1017_v55 = vpop.permute.xlu0 %1016 }
 0x178   : > { %v1026_v56 = vsel %vm1024_vm3, %v1015_v47, %v1017_v55  ;;  %v1027_v57 = vsel %vm1024_vm3, %v1017_v55, %v1019_v54  ;;  %v1523_v47 = vcombine.high %v1517_v37, %v1517_v37  ;;  %v1524_v55 = vcombine.high %v1518_v49, %v1518_v49 }
 0x179   : > { %1036 = vst [vmem:[#allocation2 + $0x120] sm:$0x70] %v1026_v56  ;;  %1037 = vst [vmem:[#allocation2 + $0x128] sm:$0x70] %v1027_v57  ;;  %1447 = vrot.lane.b32.xlu1 %v1440_v50, %s4798_s23  ;;  %1445 = vrot.lane.b32.xlu0 %v1439_v51, %s4798_s23  ;;  %v1553_v50 = vld [vmem:[%s4921_s27] sm:$0x77] }
 0x17a   : > { %v1559_v56 = vcombine.high %v1553_v50, %v1553_v50  ;;  %v1554_v57 = vld [vmem:[%s4921_s27 + $0x8] sm:$0x77] }
 0x17b   : > { %v1023_v62 = vpop.permute.xlu1 %1022  ;;  %v1021_v63 = vpop.permute.xlu0 %1020 }
 0x17c   : > { %v1028_v0 = vsel %vm1024_vm3, %v1019_v54, %v1021_v63  ;;  %v1029_v1 = vsel %vm1024_vm3, %v1021_v63, %v1023_v62  ;;  %v1563_v61 = vrot.slane %v1559_v56, 5  ;;  %v1562_v62 = vrot.slane %v1553_v50, 5 }
 0x17d   : > { %1038 = vst [vmem:[#allocation2 + $0x130] sm:$0x70] %v1028_v0  ;;  %1039 = vst [vmem:[#allocation2 + $0x138] sm:$0x70] %v1029_v1  ;;  %1451 = vrot.lane.b32.xlu1 %v1442_v58, %s4798_s23  ;;  %1449 = vrot.lane.b32.xlu0 %v1441_v59, %s4798_s23  ;;  %v1560_v63 = vcombine.high %v1554_v57, %v1554_v57  ;;  %v1555_v0 = vld [vmem:[%s4921_s27 + $0x10] sm:$0x77] }
 0x17e   : > { %vm1623_vm3 = vcmask 7168  }
 0x17f   : > { %v1058_v6 = vpop.permute.xlu1 %1057  ;;  %v1056_v7 = vpop.permute.xlu0 %1055  ;;  %v1565_v5 = vrot.slane %v1560_v63, 5  ;;  %v1705_v63 = vld [vmem:[%s4921_s27 + $0xc] sm:$0x77] }
 0x180   : > { %v1068_v8 = vsel %vm1067_vm4, %v1056_v7, %v1058_v6  ;;  %v1561_v7 = vcombine.high %v1555_v0, %v1555_v0 }
 0x181   : > { %1078 = vst [vmem:[#allocation2 + $0x140] ss:$-36 sps:$4 sm:$0x83] %v1068_v8   ;;  %1455 = vrot.lane.b32.xlu1 %v1444_v2, %s4798_s23  ;;  %1453 = vrot.lane.b32.xlu0 %v1443_v3, %s4798_s23  ;;  %v1596_v8 = vld [vmem:[%s4921_s27] sm:$0x77]  ;;  %s4813_s23 = smov 54  }
 0x183   : > { %v1062_v13 = vpop.permute.xlu1 %1061  ;;  %v1060_v14 = vpop.permute.xlu0 %1059 }
 0x184   : > { %v1069_v15 = vsel %vm1067_vm4, %v1058_v6, %v1060_v14  ;;  %v1070_v16 = vsel %vm1067_vm4, %v1060_v14, %v1062_v13  ;;  %v1564_v6 = vrot.slane %v1554_v57, 5  ;;  %v1566_v14 = vrot.slane %v1555_v0, 5 }
 0x185   : > { %1079 = vst [vmem:[#allocation2 + $0x148] ss:$-36 sps:$4 sm:$0x83] %v1069_v15   ;;  %1080 = vst [vmem:[#allocation2 + $0x150] ss:$-36 sps:$4 sm:$0x83] %v1070_v16   ;;  %1490 = vrot.lane.b32.xlu1 %v1483_v9, %s4799_s24  ;;  %1488 = vrot.lane.b32.xlu0 %v1482_v10, %s4799_s24  ;;  %v1602_v15 = vcombine.high %v1596_v8, %v1596_v8 }
 0x186   : > { %v1597_v16 = vld [vmem:[%s4921_s27 + $0x8] sm:$0x77] }
 0x187   : > { %v1066_v20 = vpop.permute.xlu1 %1065  ;;  %v1064_v21 = vpop.permute.xlu0 %1063 }
 0x188   : > { %v1071_v22 = vsel %vm1067_vm4, %v1062_v13, %v1064_v21  ;;  %v1072_v23 = vsel %vm1067_vm4, %v1064_v21, %v1066_v20  ;;  %v3634_v29 = vld [vmem:[#allocation2 + $0x118] sm:$0xff]  ;;  %v1567_v13 = vrot.slane %v1561_v7, 5  ;;  %v1606_v20 = vrot.slane %v1602_v15, 2 }
 0x189   : > { %1081 = vst [vmem:[#allocation2 + $0x158] ss:$-36 sps:$4 sm:$0x83] %v1071_v22   ;;  %1082 = vst [vmem:[#allocation2 + $0x160] ss:$-36 sps:$4 sm:$0x83] %v1072_v23   ;;  %1494 = vrot.lane.b32.xlu1 %v1485_v17, %s4799_s24  ;;  %1492 = vrot.lane.b32.xlu0 %v1484_v18, %s4799_s24  ;;  %v4148_v36 = vpack.c.bf16 %v3634_v29, %v3629_v34  ;;  %v1603_v22 = vcombine.high %v1597_v16, %v1597_v16 }
 0x18a   : > { %v1605_v21 = vrot.slane %v1596_v8, 2  ;;  %v1598_v23 = vld [vmem:[%s4921_s27 + $0x10] sm:$0x77]  ;;  %v1607_v29 = vrot.slane %v1597_v16, 2  ;;  %v1711_v8 = vcombine.high %v1705_v63, %v1705_v63  ;;  %v1715_v15 = vrot.slane %v1705_v63, 1 }
 0x18b   : > { %v1106_v27 = vpop.permute.xlu1 %1105  ;;  %v1104_v28 = vpop.permute.xlu0 %1103  ;;  %vm6211_vm4 = vcmask 785408  }
 0x18c   : > { %v1116_v30 = vsel %vm1115_vm5, %v1104_v28, %v1106_v27  ;;  %v3635_v32 = vld [vmem:[#allocation2 + $0x120] sm:$0xff]  ;;  %v3636_v40 = vld [vmem:[#allocation2 + $0x128] sm:$0xff]  ;;  %v1608_v28 = vrot.slane %v1603_v22, 2 }
 0x18d   : > { %1126 = vst [vmem:[#allocation2 + $0x140] sm:$0x1c] %v1116_v30  ;;  %1498 = vrot.lane.b32.xlu1 %v1487_v24, %s4799_s24  ;;  %1496 = vrot.lane.b32.xlu0 %v1486_v25, %s4799_s24  ;;  %v4146_v33 = vpack.c.bf16 %v3635_v32, %v3630_v31  ;;  %v4212_v48 = vpack.c.bf16 %v3636_v40, %v3631_v46  ;;  %s4814_s24 = smov 53  }
 0x18e   : > { %v1604_v30 = vcombine.high %v1598_v23, %v1598_v23 }
 0x18f   : > { %v1110_v38 = vpop.permute.xlu1 %1109  ;;  %v1108_v39 = vpop.permute.xlu0 %1107  ;;  %4147 = vmatprep.subr.bf16.mxu0 %v4146_v33 }
 0x190   : > { %v1117_v41 = vsel %vm1115_vm5, %v1106_v27, %v1108_v39  ;;  %v1118_v42 = vsel %vm1115_vm5, %v1108_v39, %v1110_v38  ;;  %4149 = vmatpush1.bf16.msra.mxu0 %v4148_v36  ;;  %v3637_v44 = vld [vmem:[#allocation2 + $0x130] sm:$0xff]  ;;  %v1609_v36 = vrot.slane %v1598_v23, 2 }
 0x191   : > { %1127 = vst [vmem:[#allocation2 + $0x148] sm:$0x1c] %v1117_v41  ;;  %1128 = vst [vmem:[#allocation2 + $0x150] sm:$0x1c] %v1118_v42  ;;  %1527 = vrot.lane.b32.xlu1 %v1522_v35, %s4800_s25  ;;  %1525 = vrot.lane.b32.xlu0 %v1516_v26, %s4800_s25  ;;  %v4210_v45 = vpack.c.bf16 %v3637_v44, %v3632_v43  ;;  %v1610_v35 = vrot.slane %v1604_v30, 2 }
 0x192   : > { %v1668_v42 = vld [vmem:[%s4921_s27 + $0xc] sm:$0x77]  ;;  %v1644_v43 = vld [vmem:[%s4921_s27 + $0x4] sm:$0x77] }
 0x193   : > { %v1114_v51 = vpop.permute.xlu1 %1113  ;;  %v1112_v52 = vpop.permute.xlu0 %1111  ;;  %4211 = vmatprep.subr.bf16.mxu1 %v4210_v45  ;;  %v1652_v46 = vrot.slane %v1644_v43, 7  ;;  %v1650_v50 = vcombine.high %v1644_v43, %v1644_v43 }
 0x194   : > { %v1119_v53 = vsel %vm1115_vm5, %v1110_v38, %v1112_v52  ;;  %v1120_v54 = vsel %vm1115_vm5, %v1112_v52, %v1114_v51  ;;  %4213 = vmatpush1.bf16.msra.mxu1 %v4212_v48  ;;  %v1669_v51 = vld [vmem:[%s4921_s27 + $0x14] sm:$0x77]  ;;  %v1704_v52 = vld [vmem:[%s4921_s27 + $0x4] sm:$0x77]  ;;  %vm1731_vm5 = vcmask 777216  }
 0x195   : > { %1129 = vst [vmem:[#allocation2 + $0x158] sm:$0x1c] %v1119_v53  ;;  %1130 = vst [vmem:[#allocation2 + $0x160] sm:$0x1c] %v1120_v54  ;;  %1531 = vrot.lane.b32.xlu1 %v1523_v47, %s4800_s25  ;;  %1529 = vrot.lane.b32.xlu0 %v1517_v37, %s4800_s25  ;;  %v1667_v37 = vld [vmem:[%s4921_s27 + $0x4] sm:$0x77] }
 0x196   : > { %v1673_v41 = vcombine.low %v1667_v37, %v1667_v37  ;;  %1662 = vst [vmem:[#allocation2 + $0x208] sm:$0xe] %v1652_v46  ;;  %v1645_v53 = vld [vmem:[%s4921_s27 + $0xc] sm:$0x77]  ;;  %v1653_v56 = vrot.slane %v1650_v50, 7  ;;  %v1713_v7 = vrot.slane %v1704_v52, 1 }
 0x197   : > { %v1149_v58 = vpop.permute.xlu1 %1148  ;;  %v1147_v59 = vpop.permute.xlu0 %1146  ;;  %v1654_v57 = vrot.slane %v1645_v53, 7 }
 0x198   : > { %v1159_v60 = vsel %vm1158_vm6, %v1147_v59, %v1149_v58  ;;  %1663 = vst [vmem:[#allocation2 + $0x210] sm:$0xe] %v1653_v56 }
 0x199   : > { %1169 = vst [vmem:[#allocation2 + $0x140] sm:$0xe0] %v1159_v60  ;;  %1535 = vrot.lane.b32.xlu1 %v1524_v55, %s4800_s25  ;;  %1533 = vrot.lane.b32.xlu0 %v1518_v49, %s4800_s25  ;;  %v1674_v49 = vcombine.low %v1668_v42, %v1668_v42  ;;  %v1675_v60 = vcombine.low %v1669_v51, %v1669_v51  ;;  %1664 = vst [vmem:[#allocation2 + $0x218] sm:$0xe] %v1654_v57  ;;  %s4815_s25 = smov 52  }
 0x19b   : > { %v1153_v1 = vpop.permute.xlu1 %1152  ;;  %v1151_v2 = vpop.permute.xlu0 %1150 }
 0x19c   : > { %v1160_v3 = vsel %vm1158_vm6, %v1149_v58, %v1151_v2  ;;  %v1161_v4 = vsel %vm1158_vm6, %v1151_v2, %v1153_v1 }
 0x19d   : > { %1170 = vst [vmem:[#allocation2 + $0x148] sm:$0xe0] %v1160_v3  ;;  %1171 = vst [vmem:[#allocation2 + $0x150] sm:$0xe0] %v1161_v4  ;;  %1570 = vrot.lane.b32.xlu1 %v1563_v61, %s4801_s26  ;;  %1568 = vrot.lane.b32.xlu0 %v1562_v62, %s4801_s26  ;;  %v1710_v61 = vcombine.high %v1704_v52, %v1704_v52  ;;  %v1651_v62 = vcombine.high %v1645_v53, %v1645_v53  ;;  %v1646_v3 = vld [vmem:[%s4921_s27 + $0x14] sm:$0x7] }
 0x19e   : > { %v1795_v52 = vld [vmem:[%s4921_s27 + $0x4] sm:$0x77] }
 0x19f   : > { %v1157_v9 = vpop.permute.xlu1 %1156  ;;  %v1155_v10 = vpop.permute.xlu0 %1154  ;;  %v1655_v2 = vrot.slane %v1651_v62, 7 }
 0x1a0   : > { %v1162_v11 = vsel %vm1158_vm6, %v1153_v1, %v1155_v10  ;;  %v1163_v12 = vsel %vm1158_vm6, %v1155_v10, %v1157_v9  ;;  %v1706_v9 = vld [vmem:[%s4921_s27 + $0x14] sm:$0x77]  ;;  %vm1779_vm6 = vcmask 769024  }
 0x1a1   : > { %1172 = vst [vmem:[#allocation2 + $0x158] sm:$0xe0] %v1162_v11  ;;  %1173 = vst [vmem:[#allocation2 + $0x160] sm:$0xe0] %v1163_v12  ;;  %1574 = vrot.lane.b32.xlu1 %v1565_v5, %s4801_s26  ;;  %1572 = vrot.lane.b32.xlu0 %v1564_v6, %s4801_s26  ;;  %v1656_v5 = vrot.slane %v1646_v3, 7  ;;  %v1714_v6 = vrot.slane %v1710_v61, 1  ;;  %v1712_v16 = vcombine.high %v1706_v9, %v1706_v9 }
 0x1a2   : > { %1665 = vst [vmem:[#allocation2 + $0x220] sm:$0xe] %v1655_v2  ;;  %v1717_v23 = vrot.slane %v1706_v9, 1  ;;  %v1797_v3 = vld [vmem:[%s4921_s27 + $0x14] sm:$0x77] }
 0x1a3   : > { %v1186_v17 = vpop.permute.xlu1 %1185  ;;  %v1184_v18 = vpop.permute.xlu0 %1183  ;;  %1666 = vst [vmem:[#allocation2 + $0x228] sm:$0xe] %v1656_v5  ;;  %v1718_v22 = vrot.slane %v1712_v16, 1  ;;  %v1808_v16 = vrot.slane %v1797_v3, 3 }
 0x1a4   : > { %v1196_v19 = vsel %vm1195_vm7, %v1184_v18, %v1186_v17  ;;  %v3640_v30 = vld [vmem:[#allocation2 + $0x148] sm:$0xff] }
 0x1a5   : > { %1206 = vst [vmem:[#allocation2 + $0x168] sm:$0x7] %v1196_v19  ;;  %1578 = vrot.lane.b32.xlu1 %v1567_v13, %s4801_s26  ;;  %1576 = vrot.lane.b32.xlu0 %v1566_v14, %s4801_s26  ;;  %v1716_v14 = vrot.slane %v1711_v8, 1  ;;  %s4816_s26 = smov 51  }
 0x1a7   : > { %v1190_v24 = vpop.permute.xlu1 %1189  ;;  %v1188_v25 = vpop.permute.xlu0 %1187 }
 0x1a8   : > { %v1197_v26 = vsel %vm1195_vm7, %v1186_v17, %v1188_v25  ;;  %v1198_v27 = vsel %vm1195_vm7, %v1188_v25, %v1190_v24  ;;  %v1752_v17 = vld [vmem:[%s4921_s27 + $0x4] sm:$0x77]  ;;  %v1753_v25 = vld [vmem:[%s4921_s27 + $0xc] sm:$0x77] }
 0x1a9   : > { %1207 = vst [vmem:[#allocation2 + $0x170] sm:$0x7] %v1197_v26  ;;  %1208 = vst [vmem:[#allocation2 + $0x178] sm:$0x7] %v1198_v27  ;;  %1613 = vrot.lane.b32.xlu1 %v1606_v20, %s4802_s29  ;;  %1611 = vrot.lane.b32.xlu0 %v1605_v21, %s4802_s29 }
 0x1ab   : > { %v1194_v31 = vpop.permute.xlu1 %1193  ;;  %v1192_v32 = vpop.permute.xlu0 %1191 }
 0x1ac   : > { %v1199_v33 = vsel %vm1195_vm7, %v1190_v24, %v1192_v32  ;;  %v1200_v34 = vsel %vm1195_vm7, %v1192_v32, %v1194_v31  ;;  %v1758_v24 = vcombine.high %v1752_v17, %v1752_v17  ;;  %vm1822_vm7 = vcmask 760832  }
 0x1ad   : > { %1209 = vst [vmem:[#allocation2 + $0x180] sm:$0x7] %v1199_v33  ;;  %1210 = vst [vmem:[#allocation2 + $0x188] sm:$0x7] %v1200_v34  ;;  %1617 = vrot.lane.b32.xlu1 %v1608_v28, %s4802_s29  ;;  %1615 = vrot.lane.b32.xlu0 %v1607_v29, %s4802_s29  ;;  %v3639_v33 = vld [vmem:[#allocation2 + $0x140] sm:$0xff] }
 0x1ae   : > { %v1762_v34 = vrot.slane %v1758_v24, 6 }
 0x1af   : > { %v1229_v38 = vpop.permute.xlu1 %1228  ;;  %v1227_v39 = vpop.permute.xlu0 %1226 }
 0x1b0   : > { %v1239_v40 = vsel %vm1238_vm9, %v1227_v39, %v1229_v38 }
 0x1b1   : > { %1249 = vst [vmem:[#allocation2 + $0x168] sm:$0x38] %v1239_v40  ;;  %1621 = vrot.lane.b32.xlu1 %v1610_v35, %s4802_s29  ;;  %1619 = vrot.lane.b32.xlu0 %v1609_v36, %s4802_s29  ;;  %v1761_v35 = vrot.slane %v1752_v17, 6  ;;  %v1759_v36 = vcombine.high %v1753_v25, %v1753_v25  ;;  %v1838_v17 = vld [vmem:[%s4921_s27 + $0x4] sm:$0x77]  ;;  %s4817_s29 = smov 50  }
 0x1b3   : > { %v1233_v44 = vpop.permute.xlu1 %1232  ;;  %v1231_v45 = vpop.permute.xlu0 %1230 }
 0x1b4   : > { %v1240_v47 = vsel %vm1238_vm9, %v1229_v38, %v1231_v45  ;;  %v1241_v48 = vsel %vm1238_vm9, %v1231_v45, %v1233_v44  ;;  %v1754_v38 = vld [vmem:[%s4921_s27 + $0x14] sm:$0x77] }
 0x1b5   : > { %1250 = vst [vmem:[#allocation2 + $0x170] sm:$0x38] %v1240_v47  ;;  %1251 = vst [vmem:[#allocation2 + $0x178] sm:$0x38] %v1241_v48  ;;  %1678 = vrot.lane.b32.xlu1 %v1667_v37, %s6191_s30  ;;  %1676 = vrot.lane.b32.xlu0 %v1673_v41, %s6191_s30  ;;  %v3641_v47 = vld [vmem:[#allocation2 + $0x150] sm:$0xff]  ;;  %v1764_v48 = vrot.slane %v1759_v36, 6  ;;  %v1760_v50 = vcombine.high %v1754_v38, %v1754_v38 }
 0x1b6   : > { %v1876_v36 = vld [vmem:[%s4921_s27 + $0xc] sm:$0x77] }
 0x1b7   : > { %v1237_v54 = vpop.permute.xlu1 %1236  ;;  %v1235_v55 = vpop.permute.xlu0 %1234  ;;  %v1766_v57 = vrot.slane %v1760_v50, 6 }
 0x1b8   : > { %v1242_v58 = vsel %vm1238_vm9, %v1233_v44, %v1235_v55  ;;  %v1243_v59 = vsel %vm1238_vm9, %v1235_v55, %v1237_v54  ;;  %v3642_v44 = vld [vmem:[#allocation2 + $0x158] sm:$0xff]  ;;  %vm1859_vm9 = vcmask 752640  }
 0x1b9   : > { %1252 = vst [vmem:[#allocation2 + $0x180] sm:$0x38] %v1242_v58  ;;  %1253 = vst [vmem:[#allocation2 + $0x188] sm:$0x38] %v1243_v59  ;;  %1682 = vrot.lane.b32.xlu1 %v1668_v42, %s6191_s30  ;;  %1680 = vrot.lane.b32.xlu0 %v1674_v49, %s6191_s30  ;;  %v1763_v49 = vrot.slane %v1753_v25, 6  ;;  %v1765_v58 = vrot.slane %v1754_v38, 6  ;;  %v1801_v59 = vcombine.high %v1795_v52, %v1795_v52 }
 0x1bb   : > { %v1272_v0 = vpop.permute.xlu1 %1271  ;;  %v1270_v1 = vpop.permute.xlu0 %1269 }
 0x1bc   : > { %v1282_v4 = vsel %vm1281_vm10, %v1270_v1, %v1272_v0  ;;  %v1804_v1 = vrot.slane %v1795_v52, 3 }
 0x1bd   : > { %1292 = vst [vmem:[#allocation2 + $0x190] ss:$-36 sps:$4 sm:$0xc1] %v1282_v4   ;;  %1686 = vrot.lane.b32.xlu1 %v1669_v51, %s6191_s30  ;;  %1684 = vrot.lane.b32.xlu0 %v1675_v60, %s6191_s30  ;;  %v1796_v60 = vld [vmem:[%s4921_s27 + $0xc] sm:$0x77] }
 0x1be   : > { %v1802_v2 = vcombine.high %v1796_v60, %v1796_v60  ;;  %v1806_v9 = vrot.slane %v1796_v60, 3 }
 0x1bf   : > { %v1276_v10 = vpop.permute.xlu1 %1275  ;;  %v1274_v11 = vpop.permute.xlu0 %1273 }
 0x1c0   : > { %v1283_v12 = vsel %vm1281_vm10, %v1272_v0, %v1274_v11  ;;  %v1284_v13 = vsel %vm1281_vm10, %v1274_v11, %v1276_v10  ;;  %v1805_v0 = vrot.slane %v1801_v59, 3  ;;  %v1807_v8 = vrot.slane %v1802_v2, 3  ;;  %v1919_v59 = vld [vmem:[%s4921_s27 + $0xc] sm:$0x77]  ;;  %v1920_v2 = vld [vmem:[%s4921_s27 + $0x14] sm:$0x77] }
 0x1c1   : > { %1293 = vst [vmem:[#allocation2 + $0x198] ss:$-36 sps:$4 sm:$0xc1] %v1283_v12   ;;  %1294 = vst [vmem:[#allocation2 + $0x1a0] ss:$-36 sps:$4 sm:$0xc1] %v1284_v13   ;;  %1721 = vrot.lane.b32.xlu1 %v1714_v6, %s4804_s3  ;;  %1719 = vrot.lane.b32.xlu0 %v1713_v7, %s4804_s3 }
 0x1c3   : > { %v1280_v18 = vpop.permute.xlu1 %1279  ;;  %v1278_v19 = vpop.permute.xlu0 %1277 }
 0x1c4   : > { %v1285_v20 = vsel %vm1281_vm10, %v1276_v10, %v1278_v19  ;;  %v1286_v21 = vsel %vm1281_vm10, %v1278_v19, %v1280_v18  ;;  %v3644_v28 = vld [vmem:[#allocation2 + $0x168] sm:$0xff]  ;;  %v1803_v10 = vcombine.high %v1797_v3, %v1797_v3  ;;  %vm1902_vm10 = vcmask 744448  }
 0x1c5   : > { %1295 = vst [vmem:[#allocation2 + $0x1a8] ss:$-36 sps:$4 sm:$0xc1] %v1285_v20   ;;  %1296 = vst [vmem:[#allocation2 + $0x1b0] ss:$-36 sps:$4 sm:$0xc1] %v1286_v21   ;;  %1725 = vrot.lane.b32.xlu1 %v1716_v14, %s4804_s3  ;;  %1723 = vrot.lane.b32.xlu0 %v1715_v15, %s4804_s3  ;;  %v4152_v37 = vpack.c.bf16 %v3644_v28, %v3639_v33  ;;  %v1844_v21 = vcombine.high %v1838_v17, %v1838_v17 }
 0x1c6   : > { %v1809_v15 = vrot.slane %v1803_v10, 3  ;;  %v1840_v28 = vld [vmem:[%s4921_s27 + $0x14] sm:$0x77]  ;;  %v1966_v10 = vld [vmem:[%s4921_s27 + $0x4] sm:$0x77] }
 0x1c7   : > { %v1320_v26 = vpop.permute.xlu1 %1319  ;;  %v1318_v27 = vpop.permute.xlu0 %1317 }
 0x1c8   : > { %v1330_v29 = vsel %vm6200_vm11, %v1318_v27, %v1320_v26  ;;  %v3645_v31 = vld [vmem:[#allocation2 + $0x170] sm:$0xff]  ;;  %v3646_v41 = vld [vmem:[#allocation2 + $0x178] sm:$0xff] }
 0x1c9   : > { %1340 = vst [vmem:[#allocation2 + $0x190] sm:$0xe] %v1330_v29  ;;  %1729 = vrot.lane.b32.xlu1 %v1718_v22, %s4804_s3  ;;  %1727 = vrot.lane.b32.xlu0 %v1717_v23, %s4804_s3  ;;  %v4150_v32 = vpack.c.bf16 %v3645_v31, %v3640_v30  ;;  %v4216_v51 = vpack.c.bf16 %v3646_v41, %v3641_v47  ;;  %v1839_v22 = vld [vmem:[%s4921_s27 + $0xc] sm:$0x77]  ;;  %v1875_v29 = vld [vmem:[%s4921_s27 + $0x4] sm:$0x77] }
 0x1ca   : > { %v1845_v27 = vcombine.high %v1839_v22, %v1839_v22  ;;  %v1884_v41 = vrot.slane %v1875_v29, 5  ;;  %s4818_s3 = smov 49  }
 0x1cb   : > { %v1324_v39 = vpop.permute.xlu1 %1323  ;;  %v1322_v40 = vpop.permute.xlu0 %1321  ;;  %4151 = vmatprep.subr.bf16.mxu0 %v4150_v32 }
 0x1cc   : > { %v1331_v42 = vsel %vm6200_vm11, %v1320_v26, %v1322_v40  ;;  %v1332_v43 = vsel %vm6200_vm11, %v1322_v40, %v1324_v39  ;;  %4153 = vmatpush1.bf16.msra.mxu0 %v4152_v37  ;;  %v3647_v45 = vld [vmem:[#allocation2 + $0x180] sm:$0xff] }
 0x1cd   : > { %1341 = vst [vmem:[#allocation2 + $0x198] sm:$0xe] %v1331_v42  ;;  %1342 = vst [vmem:[#allocation2 + $0x1a0] sm:$0xe] %v1332_v43  ;;  %1769 = vrot.lane.b32.xlu1 %v1762_v34, %s4805_s4  ;;  %1767 = vrot.lane.b32.xlu0 %v1761_v35, %s4805_s4  ;;  %v4214_v46 = vpack.c.bf16 %v3647_v45, %v3642_v44  ;;  %v1846_v34 = vcombine.high %v1840_v28, %v1840_v28  ;;  %v1877_v43 = vld [vmem:[%s4921_s27 + $0x14] sm:$0x77] }
 0x1ce   : > { %v1881_v35 = vcombine.high %v1875_v29, %v1875_v29  ;;  %v1882_v42 = vcombine.high %v1876_v36, %v1876_v36  ;;  %v1883_v50 = vcombine.high %v1877_v43, %v1877_v43 }
 0x1cf   : > { %v1328_v53 = vpop.permute.xlu1 %1327  ;;  %v1326_v54 = vpop.permute.xlu0 %1325  ;;  %4215 = vmatprep.subr.bf16.mxu1 %v4214_v46 }
 0x1d0   : > { %v1333_v55 = vsel %vm6200_vm11, %v1324_v39, %v1326_v54  ;;  %v1334_v56 = vsel %vm6200_vm11, %v1326_v54, %v1328_v53  ;;  %4217 = vmatpush1.bf16.msra.mxu1 %v4216_v51  ;;  %v1885_v40 = vrot.slane %v1881_v35, 5  ;;  %v1918_v51 = vld [vmem:[%s4921_s27 + $0x4] sm:$0x77] }
 0x1d1   : > { %1343 = vst [vmem:[#allocation2 + $0x1a8] sm:$0xe] %v1333_v55  ;;  %1344 = vst [vmem:[#allocation2 + $0x1b0] sm:$0xe] %v1334_v56  ;;  %1773 = vrot.lane.b32.xlu1 %v1764_v48, %s4805_s4  ;;  %1771 = vrot.lane.b32.xlu0 %v1763_v49, %s4805_s4  ;;  %v1887_v48 = vrot.slane %v1882_v42, 5  ;;  %v1886_v49 = vrot.slane %v1876_v36, 5 }
 0x1d2   : > { %v1889_v56 = vrot.slane %v1883_v50, 5 }
 0x1d3   : > { %v1357_v61 = vpop.permute.xlu1 %1356  ;;  %v1355_v62 = vpop.permute.xlu0 %1354 }
 0x1d4   : > { %v1367_v63 = vsel %vm1366_vm12, %v1355_v62, %v1357_v61 }
 0x1d5   : > { %1377 = vst [vmem:[#allocation2 + $0x190] sm:$0x70] %v1367_v63  ;;  %1777 = vrot.lane.b32.xlu1 %v1766_v57, %s4805_s4  ;;  %1775 = vrot.lane.b32.xlu0 %v1765_v58, %s4805_s4  ;;  %v1888_v57 = vrot.slane %v1877_v43, 5  ;;  %v1924_v58 = vcombine.high %v1918_v51, %v1918_v51  ;;  %s4819_s4 = smov 16  }
 0x1d7   : > { %v1361_v4 = vpop.permute.xlu1 %1360  ;;  %v1359_v5 = vpop.permute.xlu0 %1358  ;;  %v1928_v63 = vrot.slane %v1924_v58, 2 }
 0x1d8   : > { %v1368_v6 = vsel %vm1366_vm12, %v1357_v61, %v1359_v5  ;;  %v1369_v7 = vsel %vm1366_vm12, %v1359_v5, %v1361_v4 }
 0x1d9   : > { %1378 = vst [vmem:[#allocation2 + $0x198] sm:$0x70] %v1368_v6  ;;  %1379 = vst [vmem:[#allocation2 + $0x1a0] sm:$0x70] %v1369_v7  ;;  %1812 = vrot.lane.b32.xlu1 %v1805_v0, %s4806_s5  ;;  %1810 = vrot.lane.b32.xlu0 %v1804_v1, %s4806_s5  ;;  %v1927_v0 = vrot.slane %v1918_v51, 2  ;;  %v1925_v1 = vcombine.high %v1919_v59, %v1919_v59 }
 0x1da   : > { %v2009_v51 = vld [vmem:[%s4921_s27 + $0x4] sm:$0x77] }
 0x1db   : > { %v1365_v11 = vpop.permute.xlu1 %1364  ;;  %v1363_v12 = vpop.permute.xlu0 %1362  ;;  %v1930_v7 = vrot.slane %v1925_v1, 2 }
 0x1dc   : > { %v1370_v13 = vsel %vm1366_vm12, %v1361_v4, %v1363_v12  ;;  %v1371_v14 = vsel %vm1366_vm12, %v1363_v12, %v1365_v11  ;;  %vm1945_vm12 = vcmask 736256  }
 0x1dd   : > { %1380 = vst [vmem:[#allocation2 + $0x1a8] sm:$0x70] %v1370_v13  ;;  %1381 = vst [vmem:[#allocation2 + $0x1b0] sm:$0x70] %v1371_v14  ;;  %1816 = vrot.lane.b32.xlu1 %v1807_v8, %s4806_s5  ;;  %1814 = vrot.lane.b32.xlu0 %v1806_v9, %s4806_s5  ;;  %v1929_v8 = vrot.slane %v1919_v59, 2  ;;  %v1926_v9 = vcombine.high %v1920_v2, %v1920_v2 }
 0x1df   : > { %v1400_v18 = vpop.permute.xlu1 %1399  ;;  %v1398_v19 = vpop.permute.xlu0 %1397 }
 0x1e0   : > { %v1410_v20 = vsel %vm1409_vm13, %v1398_v19, %v1400_v18 }
 0x1e1   : > { %1420 = vst [vmem:[#allocation2 + $0x1b8] ss:$-36 sps:$4 sm:$0x83] %v1410_v20   ;;  %1820 = vrot.lane.b32.xlu1 %v1809_v15, %s4806_s5  ;;  %1818 = vrot.lane.b32.xlu0 %v1808_v16, %s4806_s5  ;;  %v1932_v15 = vrot.slane %v1926_v9, 2  ;;  %v1931_v16 = vrot.slane %v1920_v2, 2  ;;  %s4820_s5 = smov 15  }
 0x1e3   : > { %v1404_v23 = vpop.permute.xlu1 %1403  ;;  %v1402_v24 = vpop.permute.xlu0 %1401 }
 0x1e4   : > { %v1411_v25 = vsel %vm1409_vm13, %v1400_v18, %v1402_v24  ;;  %v1412_v26 = vsel %vm1409_vm13, %v1402_v24, %v1404_v23  ;;  %v1967_v18 = vld [vmem:[%s4921_s27 + $0xc] sm:$0x77] }
 0x1e5   : > { %1421 = vst [vmem:[#allocation2 + $0x1c0] ss:$-36 sps:$4 sm:$0x83] %v1411_v25   ;;  %1422 = vst [vmem:[#allocation2 + $0x1c8] ss:$-36 sps:$4 sm:$0x83] %v1412_v26   ;;  %1849 = vrot.lane.b32.xlu1 %v1844_v21, %s4807_s6  ;;  %1847 = vrot.lane.b32.xlu0 %v1838_v17, %s4807_s6  ;;  %v1972_v17 = vcombine.high %v1966_v10, %v1966_v10  ;;  %v1973_v29 = vcombine.high %v1967_v18, %v1967_v18 }
 0x1e6   : > { %v1977_v42 = vrot.slane %v1967_v18, 7 }
 0x1e7   : > { %v1408_v30 = vpop.permute.xlu1 %1407  ;;  %v1406_v31 = vpop.permute.xlu0 %1405 }
 0x1e8   : > { %v1413_v32 = vsel %vm1409_vm13, %v1404_v23, %v1406_v31  ;;  %v1414_v33 = vsel %vm1409_vm13, %v1406_v31, %v1408_v30  ;;  %v3649_v26 = vld [vmem:[#allocation2 + $0x190] sm:$0xff]  ;;  %vm1993_vm13 = vcmask 728064  }
 0x1e9   : > { %1423 = vst [vmem:[#allocation2 + $0x1d0] ss:$-36 sps:$4 sm:$0x83] %v1413_v32   ;;  %1424 = vst [vmem:[#allocation2 + $0x1d8] ss:$-36 sps:$4 sm:$0x83] %v1414_v33   ;;  %1853 = vrot.lane.b32.xlu1 %v1845_v27, %s4807_s6  ;;  %1851 = vrot.lane.b32.xlu0 %v1839_v22, %s4807_s6 }
 0x1ea   : > { %v1976_v27 = vrot.slane %v1972_v17, 7  ;;  %v1968_v31 = vld [vmem:[%s4921_s27 + $0x14] sm:$0x77] }
 0x1eb   : > { %v1448_v37 = vpop.permute.xlu1 %1447  ;;  %v1446_v38 = vpop.permute.xlu0 %1445  ;;  %v1974_v43 = vcombine.high %v1968_v31, %v1968_v31  ;;  %v1979_v50 = vrot.slane %v1968_v31, 7 }
 0x1ec   : > { %v1458_v39 = vsel %vm1457_vm14, %v1446_v38, %v1448_v37  ;;  %v3650_v23 = vld [vmem:[#allocation2 + $0x198] sm:$0xff] }
 0x1ed   : > { %1468 = vst [vmem:[#allocation2 + $0x1b8] sm:$0x1c] %v1458_v39  ;;  %1857 = vrot.lane.b32.xlu1 %v1846_v34, %s4807_s6  ;;  %1855 = vrot.lane.b32.xlu0 %v1840_v28, %s4807_s6  ;;  %v1975_v28 = vrot.slane %v1966_v10, 7  ;;  %s4821_s6 = smov 14  }
 0x1ef   : > { %v1452_v44 = vpop.permute.xlu1 %1451  ;;  %v1450_v45 = vpop.permute.xlu0 %1449 }
 0x1f0   : > { %v1459_v46 = vsel %vm1457_vm14, %v1448_v37, %v1450_v45  ;;  %v1460_v47 = vsel %vm1457_vm14, %v1450_v45, %v1452_v44  ;;  %v3652_v37 = vld [vmem:[#allocation2 + $0x1a8] sm:$0xff] }
 0x1f1   : > { %1469 = vst [vmem:[#allocation2 + $0x1c0] sm:$0x1c] %v1459_v46  ;;  %1470 = vst [vmem:[#allocation2 + $0x1c8] sm:$0x1c] %v1460_v47  ;;  %1892 = vrot.lane.b32.xlu1 %v1885_v40, %s4808_s7  ;;  %1890 = vrot.lane.b32.xlu0 %v1884_v41, %s4808_s7  ;;  %v3651_v40 = vld [vmem:[#allocation2 + $0x1a0] sm:$0xff]  ;;  %v1978_v41 = vrot.slane %v1973_v29, 7 }
 0x1f2   : > { %v2094_v29 = vld [vmem:[%s4921_s27 + $0xc] sm:$0x77] }
 0x1f3   : > { %v1456_v52 = vpop.permute.xlu1 %1455  ;;  %v1454_v53 = vpop.permute.xlu0 %1453 }
 0x1f4   : > { %v1461_v54 = vsel %vm1457_vm14, %v1452_v44, %v1454_v53  ;;  %v1462_v55 = vsel %vm1457_vm14, %v1454_v53, %v1456_v52  ;;  %vm2072_vm14 = vcmask 457728  }
 0x1f5   : > { %1471 = vst [vmem:[#allocation2 + $0x1d0] sm:$0x1c] %v1461_v54  ;;  %1472 = vst [vmem:[#allocation2 + $0x1d8] sm:$0x1c] %v1462_v55  ;;  %1896 = vrot.lane.b32.xlu1 %v1887_v48, %s4808_s7  ;;  %1894 = vrot.lane.b32.xlu0 %v1886_v49, %s4808_s7  ;;  %v1980_v49 = vrot.slane %v1974_v43, 7  ;;  %v2015_v55 = vcombine.low %v2009_v51, %v2009_v51 }
 0x1f7   : > { %v1491_v60 = vpop.permute.xlu1 %1490  ;;  %v1489_v61 = vpop.permute.xlu0 %1488 }
 0x1f8   : > { %v1501_v62 = vsel %vm1500_vm15, %v1489_v61, %v1491_v60 }
 0x1f9   : > { %1511 = vst [vmem:[#allocation2 + $0x1b8] sm:$0xe0] %v1501_v62  ;;  %1900 = vrot.lane.b32.xlu1 %v1889_v56, %s4808_s7  ;;  %1898 = vrot.lane.b32.xlu0 %v1888_v57, %s4808_s7  ;;  %v2010_v56 = vld [vmem:[%s4921_s27 + $0xc] sm:$0x77]  ;;  %v2011_v62 = vld [vmem:[%s4921_s27 + $0x14] sm:$0x77] }
 0x1fa   : > { %v2016_v61 = vcombine.low %v2010_v56, %v2010_v56  ;;  %s4822_s7 = smov 13  }
 0x1fb   : > { %v1495_v3 = vpop.permute.xlu1 %1494  ;;  %v1493_v4 = vpop.permute.xlu0 %1492 }
 0x1fc   : > { %v1502_v5 = vsel %vm1500_vm15, %v1491_v60, %v1493_v4  ;;  %v1503_v6 = vsel %vm1500_vm15, %v1493_v4, %v1495_v3  ;;  %v2017_v4 = vcombine.low %v2011_v62, %v2011_v62 }
 0x1fd   : > { %1512 = vst [vmem:[#allocation2 + $0x1c0] sm:$0xe0] %v1502_v5  ;;  %1513 = vst [vmem:[#allocation2 + $0x1c8] sm:$0xe0] %v1503_v6  ;;  %1935 = vrot.lane.b32.xlu1 %v1928_v63, %s4809_s15  ;;  %1933 = vrot.lane.b32.xlu0 %v1927_v0, %s4809_s15  ;;  %v2045_v63 = vld [vmem:[%s4921_s27 + $0x4] sm:$0x77] }
 0x1fe   : > { %v2051_v5 = vcombine.high %v2045_v63, %v2045_v63  ;;  %v2046_v6 = vld [vmem:[%s4921_s27 + $0xc] sm:$0x77] }
 0x1ff   : > { %v1499_v11 = vpop.permute.xlu1 %1498  ;;  %v1497_v12 = vpop.permute.xlu0 %1496 }
 0x200   : > { %v1504_v13 = vsel %vm1500_vm15, %v1495_v3, %v1497_v12  ;;  %v1505_v14 = vsel %vm1500_vm15, %v1497_v12, %v1499_v11  ;;  %v3654_v21 = vld [vmem:[#allocation2 + $0x1b8] sm:$0xff]  ;;  %v2055_v10 = vrot.slane %v2051_v5, 1  ;;  %v2054_v11 = vrot.slane %v2045_v63, 1 }
 0x201   : > { %1514 = vst [vmem:[#allocation2 + $0x1d0] sm:$0xe0] %v1504_v13  ;;  %1515 = vst [vmem:[#allocation2 + $0x1d8] sm:$0xe0] %v1505_v14  ;;  %1939 = vrot.lane.b32.xlu1 %v1930_v7, %s4809_s15  ;;  %1937 = vrot.lane.b32.xlu0 %v1929_v8, %s4809_s15  ;;  %v4156_v30 = vpack.c.bf16 %v3654_v21, %v3649_v26  ;;  %v2052_v12 = vcombine.high %v2046_v6, %v2046_v6  ;;  %v2047_v13 = vld [vmem:[%s4921_s27 + $0x14] sm:$0x77] }
 0x202   : > { %v2093_v21 = vld [vmem:[%s4921_s27 + $0x4] sm:$0x77]  ;;  %vm2163_vm15 = vcmask 441344  }
 0x203   : > { %v1528_v19 = vpop.permute.xlu1 %1527  ;;  %v1526_v20 = vpop.permute.xlu0 %1525  ;;  %v2057_v18 = vrot.slane %v2052_v12, 1 }
 0x204   : > { %v1538_v22 = vsel %vm1537_vm0, %v1526_v20, %v1528_v19  ;;  %v3655_v24 = vld [vmem:[#allocation2 + $0x1c0] sm:$0xff]  ;;  %v3656_v34 = vld [vmem:[#allocation2 + $0x1c8] sm:$0xff]  ;;  %v2053_v20 = vcombine.high %v2047_v13, %v2047_v13 }
 0x205   : > { %1548 = vst [vmem:[#allocation2 + $0x1e0] sm:$0x7] %v1538_v22  ;;  %1943 = vrot.lane.b32.xlu1 %v1932_v15, %s4809_s15  ;;  %1941 = vrot.lane.b32.xlu0 %v1931_v16, %s4809_s15  ;;  %v4154_v25 = vpack.c.bf16 %v3655_v24, %v3650_v23  ;;  %v4220_v44 = vpack.c.bf16 %v3656_v34, %v3651_v40  ;;  %v2102_v34 = vrot.slane %v2093_v21, 6  ;;  %s4823_s15 = smov 12  }
 0x206   : > { %v2059_v26 = vrot.slane %v2053_v20, 1  ;;  %v2180_v20 = vld [vmem:[%s4921_s27 + $0xc] sm:$0x77] }
 0x207   : > { %v1532_v32 = vpop.permute.xlu1 %1531  ;;  %v1530_v33 = vpop.permute.xlu0 %1529  ;;  %4155 = vmatprep.subr.bf16.mxu0 %v4154_v25 }
 0x208   : > { %v1539_v35 = vsel %vm1537_vm0, %v1528_v19, %v1530_v33  ;;  %v1540_v36 = vsel %vm1537_vm0, %v1530_v33, %v1532_v32  ;;  %4157 = vmatpush1.bf16.msra.mxu0 %v4156_v30  ;;  %v3657_v38 = vld [vmem:[#allocation2 + $0x1d0] sm:$0xff]  ;;  %v2056_v19 = vrot.slane %v2046_v6, 1 }
 0x209   : > { %1549 = vst [vmem:[#allocation2 + $0x1e8] sm:$0x7] %v1539_v35  ;;  %1550 = vst [vmem:[#allocation2 + $0x1f0] sm:$0x7] %v1540_v36  ;;  %1983 = vrot.lane.b32.xlu1 %v1976_v27, %s4810_s18  ;;  %1981 = vrot.lane.b32.xlu0 %v1975_v28, %s4810_s18  ;;  %v4218_v39 = vpack.c.bf16 %v3657_v38, %v3652_v37  ;;  %v2058_v27 = vrot.slane %v2047_v13, 1  ;;  %v2099_v28 = vcombine.high %v2093_v21, %v2093_v21 }
 0x20a   : > { %v2100_v35 = vcombine.high %v2094_v29, %v2094_v29  ;;  %v2095_v36 = vld [vmem:[%s4921_s27 + $0x14] sm:$0x77] }
 0x20b   : > { %v1536_v45 = vpop.permute.xlu1 %1535  ;;  %v1534_v46 = vpop.permute.xlu0 %1533  ;;  %4219 = vmatprep.subr.bf16.mxu1 %v4218_v39  ;;  %v2103_v33 = vrot.slane %v2099_v28, 6  ;;  %v2101_v43 = vcombine.high %v2095_v36, %v2095_v36 }
 0x20c   : > { %v1541_v47 = vsel %vm1537_vm0, %v1532_v32, %v1534_v46  ;;  %v1542_v48 = vsel %vm1537_vm0, %v1534_v46, %v1536_v45  ;;  %4221 = vmatpush1.bf16.msra.mxu1 %v4220_v44  ;;  %v2136_v44 = vld [vmem:[%s4921_s27 + $0x4] sm:$0x77]  ;;  %vm2200_vm0 = vcmask 433152  }
 0x20d   : > { %1551 = vst [vmem:[#allocation2 + $0x1f8] sm:$0x7] %v1541_v47  ;;  %1552 = vst [vmem:[#allocation2 + $0x200] sm:$0x7] %v1542_v48  ;;  %1987 = vrot.lane.b32.xlu1 %v1978_v41, %s4810_s18  ;;  %1985 = vrot.lane.b32.xlu0 %v1977_v42, %s4810_s18  ;;  %v2105_v41 = vrot.slane %v2100_v35, 6  ;;  %v2104_v42 = vrot.slane %v2094_v29, 6 }
 0x20f   : > { %v1571_v52 = vpop.permute.xlu1 %1570  ;;  %v1569_v53 = vpop.permute.xlu0 %1568 }
 0x210   : > { %v1581_v54 = vsel %vm1580_vm2, %v1569_v53, %v1571_v52 }
 0x211   : > { %1591 = vst [vmem:[#allocation2 + $0x1e0] sm:$0x38] %v1581_v54  ;;  %1991 = vrot.lane.b32.xlu1 %v1980_v49, %s4810_s18  ;;  %1989 = vrot.lane.b32.xlu0 %v1979_v50, %s4810_s18  ;;  %v2107_v49 = vrot.slane %v2101_v43, 6  ;;  %v2106_v50 = vrot.slane %v2095_v36, 6  ;;  %s4824_s18 = smov 11  }
 0x213   : > { %v1575_v57 = vpop.permute.xlu1 %1574  ;;  %v1573_v58 = vpop.permute.xlu0 %1572 }
 0x214   : > { %v1582_v59 = vsel %vm1580_vm2, %v1571_v52, %v1573_v58  ;;  %v1583_v60 = vsel %vm1580_vm2, %v1573_v58, %v1575_v57  ;;  %v2137_v52 = vld [vmem:[%s4921_s27 + $0xc] sm:$0x77] }
 0x215   : > { %1592 = vst [vmem:[#allocation2 + $0x1e8] sm:$0x38] %v1582_v59  ;;  %1593 = vst [vmem:[#allocation2 + $0x1f0] sm:$0x38] %v1583_v60  ;;  %2020 = vrot.lane.b32.xlu1 %v2009_v51, %s4777_s8  ;;  %2018 = vrot.lane.b32.xlu0 %v2015_v55, %s4777_s8  ;;  %v2142_v51 = vcombine.high %v2136_v44, %v2136_v44  ;;  %v2143_v58 = vcombine.high %v2137_v52, %v2137_v52  ;;  %v2138_v59 = vld [vmem:[%s4921_s27 + $0x14] sm:$0x77] }
 0x217   : > { %v1579_v0 = vpop.permute.xlu1 %1578  ;;  %v1577_v1 = vpop.permute.xlu0 %1576 }
 0x218   : > { %v1584_v2 = vsel %vm1580_vm2, %v1575_v57, %v1577_v1  ;;  %v1585_v3 = vsel %vm1580_vm2, %v1577_v1, %v1579_v0  ;;  %v2145_v57 = vrot.slane %v2136_v44, 3  ;;  %v2148_v0 = vrot.slane %v2143_v58, 3 }
 0x219   : > { %1594 = vst [vmem:[#allocation2 + $0x1f8] sm:$0x38] %v1584_v2  ;;  %1595 = vst [vmem:[#allocation2 + $0x200] sm:$0x38] %v1585_v3  ;;  %2024 = vrot.lane.b32.xlu1 %v2010_v56, %s4777_s8  ;;  %2022 = vrot.lane.b32.xlu0 %v2016_v61, %s4777_s8  ;;  %v2146_v56 = vrot.slane %v2142_v51, 3  ;;  %v2147_v1 = vrot.slane %v2137_v52, 3  ;;  %v2144_v2 = vcombine.high %v2138_v59, %v2138_v59 }
 0x21a   : > { %vm2243_vm2 = vcmask 424960  }
 0x21b   : > { %v1614_v7 = vpop.permute.xlu1 %1613  ;;  %v1612_v8 = vpop.permute.xlu0 %1611 }
 0x21c   : > { %v1624_v9 = vsel %vm1623_vm3, %v1612_v8, %v1614_v7  ;;  %v2149_v8 = vrot.slane %v2138_v59, 3 }
 0x21d   : > { %1634 = vst [vmem:[#allocation2 + $0x208] ss:$-36 sps:$4 sm:$0xc1] %v1624_v9   ;;  %2028 = vrot.lane.b32.xlu1 %v2011_v62, %s4777_s8  ;;  %2026 = vrot.lane.b32.xlu0 %v2017_v4, %s4777_s8  ;;  %s4812_s8 = smov 55   ;;  %v2179_v9 = vld [vmem:[%s4921_s27 + $0x4] sm:$0x77] }
 0x21f   : > { %v1618_v14 = vpop.permute.xlu1 %1617  ;;  %v1616_v15 = vpop.permute.xlu0 %1615 }
 0x220   : > { %v1625_v16 = vsel %vm1623_vm3, %v1614_v7, %v1616_v15  ;;  %v1626_v17 = vsel %vm1623_vm3, %v1616_v15, %v1618_v14  ;;  %v2150_v7 = vrot.slane %v2144_v2, 3 }
 0x221   : > { %1635 = vst [vmem:[#allocation2 + $0x210] ss:$-36 sps:$4 sm:$0xc1] %v1625_v16   ;;  %1636 = vst [vmem:[#allocation2 + $0x218] ss:$-36 sps:$4 sm:$0xc1] %v1626_v17   ;;  %2062 = vrot.lane.b32.xlu1 %v2055_v10, %s4811_s20  ;;  %2060 = vrot.lane.b32.xlu0 %v2054_v11, %s4811_s20 }
 0x223   : > { %v1622_v22 = vpop.permute.xlu1 %1621  ;;  %v1620_v23 = vpop.permute.xlu0 %1619 }
 0x224   : > { %v1627_v24 = vsel %vm1623_vm3, %v1618_v14, %v1620_v23  ;;  %v1628_v25 = vsel %vm1623_vm3, %v1620_v23, %v1622_v22  ;;  %v3659_v17 = vld [vmem:[#allocation2 + $0x1e0] sm:$0xff]  ;;  %vm2286_vm3 = vcmask 416768  }
 0x225   : > { %1637 = vst [vmem:[#allocation2 + $0x220] ss:$-36 sps:$4 sm:$0xc1] %v1627_v24   ;;  %1638 = vst [vmem:[#allocation2 + $0x228] ss:$-36 sps:$4 sm:$0xc1] %v1628_v25   ;;  %2066 = vrot.lane.b32.xlu1 %v2057_v18, %s4811_s20  ;;  %2064 = vrot.lane.b32.xlu0 %v2056_v19, %s4811_s20  ;;  %v2185_v18 = vcombine.high %v2179_v9, %v2179_v9 }
 0x227   : > { %v1679_v30 = vpop.permute.xlu1 %1678  ;;  %v1677_v31 = vpop.permute.xlu0 %1676 }
 0x228   : > { %v1689_v32 = vsel %vm6211_vm4, %v1677_v31, %v1679_v30  ;;  %v3660_v14 = vld [vmem:[#allocation2 + $0x1e8] sm:$0xff]  ;;  %v3661_v29 = vld [vmem:[#allocation2 + $0x1f0] sm:$0xff] }
 0x229   : > { %1699 = vst [vmem:[#allocation2 + $0x208] sm:$0x70] %v1689_v32  ;;  %2070 = vrot.lane.b32.xlu1 %v2059_v26, %s4811_s20  ;;  %2068 = vrot.lane.b32.xlu0 %v2058_v27, %s4811_s20  ;;  %v2181_v32 = vld [vmem:[%s4921_s27 + $0x14] sm:$0x77] }
 0x22b   : > { %v1683_v37 = vpop.permute.xlu1 %1682  ;;  %v1681_v38 = vpop.permute.xlu0 %1680 }
 0x22c   : > { %v1690_v39 = vsel %vm6211_vm4, %v1679_v30, %v1681_v38  ;;  %v1691_v40 = vsel %vm6211_vm4, %v1681_v38, %v1683_v37  ;;  %v3662_v26 = vld [vmem:[#allocation2 + $0x1f8] sm:$0xff]  ;;  %v2186_v30 = vcombine.high %v2180_v20, %v2180_v20  ;;  %v2187_v38 = vcombine.high %v2181_v32, %v2181_v32 }
 0x22d   : > { %1700 = vst [vmem:[#allocation2 + $0x210] sm:$0x70] %v1690_v39  ;;  %1701 = vst [vmem:[#allocation2 + $0x218] sm:$0x70] %v1691_v40  ;;  %2110 = vrot.lane.b32.xlu1 %v2103_v33, %s4812_s8  ;;  %2108 = vrot.lane.b32.xlu0 %v2102_v34, %s4812_s8  ;;  %v2216_v33 = vld [vmem:[%s4921_s27 + $0x4] sm:$0x77] }
 0x22e   : > { %v2222_v39 = vcombine.high %v2216_v33, %v2216_v33  ;;  %v2217_v40 = vld [vmem:[%s4921_s27 + $0xc] sm:$0x77] }
 0x22f   : > { %v1687_v45 = vpop.permute.xlu1 %1686  ;;  %v1685_v46 = vpop.permute.xlu0 %1684 }
 0x230   : > { %v1692_v47 = vsel %vm6211_vm4, %v1683_v37, %v1685_v46  ;;  %v1693_v48 = vsel %vm6211_vm4, %v1685_v46, %v1687_v45  ;;  %v2226_v44 = vrot.slane %v2222_v39, 5  ;;  %v2225_v45 = vrot.slane %v2216_v33, 5 }
 0x231   : > { %1702 = vst [vmem:[#allocation2 + $0x220] sm:$0x70] %v1692_v47  ;;  %1703 = vst [vmem:[#allocation2 + $0x228] sm:$0x70] %v1693_v48  ;;  %2114 = vrot.lane.b32.xlu1 %v2105_v41, %s4812_s8  ;;  %2112 = vrot.lane.b32.xlu0 %v2104_v42, %s4812_s8  ;;  %v2223_v46 = vcombine.high %v2217_v40, %v2217_v40  ;;  %v2218_v47 = vld [vmem:[%s4921_s27 + $0x14] sm:$0x77] }
 0x233   : > { %v1722_v53 = vpop.permute.xlu1 %1721  ;;  %v1720_v54 = vpop.permute.xlu0 %1719  ;;  %v2228_v52 = vrot.slane %v2223_v46, 5 }
 0x234   : > { %v1732_v55 = vsel %vm1731_vm5, %v1720_v54, %v1722_v53  ;;  %v2224_v54 = vcombine.high %v2218_v47, %v2218_v47 }
 0x235   : > { %1742 = vst [vmem:[#allocation2 + $0x230] ss:$-36 sps:$4 sm:$0x83] %v1732_v55   ;;  %2118 = vrot.lane.b32.xlu1 %v2107_v49, %s4812_s8  ;;  %2116 = vrot.lane.b32.xlu0 %v2106_v50, %s4812_s8  ;;  %v2259_v55 = vld [vmem:[%s4921_s27 + $0x4] sm:$0x77]  ;;  %s6175_s8 = smov 10  }
 0x237   : > { %v1726_v60 = vpop.permute.xlu1 %1725  ;;  %v1724_v61 = vpop.permute.xlu0 %1723 }
 0x238   : > { %v1733_v62 = vsel %vm1731_vm5, %v1722_v53, %v1724_v61  ;;  %v1734_v63 = vsel %vm1731_vm5, %v1724_v61, %v1726_v60  ;;  %v2227_v53 = vrot.slane %v2217_v40, 5  ;;  %v2229_v61 = vrot.slane %v2218_v47, 5 }
 0x239   : > { %1743 = vst [vmem:[#allocation2 + $0x238] ss:$-36 sps:$4 sm:$0x83] %v1733_v62   ;;  %1744 = vst [vmem:[#allocation2 + $0x240] ss:$-36 sps:$4 sm:$0x83] %v1734_v63   ;;  %2153 = vrot.lane.b32.xlu1 %v2146_v56, %s4813_s23  ;;  %2151 = vrot.lane.b32.xlu0 %v2145_v57, %s4813_s23  ;;  %v2265_v62 = vcombine.high %v2259_v55, %v2259_v55 }
 0x23a   : > { %v2260_v63 = vld [vmem:[%s4921_s27 + $0xc] sm:$0x77] }
 0x23b   : > { %v1730_v3 = vpop.permute.xlu1 %1729  ;;  %v1728_v4 = vpop.permute.xlu0 %1727 }
 0x23c   : > { %v1735_v5 = vsel %vm1731_vm5, %v1726_v60, %v1728_v4  ;;  %v1736_v6 = vsel %vm1731_vm5, %v1728_v4, %v1730_v3  ;;  %v3664_v12 = vld [vmem:[#allocation2 + $0x208] sm:$0xff]  ;;  %v2230_v60 = vrot.slane %v2224_v54, 5  ;;  %v2269_v3 = vrot.slane %v2265_v62, 2 }
 0x23d   : > { %1745 = vst [vmem:[#allocation2 + $0x248] ss:$-36 sps:$4 sm:$0x83] %v1735_v5   ;;  %1746 = vst [vmem:[#allocation2 + $0x250] ss:$-36 sps:$4 sm:$0x83] %v1736_v6   ;;  %2157 = vrot.lane.b32.xlu1 %v2148_v0, %s4813_s23  ;;  %2155 = vrot.lane.b32.xlu0 %v2147_v1, %s4813_s23  ;;  %v4160_v19 = vpack.c.bf16 %v3664_v12, %v3659_v17  ;;  %v2266_v5 = vcombine.high %v2260_v63, %v2260_v63 }
 0x23e   : > { %v2268_v4 = vrot.slane %v2259_v55, 2  ;;  %v2261_v6 = vld [vmem:[%s4921_s27 + $0x14] sm:$0x77]  ;;  %v2270_v12 = vrot.slane %v2260_v63, 2  ;;  %vm2334_vm5 = vcmask 408576  }
 0x23f   : > { %v1770_v10 = vpop.permute.xlu1 %1769  ;;  %v1768_v11 = vpop.permute.xlu0 %1767 }
 0x240   : > { %v1780_v13 = vsel %vm1779_vm6, %v1768_v11, %v1770_v10  ;;  %v3665_v15 = vld [vmem:[#allocation2 + $0x210] sm:$0xff]  ;;  %v3666_v23 = vld [vmem:[#allocation2 + $0x218] sm:$0xff]  ;;  %v2271_v11 = vrot.slane %v2266_v5, 2 }
 0x241   : > { %1790 = vst [vmem:[#allocation2 + $0x230] sm:$0x1c] %v1780_v13  ;;  %2161 = vrot.lane.b32.xlu1 %v2150_v7, %s4813_s23  ;;  %2159 = vrot.lane.b32.xlu0 %v2149_v8, %s4813_s23  ;;  %v4158_v16 = vpack.c.bf16 %v3665_v15, %v3660_v14  ;;  %v4224_v31 = vpack.c.bf16 %v3666_v23, %v3661_v29  ;;  %v2307_v14 = vld [vmem:[%s4921_s27 + $0x4] sm:$0x77]  ;;  %s6173_s23 = smov 9  }
 0x242   : > { %v2267_v13 = vcombine.high %v2261_v6, %v2261_v6 }
 0x243   : > { %v1774_v21 = vpop.permute.xlu1 %1773  ;;  %v1772_v22 = vpop.permute.xlu0 %1771  ;;  %4159 = vmatprep.subr.bf16.mxu0 %v4158_v16 }
 0x244   : > { %v1781_v24 = vsel %vm1779_vm6, %v1770_v10, %v1772_v22  ;;  %v1782_v25 = vsel %vm1779_vm6, %v1772_v22, %v1774_v21  ;;  %4161 = vmatpush1.bf16.msra.mxu0 %v4160_v19  ;;  %v3667_v27 = vld [vmem:[#allocation2 + $0x220] sm:$0xff]  ;;  %v2273_v19 = vrot.slane %v2267_v13, 2  ;;  %v2308_v22 = vld [vmem:[%s4921_s27 + $0xc] sm:$0x77] }
 0x245   : > { %1791 = vst [vmem:[#allocation2 + $0x238] sm:$0x1c] %v1781_v24  ;;  %1792 = vst [vmem:[#allocation2 + $0x240] sm:$0x1c] %v1782_v25  ;;  %2190 = vrot.lane.b32.xlu1 %v2185_v18, %s4814_s24  ;;  %2188 = vrot.lane.b32.xlu0 %v2179_v9, %s4814_s24  ;;  %v4222_v28 = vpack.c.bf16 %v3667_v27, %v3662_v26  ;;  %v2316_v27 = vrot.slane %v2307_v14, 7 }
 0x247   : > { %v1778_v34 = vpop.permute.xlu1 %1777  ;;  %v1776_v35 = vpop.permute.xlu0 %1775  ;;  %4223 = vmatprep.subr.bf16.mxu1 %v4222_v28  ;;  %v2314_v28 = vcombine.high %v2308_v22, %v2308_v22 }
 0x248   : > { %v1783_v36 = vsel %vm1779_vm6, %v1774_v21, %v1776_v35  ;;  %v1784_v37 = vsel %vm1779_vm6, %v1776_v35, %v1778_v34  ;;  %4225 = vmatpush1.bf16.msra.mxu1 %v4224_v31  ;;  %v2313_v21 = vcombine.high %v2307_v14, %v2307_v14  ;;  %v2318_v34 = vrot.slane %v2308_v22, 7  ;;  %v2309_v35 = vld [vmem:[%s4921_s27 + $0x14] sm:$0x77] }
 0x249   : > { %1793 = vst [vmem:[#allocation2 + $0x248] sm:$0x1c] %v1783_v36  ;;  %1794 = vst [vmem:[#allocation2 + $0x250] sm:$0x1c] %v1784_v37  ;;  %2194 = vrot.lane.b32.xlu1 %v2186_v30, %s4814_s24  ;;  %2192 = vrot.lane.b32.xlu0 %v2180_v20, %s4814_s24  ;;  %v2272_v20 = vrot.slane %v2261_v6, 2  ;;  %v2319_v33 = vrot.slane %v2314_v28, 7 }
 0x24a   : > { %v2317_v26 = vrot.slane %v2313_v21, 7  ;;  %v2387_v36 = vld [vmem:[%s4921_s27 + $0x4] sm:$0x77]  ;;  %vm2371_vm6 = vcmask 400384  }
 0x24b   : > { %v1813_v41 = vpop.permute.xlu1 %1812  ;;  %v1811_v42 = vpop.permute.xlu0 %1810 }
 0x24c   : > { %v1823_v43 = vsel %vm1822_vm7, %v1811_v42, %v1813_v41  ;;  %v2393_v42 = vcombine.high %v2387_v36, %v2387_v36 }
 0x24d   : > { %1833 = vst [vmem:[#allocation2 + $0x230] sm:$0xe0] %v1823_v43  ;;  %2198 = vrot.lane.b32.xlu1 %v2187_v38, %s4814_s24  ;;  %2196 = vrot.lane.b32.xlu0 %v2181_v32, %s4814_s24  ;;  %v2350_v43 = vld [vmem:[%s4921_s27 + $0x4] sm:$0x77]  ;;  %s6169_s24 = smov 104  }
 0x24f   : > { %v1817_v48 = vpop.permute.xlu1 %1816  ;;  %v1815_v49 = vpop.permute.xlu0 %1814 }
 0x250   : > { %v1824_v50 = vsel %vm1822_vm7, %v1813_v41, %v1815_v49  ;;  %v1825_v51 = vsel %vm1822_vm7, %v1815_v49, %v1817_v48  ;;  %v2320_v41 = vrot.slane %v2309_v35, 7 }
 0x251   : > { %1834 = vst [vmem:[#allocation2 + $0x238] sm:$0xe0] %v1824_v50  ;;  %1835 = vst [vmem:[#allocation2 + $0x240] sm:$0xe0] %v1825_v51  ;;  %2233 = vrot.lane.b32.xlu1 %v2226_v44, %s4815_s25  ;;  %2231 = vrot.lane.b32.xlu0 %v2225_v45, %s4815_s25  ;;  %v2351_v44 = vld [vmem:[%s4921_s27 + $0xc] sm:$0x77] }
 0x252   : > { %v2357_v49 = vcombine.low %v2351_v44, %v2351_v44  ;;  %v2388_v50 = vld [vmem:[%s4921_s27 + $0xc] sm:$0x77]  ;;  %v5327_v51 = vld [vmem:[%s4921_s27 + $0x4] sm:$0x77] }
 0x253   : > { %v1821_v56 = vpop.permute.xlu1 %1820  ;;  %v1819_v57 = vpop.permute.xlu0 %1818 }
 0x254   : > { %v1826_v58 = vsel %vm1822_vm7, %v1817_v48, %v1819_v57  ;;  %v1827_v59 = vsel %vm1822_vm7, %v1819_v57, %v1821_v56  ;;  %v2397_v48 = vrot.slane %v2393_v42, 1  ;;  %v2356_v56 = vcombine.low %v2350_v43, %v2350_v43 }
 0x255   : > { %1836 = vst [vmem:[#allocation2 + $0x248] sm:$0xe0] %v1826_v58  ;;  %1837 = vst [vmem:[#allocation2 + $0x250] sm:$0xe0] %v1827_v59  ;;  %2237 = vrot.lane.b32.xlu1 %v2228_v52, %s4815_s25  ;;  %2235 = vrot.lane.b32.xlu0 %v2227_v53, %s4815_s25  ;;  %v2398_v57 = vrot.slane %v2388_v50, 1  ;;  %v2440_v58 = vcombine.high %v5327_v51, %v5327_v51  ;;  %v2443_v50 = vrot.slane %v5327_v51, 6 }
 0x256   : > { %v5336_v59 = vld [vmem:[%s4921_s27 + $0x4] sm:$0x77]  ;;  %vm2461_vm7 = vcmask 130048  }
 0x257   : > { %v1850_v0 = vpop.permute.xlu1 %1849  ;;  %v1848_v1 = vpop.permute.xlu0 %1847 }
 0x258   : > { %v1860_v2 = vsel %vm1859_vm9, %v1848_v1, %v1850_v0  ;;  %v2396_v1 = vrot.slane %v2387_v36, 1 }
 0x259   : > { %1870 = vst [vmem:[#allocation2 + $0x258] sm:$0x7] %v1860_v2  ;;  %2241 = vrot.lane.b32.xlu1 %v2230_v60, %s4815_s25  ;;  %2239 = vrot.lane.b32.xlu0 %v2229_v61, %s4815_s25  ;;  %v2483_v2 = vcombine.high %v5336_v59, %v5336_v59  ;;  %s4828_s25 = smov 103  }
 0x25b   : > { %v1854_v7 = vpop.permute.xlu1 %1853  ;;  %v1852_v8 = vpop.permute.xlu0 %1851 }
 0x25c   : > { %v1861_v9 = vsel %vm1859_vm9, %v1850_v0, %v1852_v8  ;;  %v1862_v10 = vsel %vm1859_vm9, %v1852_v8, %v1854_v7  ;;  %v2444_v0 = vrot.slane %v2440_v58, 6  ;;  %v3670_v8 = vld [vmem:[#allocation2 + $0x238] sm:$0xff]  ;;  %v5389_v58 = vld [vmem:[%s4921_s27 + $0x4] sm:$0x77] }
 0x25d   : > { %1871 = vst [vmem:[#allocation2 + $0x260] sm:$0x7] %v1861_v9  ;;  %1872 = vst [vmem:[#allocation2 + $0x268] sm:$0x7] %v1862_v10  ;;  %2276 = vrot.lane.b32.xlu1 %v2269_v3, %s4816_s26  ;;  %2274 = vrot.lane.b32.xlu0 %v2268_v4, %s4816_s26  ;;  %v2435_v3 = vld [vmem:[%s4921_s27 + $0xc] sm:$0x77] }
 0x25e   : > { %v2445_v13 = vrot.slane %v2435_v3, 6 }
 0x25f   : > { %v1858_v15 = vpop.permute.xlu1 %1857  ;;  %v1856_v16 = vpop.permute.xlu0 %1855 }
 0x260   : > { %v1863_v17 = vsel %vm1859_vm9, %v1854_v7, %v1856_v16  ;;  %v1864_v18 = vsel %vm1859_vm9, %v1856_v16, %v1858_v15  ;;  %v5349_v15 = vld [vmem:[%s4921_s27 + $0x4] sm:$0x77]  ;;  %v2478_v16 = vld [vmem:[%s4921_s27 + $0xc] sm:$0x77]  ;;  %vm2504_vm9 = vcmask 121856  }
 0x261   : > { %1873 = vst [vmem:[#allocation2 + $0x270] sm:$0x7] %v1863_v17  ;;  %1874 = vst [vmem:[#allocation2 + $0x278] sm:$0x7] %v1864_v18  ;;  %2280 = vrot.lane.b32.xlu1 %v2271_v11, %s4816_s26  ;;  %2278 = vrot.lane.b32.xlu0 %v2270_v12, %s4816_s26  ;;  %v3669_v11 = vld [vmem:[#allocation2 + $0x230] sm:$0xff]  ;;  %v2487_v12 = vrot.slane %v2483_v2, 3 }
 0x262   : > { %v5353_v17 = vld [vmem:[%s4921_s27 + $0x4] sm:$0x77]  ;;  %v2488_v28 = vrot.slane %v2478_v16, 3  ;;  %v2729_v16 = vld [vmem:[%s4921_s27 + $0xc] sm:$0x77] }
 0x263   : > { %v1893_v23 = vpop.permute.xlu1 %1892  ;;  %v1891_v24 = vpop.permute.xlu0 %1890 }
 0x264   : > { %v1903_v25 = vsel %vm1902_vm10, %v1891_v24, %v1893_v23 }
 0x265   : > { %1913 = vst [vmem:[#allocation2 + $0x258] sm:$0x38] %v1903_v25  ;;  %2284 = vrot.lane.b32.xlu1 %v2273_v19, %s4816_s26  ;;  %2282 = vrot.lane.b32.xlu0 %v2272_v20, %s4816_s26  ;;  %s4829_s26 = smov 102  }
 0x267   : > { %v1897_v29 = vpop.permute.xlu1 %1896  ;;  %v1895_v30 = vpop.permute.xlu0 %1894 }
 0x268   : > { %v1904_v31 = vsel %vm1902_vm10, %v1893_v23, %v1895_v30  ;;  %v1905_v32 = vsel %vm1902_vm10, %v1895_v30, %v1897_v29  ;;  %v3672_v23 = vld [vmem:[#allocation2 + $0x248] sm:$0xff] }
 0x269   : > { %1914 = vst [vmem:[#allocation2 + $0x260] sm:$0x38] %v1904_v31  ;;  %1915 = vst [vmem:[#allocation2 + $0x268] sm:$0x38] %v1905_v32  ;;  %2324 = vrot.lane.b32.xlu1 %v2317_v26, %s4817_s29  ;;  %2322 = vrot.lane.b32.xlu0 %v2316_v27, %s4817_s29  ;;  %v3671_v26 = vld [vmem:[#allocation2 + $0x240] sm:$0xff]  ;;  %v2526_v27 = vcombine.high %v5349_v15, %v5349_v15 }
 0x26a   : > { %v5364_v31 = vld [vmem:[%s4921_s27 + $0x4] sm:$0x77] }
 0x26b   : > { %v1901_v37 = vpop.permute.xlu1 %1900  ;;  %v1899_v38 = vpop.permute.xlu0 %1898 }
 0x26c   : > { %v1906_v39 = vsel %vm1902_vm10, %v1897_v29, %v1899_v38  ;;  %v1907_v40 = vsel %vm1902_vm10, %v1899_v38, %v1901_v37  ;;  %v2563_v29 = vcombine.high %v5353_v17, %v5353_v17  ;;  %v2606_v37 = vcombine.high %v5364_v31, %v5364_v31  ;;  %v2521_v38 = vld [vmem:[%s4921_s27 + $0xc] sm:$0x77] }
 0x26d   : > { %1916 = vst [vmem:[#allocation2 + $0x270] sm:$0x38] %v1906_v39  ;;  %1917 = vst [vmem:[#allocation2 + $0x278] sm:$0x38] %v1907_v40  ;;  %2328 = vrot.lane.b32.xlu1 %v2319_v33, %s4817_s29  ;;  %2326 = vrot.lane.b32.xlu0 %v2318_v34, %s4817_s29  ;;  %v2558_v39 = vld [vmem:[%s4921_s27 + $0xc] sm:$0x77] }
 0x26e   : > { %v2567_v36 = vrot.slane %v2563_v29, 5  ;;  %v2568_v44 = vrot.slane %v2558_v39, 5  ;;  %vm2541_vm10 = vcmask 113664  }
 0x26f   : > { %v1936_v45 = vpop.permute.xlu1 %1935  ;;  %v1934_v46 = vpop.permute.xlu0 %1933 }
 0x270   : > { %v1946_v47 = vsel %vm1945_vm12, %v1934_v46, %v1936_v45 }
 0x271   : > { %1956 = vst [vmem:[#allocation2 + $0x280] ss:$-36 sps:$4 sm:$0xc1] %v1946_v47   ;;  %2361 = vrot.lane.b32.xlu1 %v2350_v43, %s4818_s3  ;;  %2330 = vrot.lane.b32.xlu0 %v2320_v41, %s4817_s29  ;;  %v2610_v43 = vrot.slane %v2606_v37, 2 }
 0x273   : > { %v1940_v52 = vpop.permute.xlu1 %1939  ;;  %v1938_v53 = vpop.permute.xlu0 %1937 }
 0x274   : > { %v1947_v54 = vsel %vm1945_vm12, %v1936_v45, %v1938_v53  ;;  %v1948_v55 = vsel %vm1945_vm12, %v1938_v53, %v1940_v52  ;;  %v2601_v45 = vld [vmem:[%s4921_s27 + $0xc] sm:$0x77] }
 0x275   : > { %1957 = vst [vmem:[#allocation2 + $0x288] ss:$-36 sps:$4 sm:$0xc1] %v1947_v54   ;;  %1958 = vst [vmem:[#allocation2 + $0x290] ss:$-36 sps:$4 sm:$0xc1] %v1948_v55   ;;  %2404 = vrot.lane.b32.xlu1 %v2397_v48, %s4786_s28  ;;  %2363 = vrot.lane.b32.xlu0 %v2357_v49, %s4818_s3 }
 0x277   : > { %v1944_v60 = vpop.permute.xlu1 %1943  ;;  %v1942_v61 = vpop.permute.xlu0 %1941 }
 0x278   : > { %v1949_v62 = vsel %vm1945_vm12, %v1940_v52, %v1942_v61  ;;  %v1950_v63 = vsel %vm1945_vm12, %v1942_v61, %v1944_v60  ;;  %v3674_v6 = vld [vmem:[#allocation2 + $0x258] sm:$0xff]  ;;  %v2611_v52 = vrot.slane %v2601_v45, 2  ;;  %vm2584_vm12 = vcmask 105472  }
 0x279   : > { %1959 = vst [vmem:[#allocation2 + $0x298] ss:$-36 sps:$4 sm:$0xc1] %v1949_v62   ;;  %1960 = vst [vmem:[#allocation2 + $0x2a0] ss:$-36 sps:$4 sm:$0xc1] %v1950_v63   ;;  %2359 = vrot.lane.b32.xlu1 %v2356_v56, %s4818_s3  ;;  %2406 = vrot.lane.b32.xlu0 %v2398_v57, %s4786_s28  ;;  %v4164_v14 = vpack.c.bf16 %v3674_v6, %v3669_v11 }
 0x27a   : > { %v2486_v57 = vrot.slane %v5336_v59, 3  ;;  %v2609_v62 = vrot.slane %v5364_v31, 2  ;;  %v2566_v63 = vrot.slane %v5353_v17, 5  ;;  %v2654_v59 = vcombine.high %v5389_v58, %v5389_v58  ;;  %v5417_v17 = vld [vmem:[%s4921_s27 + $0x4] sm:$0x77] }
 0x27b   : > { %v1984_v4 = vpop.permute.xlu1 %1983  ;;  %v1982_v5 = vpop.permute.xlu0 %1981 }
 0x27c   : > { %v1994_v7 = vsel %vm1993_vm13, %v1982_v5, %v1984_v4  ;;  %v3675_v9 = vld [vmem:[#allocation2 + $0x260] sm:$0xff]  ;;  %v3676_v20 = vld [vmem:[#allocation2 + $0x268] sm:$0xff]  ;;  %v2658_v6 = vrot.slane %v2654_v59, 7 }
 0x27d   : > { %2004 = vst [vmem:[#allocation2 + $0x280] sm:$0xe] %v1994_v7  ;;  %2451 = vrot.lane.b32.xlu1 %v2444_v0, %s4819_s4  ;;  %2402 = vrot.lane.b32.xlu0 %v2396_v1, %s4786_s28  ;;  %v4162_v10 = vpack.c.bf16 %v3675_v9, %v3670_v8  ;;  %v4228_v30 = vpack.c.bf16 %v3676_v20, %v3671_v26  ;;  %v2649_v0 = vld [vmem:[%s4921_s27 + $0xc] sm:$0x77]  ;;  %v5406_v8 = vld [vmem:[%s4921_s27 + $0x4] sm:$0x77] }
 0x27e   : > { %v2659_v5 = vrot.slane %v2649_v0, 7  ;;  %v2692_v7 = vld [vmem:[%s4921_s27 + $0xc] sm:$0x77] }
 0x27f   : > { %v1988_v18 = vpop.permute.xlu1 %1987  ;;  %v1986_v19 = vpop.permute.xlu0 %1985  ;;  %4163 = vmatprep.subr.bf16.mxu0 %v4162_v10 }
 0x280   : > { %v1995_v21 = vsel %vm1993_vm13, %v1984_v4, %v1986_v19  ;;  %v1996_v22 = vsel %vm1993_vm13, %v1986_v19, %v1988_v18  ;;  %4165 = vmatpush1.bf16.msra.mxu0 %v4164_v14  ;;  %v3677_v24 = vld [vmem:[#allocation2 + $0x270] sm:$0xff]  ;;  %v2734_v14 = vcombine.high %v5406_v8, %v5406_v8 }
 0x281   : > { %2005 = vst [vmem:[#allocation2 + $0x288] sm:$0xe] %v1995_v21  ;;  %2006 = vst [vmem:[#allocation2 + $0x290] sm:$0xe] %v1996_v22  ;;  %2494 = vrot.lane.b32.xlu1 %v2487_v12, %s4820_s5  ;;  %2453 = vrot.lane.b32.xlu0 %v2445_v13, %s4819_s4  ;;  %v4226_v25 = vpack.c.bf16 %v3677_v24, %v3672_v23  ;;  %v2698_v13 = vcombine.low %v2692_v7, %v2692_v7  ;;  %v2739_v21 = vrot.slane %v2729_v16, 1 }
 0x282   : > { %v2738_v22 = vrot.slane %v2734_v14, 1  ;;  %v2782_v23 = vcombine.high %v5417_v17, %v5417_v17  ;;  %v2777_v24 = vld [vmem:[%s4921_s27 + $0xc] sm:$0x77] }
 0x283   : > { %v1992_v32 = vpop.permute.xlu1 %1991  ;;  %v1990_v33 = vpop.permute.xlu0 %1989  ;;  %4227 = vmatprep.subr.bf16.mxu1 %v4226_v25  ;;  %v5426_v25 = vld [vmem:[%s4921_s27 + $0x8] sm:$0x77] }
 0x284   : > { %v1997_v34 = vsel %vm1993_vm13, %v1988_v18, %v1990_v33  ;;  %v1998_v35 = vsel %vm1993_vm13, %v1990_v33, %v1992_v32  ;;  %4229 = vmatpush1.bf16.msra.mxu1 %v4228_v30  ;;  %v2787_v30 = vrot.slane %v2777_v24, 6  ;;  %v2786_v31 = vrot.slane %v2782_v23, 6  ;;  %v2819_v33 = vld [vmem:[%s4921_s27 + $0x10] sm:$0x77] }
 0x285   : > { %2007 = vst [vmem:[#allocation2 + $0x298] sm:$0xe] %v1997_v34  ;;  %2008 = vst [vmem:[#allocation2 + $0x2a0] sm:$0xe] %v1998_v35  ;;  %2531 = vrot.lane.b32.xlu1 %v2526_v27, %s4821_s6  ;;  %2496 = vrot.lane.b32.xlu0 %v2488_v28, %s4820_s5  ;;  %v2824_v32 = vcombine.high %v5426_v25, %v5426_v25  ;;  %v2942_v24 = vld [vmem:[%s4921_s27 + $0x10] sm:$0x77] }
 0x286   : > { %vm2627_vm13 = vcmask 97280  }
 0x287   : > { %v2021_v40 = vpop.permute.xlu1 %2020  ;;  %v2019_v41 = vpop.permute.xlu0 %2018  ;;  %v2828_v39 = vrot.slane %v2824_v32, 3  ;;  %v5490_v32 = vld [vmem:[%s4921_s27 + $0x8] sm:$0x77] }
 0x288   : > { %v2030_v42 = vsel %vm554_vm8, %v2019_v41, %v2021_v40 }
 0x289   : > { %2040 = vst [vmem:[#allocation2 + $0x280] sm:$0x70] %v2030_v42  ;;  %2574 = vrot.lane.b32.xlu1 %v2567_v36, %s4822_s7  ;;  %2533 = vrot.lane.b32.xlu0 %v2521_v38, %s4821_s6  ;;  %v2829_v38 = vrot.slane %v2819_v33, 3 }
 0x28b   : > { %v2025_v46 = vpop.permute.xlu1 %2024  ;;  %v2023_v47 = vpop.permute.xlu0 %2022 }
 0x28c   : > { %v2031_v48 = vsel %vm554_vm8, %v2021_v40, %v2023_v47  ;;  %v2032_v49 = vsel %vm554_vm8, %v2023_v47, %v2025_v46 }
 0x28d   : > { %2041 = vst [vmem:[#allocation2 + $0x288] sm:$0x70] %v2031_v48  ;;  %2042 = vst [vmem:[#allocation2 + $0x290] sm:$0x70] %v2032_v49  ;;  %2617 = vrot.lane.b32.xlu1 %v2610_v43, %s4823_s15  ;;  %2576 = vrot.lane.b32.xlu0 %v2568_v44, %s4822_s7  ;;  %v2657_v44 = vrot.slane %v5389_v58, 7  ;;  %v2785_v49 = vrot.slane %v5417_v17, 6 }
 0x28f   : > { %v2029_v53 = vpop.permute.xlu1 %2028  ;;  %v2027_v54 = vpop.permute.xlu0 %2026 }
 0x290   : > { %v2033_v55 = vsel %vm554_vm8, %v2025_v46, %v2027_v54  ;;  %v2034_v56 = vsel %vm554_vm8, %v2027_v54, %v2029_v53  ;;  %vm2120_vm8 = vcmask 449536   ;;  %v5453_v53 = vld [vmem:[%s4921_s27 + $0x8] sm:$0x77] }
 0x291   : > { %2043 = vst [vmem:[#allocation2 + $0x298] sm:$0x70] %v2033_v55  ;;  %2044 = vst [vmem:[#allocation2 + $0x2a0] sm:$0x70] %v2034_v56  ;;  %2449 = vrot.lane.b32.xlu1 %v2443_v50, %s4819_s4  ;;  %2619 = vrot.lane.b32.xlu0 %v2611_v52, %s4823_s15  ;;  %v2737_v50 = vrot.slane %v5406_v8, 1 }
 0x292   : > { %v5450_v52 = vld [vmem:[%s4921_s27 + $0x8] sm:$0x77]  ;;  %v2862_v8 = vld [vmem:[%s4921_s27 + $0x10] sm:$0x77] }
 0x293   : > { %v2063_v51 = vpop.permute.xlu1 %2062  ;;  %v2061_v60 = vpop.permute.xlu0 %2060  ;;  %v2867_v58 = vcombine.high %v5450_v52, %v5450_v52 }
 0x294   : > { %v2073_v61 = vsel %vm2072_vm14, %v2061_v60, %v2063_v51  ;;  %v2904_v60 = vcombine.high %v5453_v53, %v5453_v53 }
 0x295   : > { %2083 = vst [vmem:[#allocation2 + $0x2a8] ss:$-36 sps:$4 sm:$0x83] %v2073_v61   ;;  %2529 = vrot.lane.b32.xlu1 %v5349_v15, %s4821_s6  ;;  %2492 = vrot.lane.b32.xlu0 %v2486_v57, %s4820_s5  ;;  %v2691_v15 = vld [vmem:[%s4921_s27 + $0x4] sm:$0x77] }
 0x296   : > { %v2697_v43 = vcombine.low %v2691_v15, %v2691_v15  ;;  %v5465_v61 = vld [vmem:[%s4921_s27 + $0x8] sm:$0x77] }
 0x297   : > { %v2067_v1 = vpop.permute.xlu1 %2066  ;;  %v2065_v2 = vpop.permute.xlu0 %2064 }
 0x298   : > { %v2074_v3 = vsel %vm2072_vm14, %v2063_v51, %v2065_v2  ;;  %v2075_v4 = vsel %vm2072_vm14, %v2065_v2, %v2067_v1  ;;  %v2827_v51 = vrot.slane %v5426_v25, 3 }
 0x299   : > { %2084 = vst [vmem:[#allocation2 + $0x2b0] ss:$-36 sps:$4 sm:$0x83] %v2074_v3   ;;  %2085 = vst [vmem:[#allocation2 + $0x2b8] ss:$-36 sps:$4 sm:$0x83] %v2075_v4   ;;  %2615 = vrot.lane.b32.xlu1 %v2609_v62, %s4823_s15  ;;  %2572 = vrot.lane.b32.xlu0 %v2566_v63, %s4822_s7 }
 0x29b   : > { %v2071_v9 = vpop.permute.xlu1 %2070  ;;  %v2069_v10 = vpop.permute.xlu0 %2068 }
 0x29c   : > { %v2076_v11 = vsel %vm2072_vm14, %v2067_v1, %v2069_v10  ;;  %v2077_v12 = vsel %vm2072_vm14, %v2069_v10, %v2071_v9  ;;  %v3679_v4 = vld [vmem:[#allocation2 + $0x280] sm:$0xff]  ;;  %v2899_v9 = vld [vmem:[%s4921_s27 + $0x10] sm:$0x77]  ;;  %v5475_v10 = vld [vmem:[%s4921_s27 + $0x8] sm:$0x77] }
 0x29d   : > { %2086 = vst [vmem:[#allocation2 + $0x2c0] ss:$-36 sps:$4 sm:$0x83] %v2076_v11   ;;  %2087 = vst [vmem:[#allocation2 + $0x2c8] ss:$-36 sps:$4 sm:$0x83] %v2077_v12   ;;  %2667 = vrot.lane.b32.xlu1 %v2659_v5, %s4824_s18  ;;  %2665 = vrot.lane.b32.xlu0 %v2658_v6, %s4824_s18  ;;  %v2947_v6 = vcombine.high %v5465_v61, %v5465_v61 }
 0x29e   : > { %v2908_v5 = vrot.slane %v2904_v60, 5  ;;  %v5515_v60 = vld [vmem:[%s4921_s27 + $0x8] sm:$0x77] }
 0x29f   : > { %v2111_v18 = vpop.permute.xlu1 %2110  ;;  %v2109_v19 = vpop.permute.xlu0 %2108 }
 0x2a0   : > { %v2121_v20 = vsel %vm2120_vm8, %v2109_v19, %v2111_v18  ;;  %v3680_v1 = vld [vmem:[#allocation2 + $0x288] sm:$0xff]  ;;  %v3681_v19 = vld [vmem:[#allocation2 + $0x290] sm:$0xff] }
 0x2a1   : > { %2131 = vst [vmem:[#allocation2 + $0x2a8] sm:$0x1c] %v2121_v20  ;;  %2704 = vrot.lane.b32.xlu1 %v2698_v13, %s6175_s8  ;;  %2702 = vrot.lane.b32.xlu0 %v2691_v15, %s6175_s8  ;;  %v2951_v20 = vrot.slane %v2947_v6, 2 }
 0x2a3   : > { %v2115_v26 = vpop.permute.xlu1 %2114  ;;  %v2113_v27 = vpop.permute.xlu0 %2112 }
 0x2a4   : > { %v2122_v28 = vsel %vm2120_vm8, %v2111_v18, %v2113_v27  ;;  %v2123_v29 = vsel %vm2120_vm8, %v2113_v27, %v2115_v26  ;;  %v3682_v16 = vld [vmem:[#allocation2 + $0x298] sm:$0xff] }
 0x2a5   : > { %2132 = vst [vmem:[#allocation2 + $0x2b0] sm:$0x1c] %v2122_v28  ;;  %2133 = vst [vmem:[#allocation2 + $0x2b8] sm:$0x1c] %v2123_v29  ;;  %2747 = vrot.lane.b32.xlu1 %v2739_v21, %s6173_s23  ;;  %2745 = vrot.lane.b32.xlu0 %v2738_v22, %s6173_s23  ;;  %v2909_v21 = vrot.slane %v2899_v9, 5  ;;  %v2995_v22 = vcombine.high %v5475_v10, %v5475_v10 }
 0x2a6   : > { %v3118_v9 = vld [vmem:[%s4921_s27 + $0x10] sm:$0x77] }
 0x2a7   : > { %v2119_v34 = vpop.permute.xlu1 %2118  ;;  %v2117_v35 = vpop.permute.xlu0 %2116  ;;  %v2999_v29 = vrot.slane %v2995_v22, 7 }
 0x2a8   : > { %v2124_v36 = vsel %vm2120_vm8, %v2115_v26, %v2117_v35  ;;  %v2125_v37 = vsel %vm2120_vm8, %v2117_v35, %v2119_v34  ;;  %vm6203_vm8 = vcmask 89088  }
 0x2a9   : > { %2134 = vst [vmem:[#allocation2 + $0x2c0] sm:$0x1c] %v2124_v36  ;;  %2135 = vst [vmem:[#allocation2 + $0x2c8] sm:$0x1c] %v2125_v37  ;;  %2795 = vrot.lane.b32.xlu1 %v2787_v30, %s6171_s16  ;;  %2793 = vrot.lane.b32.xlu0 %v2786_v31, %s6171_s16  ;;  %v2952_v30 = vrot.slane %v2942_v24, 2  ;;  %v3075_v37 = vcombine.high %v5490_v32, %v5490_v32 }
 0x2aa   : > { %v2990_v31 = vld [vmem:[%s4921_s27 + $0x10] sm:$0x77] }
 0x2ab   : > { %v2154_v40 = vpop.permute.xlu1 %2153  ;;  %v2152_v41 = vpop.permute.xlu0 %2151  ;;  %v3000_v36 = vrot.slane %v2990_v31, 7  ;;  %v3203_v31 = vld [vmem:[%s4921_s27 + $0x10] sm:$0x77] }
 0x2ac   : > { %v2164_v42 = vsel %vm2163_vm15, %v2152_v41, %v2154_v40 }
 0x2ad   : > { %2174 = vst [vmem:[#allocation2 + $0x2a8] sm:$0xe0] %v2164_v42  ;;  %2837 = vrot.lane.b32.xlu1 %v2829_v38, %s6169_s24  ;;  %2835 = vrot.lane.b32.xlu0 %v2828_v39, %s6169_s24  ;;  %v3032_v38 = vld [vmem:[%s4921_s27 + $0x8] sm:$0x77]  ;;  %v3033_v39 = vld [vmem:[%s4921_s27 + $0x10] sm:$0x77] }
 0x2af   : > { %v2158_v45 = vpop.permute.xlu1 %2157  ;;  %v2156_v46 = vpop.permute.xlu0 %2155 }
 0x2b0   : > { %v2165_v47 = vsel %vm2163_vm15, %v2154_v40, %v2156_v46  ;;  %v2166_v48 = vsel %vm2163_vm15, %v2156_v46, %v2158_v45  ;;  %v3070_v46 = vld [vmem:[%s4921_s27 + $0x10] sm:$0x77] }
 0x2b1   : > { %2175 = vst [vmem:[#allocation2 + $0x2b0] sm:$0xe0] %v2165_v47  ;;  %2176 = vst [vmem:[#allocation2 + $0x2b8] sm:$0xe0] %v2166_v48  ;;  %2700 = vrot.lane.b32.xlu1 %v2697_v43, %s6175_s8  ;;  %2663 = vrot.lane.b32.xlu0 %v2657_v44, %s4824_s18  ;;  %v3079_v44 = vrot.slane %v3075_v37, 1  ;;  %s6179_s8 = smov 98  }
 0x2b3   : > { %v2162_v54 = vpop.permute.xlu1 %2161  ;;  %v2160_v55 = vpop.permute.xlu0 %2159 }
 0x2b4   : > { %v2167_v56 = vsel %vm2163_vm15, %v2158_v45, %v2160_v55  ;;  %v2168_v57 = vsel %vm2163_vm15, %v2160_v55, %v2162_v54  ;;  %v3684_v59 = vld [vmem:[#allocation2 + $0x2a8] sm:$0xff]  ;;  %v3039_v45 = vcombine.low %v3033_v39, %v3033_v39  ;;  %v3080_v54 = vrot.slane %v3070_v46, 1 }
 0x2b5   : > { %2177 = vst [vmem:[#allocation2 + $0x2c0] sm:$0xe0] %v2167_v56  ;;  %2178 = vst [vmem:[#allocation2 + $0x2c8] sm:$0xe0] %v2168_v57  ;;  %2791 = vrot.lane.b32.xlu1 %v2785_v49, %s6171_s16  ;;  %2743 = vrot.lane.b32.xlu0 %v2737_v50, %s6173_s23  ;;  %v4168_v7 = vpack.c.bf16 %v3684_v59, %v3679_v4  ;;  %s6183_s16 = smov 100   ;;  %s6181_s23 = smov 99  }
 0x2b7   : > { %v2191_v62 = vpop.permute.xlu1 %2190  ;;  %v2189_v63 = vpop.permute.xlu0 %2188 }
 0x2b8   : > { %v2201_v0 = vsel %vm2200_vm0, %v2189_v63, %v2191_v62  ;;  %v3685_v2 = vld [vmem:[#allocation2 + $0x2b0] sm:$0xff]  ;;  %v3686_v13 = vld [vmem:[#allocation2 + $0x2b8] sm:$0xff] }
 0x2b9   : > { %2211 = vst [vmem:[#allocation2 + $0x2d0] sm:$0x7] %v2201_v0  ;;  %2872 = vrot.lane.b32.xlu1 %v2867_v58, %s4828_s25  ;;  %2833 = vrot.lane.b32.xlu0 %v2827_v51, %s6169_s24  ;;  %v4166_v3 = vpack.c.bf16 %v3685_v2, %v3680_v1  ;;  %v4232_v23 = vpack.c.bf16 %v3686_v13, %v3681_v19  ;;  %s6177_s24 = smov 101   ;;  %v2950_v58 = vrot.slane %v5465_v61, 2  ;;  %v2907_v51 = vrot.slane %v5453_v53, 5 }
 0x2ba   : > { %v3038_v1 = vcombine.low %v3032_v38, %v3032_v38  ;;  %v3123_v53 = vcombine.high %v5515_v60, %v5515_v60  ;;  %v5525_v61 = vld [vmem:[%s4921_s27 + $0x8] sm:$0x77] }
 0x2bb   : > { %v2195_v11 = vpop.permute.xlu1 %2194  ;;  %v2193_v12 = vpop.permute.xlu0 %2192  ;;  %4167 = vmatprep.subr.bf16.mxu0 %v4166_v3 }
 0x2bc   : > { %v2202_v14 = vsel %vm2200_vm0, %v2191_v62, %v2193_v12  ;;  %v2203_v15 = vsel %vm2200_vm0, %v2193_v12, %v2195_v11  ;;  %4169 = vmatpush1.bf16.msra.mxu0 %v4168_v7  ;;  %v3687_v17 = vld [vmem:[#allocation2 + $0x2c0] sm:$0xff]  ;;  %v3127_v6 = vrot.slane %v3123_v53, 6  ;;  %v3078_v7 = vrot.slane %v5490_v32, 1  ;;  %v3240_v32 = vld [vmem:[%s4921_s27 + $0x10] sm:$0x77] }
 0x2bd   : > { %2212 = vst [vmem:[#allocation2 + $0x2d8] sm:$0x7] %v2202_v14  ;;  %2213 = vst [vmem:[#allocation2 + $0x2e0] sm:$0x7] %v2203_v15  ;;  %2915 = vrot.lane.b32.xlu1 %v2908_v5, %s4829_s26  ;;  %2874 = vrot.lane.b32.xlu0 %v2862_v8, %s4828_s25  ;;  %v4230_v18 = vpack.c.bf16 %v3687_v17, %v3682_v16  ;;  %v3166_v8 = vcombine.high %v5525_v61, %v5525_v61  ;;  %v3128_v14 = vrot.slane %v3118_v9, 6 }
 0x2be   : > { %v5539_v15 = vld [vmem:[%s4921_s27 + $0x8] sm:$0x77]  ;;  %v3161_v16 = vld [vmem:[%s4921_s27 + $0x10] sm:$0x77]  ;;  %v3250_v37 = vrot.slane %v3240_v32, 5 }
 0x2bf   : > { %v2199_v25 = vpop.permute.xlu1 %2198  ;;  %v2197_v26 = vpop.permute.xlu0 %2196  ;;  %4231 = vmatprep.subr.bf16.mxu1 %v4230_v18  ;;  %v3170_v13 = vrot.slane %v3166_v8, 3  ;;  %v5543_v17 = vld [vmem:[%s4921_s27 + $0x8] sm:$0x77]  ;;  %v3208_v22 = vcombine.high %v5539_v15, %v5539_v15 }
 0x2c0   : > { %v2204_v27 = vsel %vm2200_vm0, %v2195_v11, %v2197_v26  ;;  %v2205_v28 = vsel %vm2200_vm0, %v2197_v26, %v2199_v25  ;;  %4233 = vmatpush1.bf16.msra.mxu1 %v4232_v23  ;;  %v3171_v23 = vrot.slane %v3161_v16, 3  ;;  %v3245_v24 = vcombine.high %v5543_v17, %v5543_v17  ;;  %v5554_v25 = vld [vmem:[%s4921_s27 + $0x8] sm:$0x77] }
 0x2c1   : > { %2214 = vst [vmem:[#allocation2 + $0x2e8] sm:$0x7] %v2204_v27  ;;  %2215 = vst [vmem:[#allocation2 + $0x2f0] sm:$0x7] %v2205_v28  ;;  %2958 = vrot.lane.b32.xlu1 %v2951_v20, %s6177_s24  ;;  %2917 = vrot.lane.b32.xlu0 %v2909_v21, %s4829_s26  ;;  %vm6202_vm0 = vcmask 80896  }
 0x2c3   : > { %v2234_v33 = vpop.permute.xlu1 %2233  ;;  %v2232_v34 = vpop.permute.xlu0 %2231 }
 0x2c4   : > { %v2244_v35 = vsel %vm2243_vm2, %v2232_v34, %v2234_v33 }
 0x2c5   : > { %2254 = vst [vmem:[#allocation2 + $0x2d0] sm:$0x38] %v2244_v35  ;;  %3006 = vrot.lane.b32.xlu1 %v2999_v29, %s6183_s16  ;;  %2960 = vrot.lane.b32.xlu0 %v2952_v30, %s6177_s24  ;;  %v3249_v29 = vrot.slane %v3245_v24, 5  ;;  %v3288_v30 = vcombine.high %v5554_v25, %v5554_v25 }
 0x2c7   : > { %v2238_v40 = vpop.permute.xlu1 %2237  ;;  %v2236_v41 = vpop.permute.xlu0 %2235 }
 0x2c8   : > { %v2245_v42 = vsel %vm2243_vm2, %v2234_v33, %v2236_v41  ;;  %v2246_v43 = vsel %vm2243_vm2, %v2236_v41, %v2238_v40 }
 0x2c9   : > { %2255 = vst [vmem:[#allocation2 + $0x2d8] sm:$0x38] %v2245_v42  ;;  %2256 = vst [vmem:[#allocation2 + $0x2e0] sm:$0x38] %v2246_v43  ;;  %3043 = vrot.lane.b32.xlu1 %v3032_v38, %s6181_s23  ;;  %3008 = vrot.lane.b32.xlu0 %v3000_v36, %s6183_s16  ;;  %v3292_v36 = vrot.slane %v3288_v30, 2  ;;  %v3126_v43 = vrot.slane %v5515_v60, 6 }
 0x2ca   : > { %v3283_v38 = vld [vmem:[%s4921_s27 + $0x10] sm:$0x77]  ;;  %v3248_v60 = vrot.slane %v5543_v17, 5 }
 0x2cb   : > { %v2242_v47 = vpop.permute.xlu1 %2241  ;;  %v2240_v48 = vpop.permute.xlu0 %2239  ;;  %v3502_v30 = vld [vmem:[%s4921_s27 + $0x10] sm:$0x77] }
 0x2cc   : > { %v2247_v49 = vsel %vm2243_vm2, %v2238_v40, %v2240_v48  ;;  %v2248_v50 = vsel %vm2243_vm2, %v2240_v48, %v2242_v47  ;;  %v3169_v48 = vrot.slane %v5525_v61, 3  ;;  %vm6201_vm2 = vcmask 72704  }
 0x2cd   : > { %2257 = vst [vmem:[#allocation2 + $0x2e8] sm:$0x38] %v2247_v49  ;;  %2258 = vst [vmem:[#allocation2 + $0x2f0] sm:$0x38] %v2248_v50  ;;  %3086 = vrot.lane.b32.xlu1 %v3079_v44, %s6179_s8  ;;  %3045 = vrot.lane.b32.xlu0 %v3039_v45, %s6181_s23  ;;  %v3293_v44 = vrot.slane %v3283_v38, 2 }
 0x2ce   : > { %v5588_v49 = vld [vmem:[%s4921_s27 + $0x8] sm:$0x77] }
 0x2cf   : > { %v2277_v55 = vpop.permute.xlu1 %2276  ;;  %v2275_v56 = vpop.permute.xlu0 %2274 }
 0x2d0   : > { %v2287_v57 = vsel %vm2286_vm3, %v2275_v56, %v2277_v55 }
 0x2d1   : > { %2297 = vst [vmem:[#allocation2 + $0x2f8] ss:$-36 sps:$4 sm:$0xc1] %v2287_v57   ;;  %2870 = vrot.lane.b32.xlu1 %v5450_v52, %s4828_s25  ;;  %3088 = vrot.lane.b32.xlu0 %v3080_v54, %s6179_s8  ;;  %v2998_v52 = vrot.slane %v5475_v10, 7 }
 0x2d3   : > { %v2281_v62 = vpop.permute.xlu1 %2280  ;;  %v2279_v63 = vpop.permute.xlu0 %2278 }
 0x2d4   : > { %v2288_v59 = vsel %vm2286_vm3, %v2277_v55, %v2279_v63  ;;  %v2289_v0 = vsel %vm2286_vm3, %v2279_v63, %v2281_v62  ;;  %v3331_v63 = vld [vmem:[%s4921_s27 + $0x10] sm:$0x77] }
 0x2d5   : > { %2298 = vst [vmem:[#allocation2 + $0x300] ss:$-36 sps:$4 sm:$0xc1] %v2288_v59   ;;  %2299 = vst [vmem:[#allocation2 + $0x308] ss:$-36 sps:$4 sm:$0xc1] %v2289_v0   ;;  %2956 = vrot.lane.b32.xlu1 %v2950_v58, %s6177_s24  ;;  %2913 = vrot.lane.b32.xlu0 %v2907_v51, %s4829_s26 }
 0x2d6   : > { %s6193_s24 = smov 97   ;;  %v3291_v51 = vrot.slane %v5554_v25, 2 }
 0x2d7   : > { %v2285_v2 = vpop.permute.xlu1 %2284  ;;  %v2283_v3 = vpop.permute.xlu0 %2282 }
 0x2d8   : > { %v2290_v4 = vsel %vm2286_vm3, %v2281_v62, %v2283_v3  ;;  %v2291_v5 = vsel %vm2286_vm3, %v2283_v3, %v2285_v2  ;;  %v3336_v62 = vcombine.high %v5588_v49, %v5588_v49  ;;  %v3341_v2 = vrot.slane %v3331_v63, 7 }
 0x2d9   : > { %2300 = vst [vmem:[#allocation2 + $0x310] ss:$-36 sps:$4 sm:$0xc1] %v2290_v4   ;;  %2301 = vst [vmem:[#allocation2 + $0x318] ss:$-36 sps:$4 sm:$0xc1] %v2291_v5   ;;  %3041 = vrot.lane.b32.xlu1 %v3038_v1, %s6181_s23  ;;  %3004 = vrot.lane.b32.xlu0 %v2998_v52, %s6183_s16 }
 0x2da   : > { %s6187_s23 = smov 63   ;;  %s6185_s16 = smov 62   ;;  %v3689_v52 = vld [vmem:[#allocation2 + $0x2d0] sm:$0xff]  ;;  %v3340_v3 = vrot.slane %v3336_v62, 7  ;;  %v5614_v5 = vld [vmem:[%s4921_s27 + $0x8] sm:$0x77] }
 0x2db   : > { %v2325_v10 = vpop.permute.xlu1 %2324  ;;  %v2323_v11 = vpop.permute.xlu0 %2322  ;;  %v3374_v4 = vld [vmem:[%s4921_s27 + $0x10] sm:$0x77]  ;;  %vm6199_vm3 = vcmask 850944  }
 0x2dc   : > { %v2335_v12 = vsel %vm2334_vm5, %v2323_v11, %v2325_v10  ;;  %v3690_v56 = vld [vmem:[#allocation2 + $0x2d8] sm:$0xff]  ;;  %v3380_v9 = vcombine.low %v3374_v4, %v3374_v4  ;;  %v3373_v11 = vld [vmem:[%s4921_s27 + $0x8] sm:$0x77] }
 0x2dd   : > { %2345 = vst [vmem:[#allocation2 + $0x2f8] sm:$0xe] %v2335_v12  ;;  %3134 = vrot.lane.b32.xlu1 %v3127_v6, %s6193_s24  ;;  %3084 = vrot.lane.b32.xlu0 %v3078_v7, %s6179_s8  ;;  %s6189_s8 = smov 64   ;;  %v3411_v12 = vld [vmem:[%s4921_s27 + $0x10] sm:$0x77] }
 0x2de   : > { %v3421_v17 = vrot.slane %v3411_v12, 1 }
 0x2df   : > { %v2329_v18 = vpop.permute.xlu1 %2328  ;;  %v2327_v19 = vpop.permute.xlu0 %2326 }
 0x2e0   : > { %v2336_v20 = vsel %vm2334_vm5, %v2325_v10, %v2327_v19  ;;  %v2337_v21 = vsel %vm2334_vm5, %v2327_v19, %v2329_v18  ;;  %v3416_v10 = vcombine.high %v5614_v5, %v5614_v5 }
 0x2e1   : > { %2346 = vst [vmem:[#allocation2 + $0x300] sm:$0xe] %v2336_v20  ;;  %2347 = vst [vmem:[#allocation2 + $0x308] sm:$0xe] %v2337_v21  ;;  %3177 = vrot.lane.b32.xlu1 %v3170_v13, %s6191_s30  ;;  %3136 = vrot.lane.b32.xlu0 %v3128_v14, %s6193_s24  ;;  %v5627_v13 = vld [vmem:[%s4921_s27 + $0x8] sm:$0x77] }
 0x2e2   : > { %v3464_v19 = vcombine.high %v5627_v13, %v5627_v13  ;;  %v3459_v20 = vld [vmem:[%s4921_s27 + $0x10] sm:$0x77]  ;;  %v5639_v21 = vld [vmem:[%s4921_s27 + $0x8] sm:$0x77] }
 0x2e3   : > { %v2362_v26 = vpop.permute.xlu1 %2361  ;;  %v5556_v27 = vpop.permute.xlu0 %2330 }
 0x2e4   : > { %v2338_v28 = vsel %vm2334_vm5, %v2329_v18, %v5556_v27  ;;  %v3420_v18 = vrot.slane %v3416_v10, 1  ;;  %v2352_v10 = vld [vmem:[%s4921_s27 + $0x14] sm:$0x77] }
 0x2e5   : > { %2348 = vst [vmem:[#allocation2 + $0x310] sm:$0xe] %v2338_v28  ;;  %3213 = vrot.lane.b32.xlu1 %v3208_v22, %s6189_s8  ;;  %3179 = vrot.lane.b32.xlu0 %v3171_v23, %s6191_s30  ;;  %v3468_v28 = vrot.slane %v3464_v19, 6 }
 0x2e7   : > { %v2405_v33 = vpop.permute.xlu1 %2404  ;;  %v5566_v34 = vpop.permute.xlu0 %2363 }
 0x2e8   : > { %v2373_v35 = vsel %vm2371_vm6, %v2362_v26, %v5566_v34 }
 0x2e9   : > { %2383 = vst [vmem:[#allocation2 + $0x300] sm:$0x70] %v2373_v35  ;;  %3256 = vrot.lane.b32.xlu1 %v3249_v29, %s6187_s23  ;;  %3215 = vrot.lane.b32.xlu0 %v3203_v31, %s6189_s8  ;;  %v3507_v29 = vcombine.high %v5639_v21, %v5639_v21 }
 0x2eb   : > { %v2360_v39 = vpop.permute.xlu1 %2359  ;;  %v5573_v40 = vpop.permute.xlu0 %2406 }
 0x2ec   : > { %v2372_v41 = vsel %vm2371_vm6, %v2360_v39, %v2362_v26  ;;  %v2415_v42 = vsel %vm939_vm1, %v2405_v33, %v5573_v40  ;;  %v3469_v26 = vrot.slane %v3459_v20, 6 }
 0x2ed   : > { %2382 = vst [vmem:[#allocation2 + $0x2f8] sm:$0x70] %v2372_v41  ;;  %2425 = vst [vmem:[#allocation2 + $0x328] ss:$-36 sps:$4 sm:$0x83] %v2415_v42   ;;  %3299 = vrot.lane.b32.xlu1 %v3292_v36, %s6185_s16  ;;  %3258 = vrot.lane.b32.xlu0 %v3250_v37, %s6187_s23  ;;  %v3512_v36 = vrot.slane %v3502_v30, 3 }
 0x2ee   : > { %v3511_v37 = vrot.slane %v3507_v29, 3 }
 0x2ef   : > { %v5581_v45 = vpop.permute.xlu1 %2451  ;;  %v2403_v46 = vpop.permute.xlu0 %2402 }
 0x2f0   : > { %v2414_v47 = vsel %vm939_vm1, %v2403_v46, %v2405_v33 }
 0x2f1   : > { %2424 = vst [vmem:[#allocation2 + $0x320] ss:$-36 sps:$4 sm:$0x83] %v2414_v47   ;;  %3132 = vrot.lane.b32.xlu1 %v3126_v43, %s6193_s24  ;;  %3301 = vrot.lane.b32.xlu0 %v3293_v44, %s6185_s16  ;;  %s6195_s24 = smov 57   ;;  %v3339_v47 = vrot.slane %v5588_v49, 7  ;;  %v3467_v49 = vrot.slane %v5627_v13, 6 }
 0x2f3   : > { %v5590_v50 = vpop.permute.xlu1 %2494  ;;  %v5592_v54 = vpop.permute.xlu0 %2453 }
 0x2f4   : > { %v2463_v55 = vsel %vm2461_vm7, %v5581_v45, %v5592_v54  ;;  %v3695_v57 = vld [vmem:[#allocation2 + $0x300] sm:$0xff] }
 0x2f5   : > { %2473 = vst [vmem:[#allocation2 + $0x328] sm:$0x1c] %v2463_v55  ;;  %3211 = vrot.lane.b32.xlu1 %v5539_v15, %s6189_s8  ;;  %3175 = vrot.lane.b32.xlu0 %v3169_v48, %s6191_s30  ;;  %v4170_v58 = vpack.c.bf16 %v3695_v57, %v3690_v56  ;;  %s4840_s8 = smov 59   ;;  %s6197_s30 = smov 58   ;;  %v3580_v48 = vlaneseq  ;;  %v3419_v57 = vrot.slane %v5614_v5, 1 }
 0x2f7   : > { %v2532_v59 = vpop.permute.xlu1 %2531  ;;  %v5605_v0 = vpop.permute.xlu0 %2496  ;;  %4171 = vmatprep.subr.bf16.mxu0 %v4170_v58  ;;  %vm3582_vm15 = vcmp.lt.s32.totalorder %v3580_v48, 640  ;;  %v4843_v58 = vmov 1.0  }
 0x2f8   : > { %v2506_v1 = vsel %vm2504_vm9, %v5590_v50, %v5605_v0  ;;  %v3694_v53 = vld [vmem:[#allocation2 + $0x2f8] sm:$0xff]  ;;  %3585 = vst.msk [vmem:[#allocation2 + $0x4b3] ss:$8 sm:$0xf] %vm3582_vm15, %v4843_v58 }
 0x2f9   : > { %2516 = vst [vmem:[#allocation2 + $0x328] sm:$0xe0] %v2506_v1  ;;  %3297 = vrot.lane.b32.xlu1 %v3291_v51, %s6185_s16  ;;  %3254 = vrot.lane.b32.xlu0 %v3248_v60, %s6187_s23  ;;  %v4172_v61 = vpack.c.bf16 %v3694_v53, %v3689_v52  ;;  %s4838_s16 = smov 61   ;;  %s4839_s23 = smov 60   ;;  %v4844_v51 = vmov 0.0  }
 0x2fa   : > { %3588 = vst [vmem:[#allocation2 + $0x4b8] sm:$0xf0] %v4844_v51  ;;  %3593 = vst [vmem:[#allocation2 + $0x4e0] sm:$0xff] %v4844_v51  ;;  %v3544_v60 = vld [vmem:[%s4921_s27 + $0x8] sm:$0x77] }
 0x2fb   : > { %v2575_v6 = vpop.permute.xlu1 %2574  ;;  %v5616_v7 = vpop.permute.xlu0 %2533  ;;  %4173 = vmatpush1.bf16.msra.mxu0 %v4172_v61  ;;  %3586 = vst.msk [vmem:[#allocation2 + $0x4b3] ss:$8 sm:$0x10] %vm3582_vm15, %v4843_v58  ;;  %3587 = vst [vmem:[#allocation2 + $0x4b0] sm:$0xf0] %v4844_v51  ;;  %v3550_v61 = vcombine.high %v3544_v60, %v3544_v60  ;;  %vm2882_vm15 = vcmask 842752  }
 0x2fc   : > { %v2543_v8 = vsel %vm2541_vm10, %v2532_v59, %v5616_v7  ;;  %3589 = vst [vmem:[#allocation2 + $0x4c0] sm:$0xf0] %v4844_v51  ;;  %3590 = vst [vmem:[#allocation2 + $0x4c8] sm:$0xf0] %v4844_v51 }
 0x2fd   : > { %2553 = vst [vmem:[#allocation2 + $0x350] sm:$0x7] %v2543_v8  ;;  %3349 = vrot.lane.b32.xlu1 %v3341_v2, %s4838_s16  ;;  %3347 = vrot.lane.b32.xlu0 %v3340_v3, %s4838_s16  ;;  %3591 = vst [vmem:[#allocation2 + $0x4d0] sm:$0xf0] %v4844_v51  ;;  %v3510_v2 = vrot.slane %v5639_v21, 3 }
 0x2ff   : > { %v2618_v14 = vpop.permute.xlu1 %2617  ;;  %v5629_v15 = vpop.permute.xlu0 %2576 }
 0x300   : > { %v2586_v16 = vsel %vm2584_vm12, %v2575_v6, %v5629_v15  ;;  %v3700_v43 = vld [vmem:[#allocation2 + $0x328] sm:$0xff] }
 0x301   : > { %2596 = vst [vmem:[#allocation2 + $0x350] sm:$0x38] %v2586_v16  ;;  %3386 = vrot.lane.b32.xlu1 %v3380_v9, %s4839_s23  ;;  %3384 = vrot.lane.b32.xlu0 %v3373_v11, %s4839_s23  ;;  %v3545_v9 = vld [vmem:[%s4921_s27 + $0x10] sm:$0x77] }
 0x303   : > { %v2450_v22 = vpop.permute.xlu1 %2449  ;;  %v5641_v23 = vpop.permute.xlu0 %2619 }
 0x304   : > { %v2462_v24 = vsel %vm2461_vm7, %v2450_v22, %v5581_v45  ;;  %v2629_v25 = vsel %vm2627_vm13, %v2618_v14, %v5641_v23  ;;  %v3379_v45 = vcombine.low %v3373_v11, %v3373_v11 }
 0x305   : > { %2472 = vst [vmem:[#allocation2 + $0x320] sm:$0x1c] %v2462_v24  ;;  %2639 = vst [vmem:[#allocation2 + $0x378] ss:$-36 sps:$4 sm:$0xc1] %v2629_v25   ;;  %3429 = vrot.lane.b32.xlu1 %v3421_v17, %s4840_s8  ;;  %3427 = vrot.lane.b32.xlu0 %v3420_v18, %s4840_s8  ;;  %v5706_v18 = vld [vmem:[%s6167_s1 + $0x8] sm:$0xff] }
 0x306   : > { %v2389_v17 = vld [vmem:[%s4921_s27 + $0x14] sm:$0x77]  ;;  %3823 = vmatprep.mubr.f32.mxu0 %v5706_v18  ;;  %3894 = vmatprep.mubr.f32.mxu1 %v5706_v18 }
 0x307   : > { %v2530_v31 = vpop.permute.xlu1 %2529  ;;  %v2493_v32 = vpop.permute.xlu0 %2492  ;;  %v2400_v22 = vrot.slane %v2389_v17, 1  ;;  %v2395_v24 = vcombine.high %v2389_v17, %v2389_v17 }
 0x308   : > { %v2542_v33 = vsel %vm2541_vm10, %v2530_v31, %v2532_v59  ;;  %v2505_v35 = vsel %vm2504_vm9, %v2493_v32, %v5590_v50  ;;  %v4659_v31 = vld [vmem:[%s4921_s27 + $0xc] sm:$0x77] }
 0x309   : > { %2552 = vst [vmem:[#allocation2 + $0x348] sm:$0x7] %v2542_v33  ;;  %2515 = vst [vmem:[#allocation2 + $0x320] sm:$0xe0] %v2505_v35  ;;  %3477 = vrot.lane.b32.xlu1 %v3469_v26, %s6197_s30  ;;  %3475 = vrot.lane.b32.xlu0 %v3468_v28, %s6197_s30  ;;  %v2401_v30 = vrot.slane %v2395_v24, 1  ;;  %v2394_v32 = vcombine.high %v4659_v31, %v4659_v31 }
 0x30a   : > { %v2436_v33 = vld [vmem:[%s4921_s27 + $0x14] sm:$0x77] }
 0x30b   : > { %v2616_v38 = vpop.permute.xlu1 %2615  ;;  %v2573_v39 = vpop.permute.xlu0 %2572 }
 0x30c   : > { %v2628_v41 = vsel %vm2627_vm13, %v2616_v38, %v2618_v14  ;;  %v2585_v42 = vsel %vm2584_vm12, %v2573_v39, %v2575_v6  ;;  %v3705_v44 = vld [vmem:[#allocation2 + $0x350] sm:$0xff]  ;;  %v2358_v14 = vcombine.low %v2352_v10, %v2352_v10 }
 0x30d   : > { %2638 = vst [vmem:[#allocation2 + $0x370] ss:$-36 sps:$4 sm:$0xc1] %v2628_v41   ;;  %2595 = vst [vmem:[#allocation2 + $0x348] sm:$0x38] %v2585_v42  ;;  %3520 = vrot.lane.b32.xlu1 %v3512_v36, %s6195_s24  ;;  %3518 = vrot.lane.b32.xlu0 %v3511_v37, %s6195_s24  ;;  %v4174_v46 = vpack.c.bf16 %v3705_v44, %v3700_v43  ;;  %v2447_v44 = vrot.slane %v2436_v33, 6 }
 0x30e   : > { %v4658_v6 = vld [vmem:[%s4921_s27 + $0x14] sm:$0x77]  ;;  %v4660_v42 = vld [vmem:[%s4921_s27 + $0xc] sm:$0x77] }
 0x30f   : > { %v5662_v50 = vpop.permute.xlu1 %2667  ;;  %v5664_v55 = vpop.permute.xlu0 %2665  ;;  %4175 = vmatprep.subr.bf16.mxu0 %v4174_v46  ;;  %v2315_v8 = vcombine.high %v4658_v6, %v4658_v6  ;;  %v2442_v46 = vcombine.high %v2436_v33, %v2436_v33 }
 0x310   : > { %v2677_v56 = vsel %vm6203_vm8, %v5664_v55, %v5662_v50  ;;  %v3699_v1 = vld [vmem:[#allocation2 + $0x320] sm:$0xff] }
 0x311   : > { %2687 = vst [vmem:[#allocation2 + $0x378] sm:$0xe] %v2677_v56  ;;  %3382 = vrot.lane.b32.xlu1 %v3379_v45, %s4839_s23  ;;  %3345 = vrot.lane.b32.xlu0 %v3339_v47, %s4838_s16  ;;  %v2321_v16 = vrot.slane %v2315_v8, 7  ;;  %v2399_v45 = vrot.slane %v2394_v32, 1  ;;  %v2479_v47 = vld [vmem:[%s4921_s27 + $0x14] sm:$0x77] }
 0x312   : > { %v2485_v58 = vcombine.high %v2479_v47, %v2479_v47  ;;  %v4662_v32 = vld [vmem:[%s4921_s27 + $0xc] sm:$0x77] }
 0x313   : > { %v5680_v62 = vpop.permute.xlu1 %2704  ;;  %v2703_v63 = vpop.permute.xlu0 %2702  ;;  %v2484_v33 = vcombine.high %v4662_v32, %v4662_v32 }
 0x314   : > { %v2714_v59 = vsel %vm6202_vm0, %v2703_v63, %v5680_v62  ;;  %v3704_v52 = vld [vmem:[#allocation2 + $0x348] sm:$0xff] }
 0x315   : > { %2724 = vst [vmem:[#allocation2 + $0x378] sm:$0x70] %v2714_v59  ;;  %3473 = vrot.lane.b32.xlu1 %v3467_v49, %s6197_s30  ;;  %3425 = vrot.lane.b32.xlu0 %v3419_v57, %s4840_s8  ;;  %v4176_v53 = vpack.c.bf16 %v3704_v52, %v3699_v1  ;;  %v2490_v49 = vrot.slane %v2479_v47, 3  ;;  %v2448_v57 = vrot.slane %v2442_v46, 6  ;;  %v2491_v1 = vrot.slane %v2485_v58, 3  ;;  %s6216_s30 = smov 9  }
 0x316   : > { %v2522_v52 = vld [vmem:[%s4921_s27 + $0x14] sm:$0x77] }
 0x317   : > { %v5687_v3 = vpop.permute.xlu1 %2747  ;;  %v2746_v4 = vpop.permute.xlu0 %2745  ;;  %4177 = vmatpush1.bf16.msra.mxu0 %v4176_v53  ;;  %v2559_v53 = vld [vmem:[%s4921_s27 + $0x14] sm:$0x77] }
 0x318   : > { %v2757_v5 = vsel %vm6201_vm2, %v2746_v4, %v5687_v3  ;;  %v2650_v46 = vld [vmem:[%s4921_s27 + $0x14] sm:$0x77] }
 0x319   : > { %2767 = vst [vmem:[#allocation2 + $0x3a0] ss:$-36 sps:$4 sm:$0x83] %v2757_v5   ;;  %3555 = vrot.lane.b32.xlu1 %v3550_v61, %s4811_s20  ;;  %3516 = vrot.lane.b32.xlu0 %v3510_v2, %s6195_s24  ;;  %v2528_v5 = vcombine.high %v2522_v52, %v2522_v52  ;;  %s6225_s24 = smov 64  }
 0x31b   : > { %v5696_v11 = vpop.permute.xlu1 %2795  ;;  %v2794_v12 = vpop.permute.xlu0 %2793 }
 0x31c   : > { %v2804_v13 = vsel %vm6200_vm11, %v2794_v12, %v5696_v11 }
 0x31d   : > { %2814 = vst [vmem:[#allocation2 + $0x3a0] sm:$0x1c] %v2804_v13  ;;  %3553 = vrot.lane.b32.xlu1 %v3544_v60, %s4811_s20  ;;  %3557 = vrot.lane.b32.xlu0 %v3545_v9, %s4811_s20  ;;  %v2602_v13 = vld [vmem:[%s4921_s27 + $0x14] sm:$0x77] }
 0x31f   : > { %v5708_v19 = vpop.permute.xlu1 %2837  ;;  %v2836_v20 = vpop.permute.xlu0 %2835 }
 0x320   : > { %v2847_v21 = vsel %vm6199_vm3, %v2836_v20, %v5708_v19  ;;  %v3710_v39 = vld [vmem:[#allocation2 + $0x378] sm:$0xff] }
 0x321   : > { %2857 = vst [vmem:[#allocation2 + $0x3a0] sm:$0xe0] %v2847_v21  ;;  %2367 = vrot.lane.b32.xlu1 %v2358_v14, %s4818_s3  ;;  %2332 = vrot.lane.b32.xlu0 %v2321_v16, %s4817_s29  ;;  %s6217_s29 = smov 8  }
 0x323   : > { %v2701_v25 = vpop.permute.xlu1 %2700  ;;  %v2664_v26 = vpop.permute.xlu0 %2663 }
 0x324   : > { %v2713_v28 = vsel %vm6202_vm0, %v2701_v25, %v2703_v63  ;;  %v2676_v29 = vsel %vm6203_vm8, %v2664_v26, %v5664_v55  ;;  %v2608_v25 = vcombine.high %v2602_v13, %v2602_v13  ;;  %vm6204_vm0 = vcmask 809984  }
 0x325   : > { %2723 = vst [vmem:[#allocation2 + $0x370] sm:$0x70] %v2713_v28  ;;  %2686 = vst [vmem:[#allocation2 + $0x370] sm:$0xe] %v2676_v29  ;;  %2410 = vrot.lane.b32.xlu1 %v2400_v22, %s4786_s28  ;;  %2369 = vrot.lane.b32.xlu0 %v2352_v10, %s4818_s3  ;;  %v2570_v10 = vrot.slane %v2559_v53, 5  ;;  %vm6205_vm8 = vcmask 801792  }
 0x326   : > { %v4661_v22 = vld [vmem:[%s4921_s27 + $0xc] sm:$0x77]  ;;  %v2614_v31 = vrot.slane %v2608_v25, 2 }
 0x327   : > { %v2792_v35 = vpop.permute.xlu1 %2791  ;;  %v2744_v36 = vpop.permute.xlu0 %2743  ;;  %v2441_v24 = vcombine.high %v4661_v22, %v4661_v22  ;;  %v2778_v22 = vld [vmem:[%s4921_s27 + $0x14] sm:$0x77] }
 0x328   : > { %v2803_v37 = vsel %vm6200_vm11, %v2792_v35, %v2794_v12  ;;  %v2756_v38 = vsel %vm6201_vm2, %v2744_v36, %v2746_v4  ;;  %v3715_v41 = vld [vmem:[#allocation2 + $0x3a0] sm:$0xff]  ;;  %vm6207_vm11 = vcmask 826368   ;;  %v2565_v12 = vcombine.high %v2559_v53, %v2559_v53 }
 0x329   : > { %2813 = vst [vmem:[#allocation2 + $0x398] sm:$0x1c] %v2803_v37  ;;  %2766 = vst [vmem:[#allocation2 + $0x398] ss:$-36 sps:$4 sm:$0x83] %v2756_v38   ;;  %2365 = vrot.lane.b32.xlu1 %v4660_v42, %s4818_s3  ;;  %2412 = vrot.lane.b32.xlu0 %v2401_v30, %s4786_s28  ;;  %v4178_v43 = vpack.c.bf16 %v3715_v41, %v3710_v39  ;;  %vm6206_vm2 = vcmask 818176  }
 0x32a   : > { %v2571_v21 = vrot.slane %v2565_v12, 5  ;;  %v2446_v30 = vrot.slane %v2441_v24, 6  ;;  %v4663_v37 = vld [vmem:[%s4921_s27 + $0xc] sm:$0x77]  ;;  %v2489_v41 = vrot.slane %v2484_v33, 3  ;;  %s6218_s3 = smov 104  }
 0x32b   : > { %v5729_v48 = vpop.permute.xlu1 %2872  ;;  %v2834_v55 = vpop.permute.xlu0 %2833  ;;  %4179 = vmatprep.subr.bf16.mxu0 %v4178_v43  ;;  %v2527_v38 = vcombine.high %v4663_v37, %v4663_v37  ;;  %v4664_v42 = vld [vmem:[%s4921_s27 + $0xc] sm:$0x77] }
 0x32c   : > { %v2846_v56 = vsel %vm6199_vm3, %v2834_v55, %v2836_v20  ;;  %vm2925_vm3 = vcmask 834560   ;;  %v2613_v20 = vrot.slane %v2602_v13, 2  ;;  %v2607_v43 = vcombine.high %v4664_v42, %v4664_v42 }
 0x32d   : > { %2856 = vst [vmem:[#allocation2 + $0x398] sm:$0xe0] %v2846_v56  ;;  %2457 = vrot.lane.b32.xlu1 %v2447_v44, %s4819_s4  ;;  %2408 = vrot.lane.b32.xlu0 %v2399_v45, %s4786_s28  ;;  %v4665_v44 = vld [vmem:[%s4921_s27 + $0xc] sm:$0x77]  ;;  %s6215_s28 = smov 10  }
 0x32e   : > { %v2564_v45 = vcombine.high %v4665_v44, %v4665_v44 }
 0x32f   : > { %v5734_v60 = vpop.permute.xlu1 %2915  ;;  %v5736_v63 = vpop.permute.xlu0 %2874 }
 0x330   : > { %v2884_v59 = vsel %vm2882_vm15, %v5729_v48, %v5736_v63  ;;  %v3709_v6 = vld [vmem:[#allocation2 + $0x370] sm:$0xff]  ;;  %v2569_v58 = vrot.slane %v2564_v45, 5 }
 0x331   : > { %2894 = vst [vmem:[#allocation2 + $0x3c8] sm:$0x7] %v2884_v59  ;;  %2500 = vrot.lane.b32.xlu1 %v2490_v49, %s4820_s5  ;;  %2459 = vrot.lane.b32.xlu0 %v2448_v57, %s4819_s4  ;;  %v2612_v57 = vrot.slane %v2607_v43, 2  ;;  %v2656_v59 = vcombine.high %v2650_v46, %v2650_v46 }
 0x333   : > { %v5745_v61 = vpop.permute.xlu1 %2958  ;;  %v5747_v2 = vpop.permute.xlu0 %2917 }
 0x334   : > { %v2927_v4 = vsel %vm2925_vm3, %v5734_v60, %v5747_v2  ;;  %v3714_v8 = vld [vmem:[#allocation2 + $0x398] sm:$0xff] }
 0x335   : > { %2937 = vst [vmem:[#allocation2 + $0x3c8] sm:$0x38] %v2927_v4  ;;  %2537 = vrot.lane.b32.xlu1 %v2522_v52, %s4821_s6  ;;  %2502 = vrot.lane.b32.xlu0 %v2491_v1, %s4820_s5  ;;  %v4180_v9 = vpack.c.bf16 %v3714_v8, %v3709_v6  ;;  %v2662_v4 = vrot.slane %v2656_v59, 7  ;;  %v2693_v6 = vld [vmem:[%s4921_s27 + $0x14] sm:$0x77] }
 0x336   : > { %v2730_v8 = vld [vmem:[%s4921_s27 + $0x14] sm:$0x77] }
 0x337   : > { %v5755_v14 = vpop.permute.xlu1 %3006  ;;  %v5757_v16 = vpop.permute.xlu0 %2960  ;;  %4181 = vmatpush1.bf16.msra.mxu0 %v4180_v9 }
 0x338   : > { %v2970_v17 = vsel %vm6207_vm11, %v5745_v61, %v5757_v16 }
 0x339   : > { %2980 = vst [vmem:[#allocation2 + $0x3f0] ss:$-36 sps:$4 sm:$0xc1] %v2970_v17   ;;  %2580 = vrot.lane.b32.xlu1 %v2570_v10, %s4822_s7  ;;  %2539 = vrot.lane.b32.xlu0 %v2528_v5, %s4821_s6  ;;  %v2661_v5 = vrot.slane %v2650_v46, 7 }
 0x33b   : > { %v3044_v26 = vpop.permute.xlu1 %3043  ;;  %v5765_v28 = vpop.permute.xlu0 %3008 }
 0x33c   : > { %v3018_v29 = vsel %vm6206_vm2, %v5755_v14, %v5765_v28 }
 0x33d   : > { %3028 = vst [vmem:[#allocation2 + $0x3f0] sm:$0xe] %v3018_v29  ;;  %2623 = vrot.lane.b32.xlu1 %v2613_v20, %s4823_s15  ;;  %2582 = vrot.lane.b32.xlu0 %v2571_v21, %s4822_s7  ;;  %v2699_v20 = vcombine.low %v2693_v6, %v2693_v6  ;;  %v2736_v21 = vcombine.high %v2730_v8, %v2730_v8  ;;  %v2741_v29 = vrot.slane %v2730_v8, 1 }
 0x33f   : > { %v3087_v35 = vpop.permute.xlu1 %3086  ;;  %v5773_v36 = vpop.permute.xlu0 %3045 }
 0x340   : > { %v3055_v39 = vsel %vm6204_vm0, %v3044_v26, %v5773_v36  ;;  %v3720_v13 = vld [vmem:[#allocation2 + $0x3c8] sm:$0xff] }
 0x341   : > { %3065 = vst [vmem:[#allocation2 + $0x3f0] sm:$0x70] %v3055_v39  ;;  %2455 = vrot.lane.b32.xlu1 %v2446_v30, %s4819_s4  ;;  %2625 = vrot.lane.b32.xlu0 %v2614_v31, %s4823_s15  ;;  %v2784_v30 = vcombine.high %v2778_v22, %v2778_v22  ;;  %v2820_v31 = vld [vmem:[%s4921_s27 + $0x18] sm:$0x77]  ;;  %s6219_s4 = smov 101  }
 0x342   : > { %v2826_v39 = vcombine.high %v2820_v31, %v2820_v31 }
 0x343   : > { %v2871_v47 = vpop.permute.xlu1 %2870  ;;  %v5783_v55 = vpop.permute.xlu0 %3088 }
 0x344   : > { %v2883_v56 = vsel %vm2882_vm15, %v2871_v47, %v5729_v48  ;;  %v3098_v49 = vsel %vm6205_vm8, %v3087_v35, %v5783_v55  ;;  %v2832_v47 = vrot.slane %v2826_v39, 3  ;;  %v2943_v39 = vld [vmem:[%s4921_s27 + $0x18] sm:$0x77] }
 0x345   : > { %2893 = vst [vmem:[#allocation2 + $0x3c0] sm:$0x7] %v2883_v56  ;;  %3108 = vst [vmem:[#allocation2 + $0x418] ss:$-36 sps:$4 sm:$0x83] %v3098_v49   ;;  %2535 = vrot.lane.b32.xlu1 %v2527_v38, %s4821_s6  ;;  %2498 = vrot.lane.b32.xlu0 %v2489_v41, %s4820_s5  ;;  %v2789_v38 = vrot.slane %v2778_v22, 6 }
 0x346   : > { %v2831_v56 = vrot.slane %v2820_v31, 3  ;;  %v4666_v49 = vld [vmem:[%s4921_s27 + $0xc] sm:$0x77]  ;;  %s6220_s5 = smov 100   ;;  %s6221_s6 = smov 99  }
 0x347   : > { %v2957_v1 = vpop.permute.xlu1 %2956  ;;  %v2914_v52 = vpop.permute.xlu0 %2913 }
 0x348   : > { %v2969_v53 = vsel %vm6207_vm11, %v2957_v1, %v5745_v61  ;;  %v2926_v48 = vsel %vm2925_vm3, %v2914_v52, %v5734_v60  ;;  %vm6209_vm11 = vcmask 506880  }
 0x349   : > { %2979 = vst [vmem:[#allocation2 + $0x3e8] ss:$-36 sps:$4 sm:$0xc1] %v2969_v53   ;;  %2936 = vst [vmem:[#allocation2 + $0x3c0] sm:$0x38] %v2926_v48  ;;  %2621 = vrot.lane.b32.xlu1 %v2612_v57, %s4823_s15  ;;  %2578 = vrot.lane.b32.xlu0 %v2569_v58, %s4822_s7  ;;  %v2655_v57 = vcombine.high %v4666_v49, %v4666_v49  ;;  %s6222_s7 = smov 98  }
 0x34a   : > { %v4667_v53 = vld [vmem:[%s4921_s27 + $0xc] sm:$0x77]  ;;  %s6223_s15 = smov 97  }
 0x34b   : > { %v3042_v9 = vpop.permute.xlu1 %3041  ;;  %v3005_v10 = vpop.permute.xlu0 %3004  ;;  %v2660_v52 = vrot.slane %v2655_v57, 7  ;;  %v2783_v48 = vcombine.high %v4667_v53, %v4667_v53  ;;  %v2949_v57 = vcombine.high %v2943_v39, %v2943_v39 }
 0x34c   : > { %v3054_v12 = vsel %vm6204_vm0, %v3042_v9, %v3044_v26  ;;  %v3017_v61 = vsel %vm6206_vm2, %v3005_v10, %v5755_v14  ;;  %v3725_v60 = vld [vmem:[#allocation2 + $0x3f0] sm:$0xff]  ;;  %vm6212_vm0 = vcmask 793600   ;;  %v2742_v14 = vrot.slane %v2736_v21, 1 }
 0x34d   : > { %3064 = vst [vmem:[#allocation2 + $0x3e8] sm:$0x70] %v3054_v12  ;;  %3027 = vst [vmem:[#allocation2 + $0x3e8] sm:$0xe] %v3017_v61  ;;  %2673 = vrot.lane.b32.xlu1 %v2662_v4, %s4824_s18  ;;  %2671 = vrot.lane.b32.xlu0 %v2661_v5, %s4824_s18  ;;  %v4182_v17 = vpack.c.bf16 %v3725_v60, %v3720_v13  ;;  %vm6210_vm2 = vcmask 515072   ;;  %v2788_v12 = vrot.slane %v2783_v48, 6 }
 0x34e   : > { %v4668_v4 = vld [vmem:[%s4921_s27 + $0xc] sm:$0x77] }
 0x34f   : > { %v5805_v24 = vpop.permute.xlu1 %3134  ;;  %v3085_v25 = vpop.permute.xlu0 %3084  ;;  %4183 = vmatprep.subr.bf16.mxu0 %v4182_v17  ;;  %v2735_v5 = vcombine.high %v4668_v4, %v4668_v4  ;;  %v4669_v10 = vld [vmem:[%s4921_s27 + $0xc] sm:$0x77]  ;;  %v2955_v4 = vrot.slane %v2949_v57, 2 }
 0x350   : > { %v3097_v26 = vsel %vm6205_vm8, %v3085_v25, %v3087_v35  ;;  %v2790_v35 = vrot.slane %v2784_v30, 6  ;;  %vm6208_vm8 = vcmask 523264   ;;  %v3719_v44 = vld [vmem:[#allocation2 + $0x3c0] sm:$0xff]  ;;  %v4670_v13 = vld [vmem:[%s4921_s27 + $0x10] sm:$0x77] }
 0x351   : > { %3107 = vst [vmem:[#allocation2 + $0x410] ss:$-36 sps:$4 sm:$0x83] %v3097_v26   ;;  %2710 = vrot.lane.b32.xlu1 %v2693_v6, %s6215_s28  ;;  %2708 = vrot.lane.b32.xlu0 %v2699_v20, %s6215_s28  ;;  %v2740_v61 = vrot.slane %v2735_v5, 1  ;;  %v2825_v60 = vcombine.high %v4670_v13, %v4670_v13  ;;  %v2863_v26 = vld [vmem:[%s4921_s27 + $0x18] sm:$0x77] }
 0x352   : > { %v4674_v57 = vld [vmem:[%s4921_s27 + $0x10] sm:$0x77] }
 0x353   : > { %v5811_v32 = vpop.permute.xlu1 %3177  ;;  %v5813_v33 = vpop.permute.xlu0 %3136  ;;  %v2830_v25 = vrot.slane %v2825_v60, 3 }
 0x354   : > { %v3146_v37 = vsel %vm6212_vm0, %v5805_v24, %v5813_v33 }
 0x355   : > { %3156 = vst [vmem:[#allocation2 + $0x418] sm:$0x1c] %v3146_v37  ;;  %2753 = vrot.lane.b32.xlu1 %v2742_v14, %s6216_s30  ;;  %2751 = vrot.lane.b32.xlu0 %v2741_v29, %s6216_s30  ;;  %v2900_v14 = vld [vmem:[%s4921_s27 + $0x18] sm:$0x77]  ;;  %v2869_v37 = vcombine.high %v2863_v26, %v2863_v26 }
 0x357   : > { %v3214_v41 = vpop.permute.xlu1 %3213  ;;  %v5820_v42 = vpop.permute.xlu0 %3179 }
 0x358   : > { %v3188_v43 = vsel %vm6211_vm4, %v5811_v32, %v5820_v42  ;;  %v3724_v45 = vld [vmem:[#allocation2 + $0x3e8] sm:$0xff] }
 0x359   : > { %3198 = vst [vmem:[#allocation2 + $0x418] sm:$0xe0] %v3188_v43  ;;  %2801 = vrot.lane.b32.xlu1 %v2790_v35, %s6217_s29  ;;  %2799 = vrot.lane.b32.xlu0 %v2789_v38, %s6217_s29  ;;  %v4184_v46 = vpack.c.bf16 %v3724_v45, %v3719_v44  ;;  %v2911_v35 = vrot.slane %v2900_v14, 5  ;;  %v2906_v38 = vcombine.high %v2900_v14, %v2900_v14 }
 0x35b   : > { %v3257_v58 = vpop.permute.xlu1 %3256  ;;  %v5828_v59 = vpop.permute.xlu0 %3215  ;;  %4185 = vmatpush1.bf16.msra.mxu0 %v4184_v46  ;;  %v2912_v49 = vrot.slane %v2906_v38, 5 }
 0x35c   : > { %v3225_v1 = vsel %vm6208_vm8, %v3214_v41, %v5828_v59 }
 0x35d   : > { %3235 = vst [vmem:[#allocation2 + $0x440] sm:$0x7] %v3225_v1  ;;  %2843 = vrot.lane.b32.xlu1 %v2832_v47, %s6218_s3  ;;  %2841 = vrot.lane.b32.xlu0 %v2831_v56, %s6218_s3  ;;  %v2954_v56 = vrot.slane %v2943_v39, 2  ;;  %v2991_v1 = vld [vmem:[%s4921_s27 + $0x18] sm:$0x77] }
 0x35e   : > { %v3002_v48 = vrot.slane %v2991_v1, 7  ;;  %v2997_v5 = vcombine.high %v2991_v1, %v2991_v1  ;;  %v2996_v1 = vcombine.high %v4674_v57, %v4674_v57  ;;  %v3204_v57 = vld [vmem:[%s4921_s27 + $0x18] sm:$0x77] }
 0x35f   : > { %v3300_v6 = vpop.permute.xlu1 %3299  ;;  %v5836_v8 = vpop.permute.xlu0 %3258 }
 0x360   : > { %v3268_v9 = vsel %vm6210_vm2, %v3257_v58, %v5836_v8  ;;  %v3730_v46 = vld [vmem:[#allocation2 + $0x418] sm:$0xff] }
 0x361   : > { %3278 = vst [vmem:[#allocation2 + $0x440] sm:$0x38] %v3268_v9  ;;  %2706 = vrot.lane.b32.xlu1 %v4669_v10, %s6215_s28  ;;  %2669 = vrot.lane.b32.xlu0 %v2660_v52, %s4824_s18  ;;  %s6224_s18 = smov 96  }
 0x363   : > { %v3133_v17 = vpop.permute.xlu1 %3132  ;;  %v5844_v20 = vpop.permute.xlu0 %3301 }
 0x364   : > { %v3145_v21 = vsel %vm6212_vm0, %v3133_v17, %v5805_v24  ;;  %v3311_v22 = vsel %vm6209_vm11, %v3300_v6, %v5844_v20  ;;  %vm3528_vm0 = vcmask 465920  }
 0x365   : > { %3155 = vst [vmem:[#allocation2 + $0x410] sm:$0x1c] %v3145_v21  ;;  %3321 = vst [vmem:[#allocation2 + $0x468] ss:$-36 sps:$4 sm:$0xc1] %v3311_v22   ;;  %2797 = vrot.lane.b32.xlu1 %v2788_v12, %s6217_s29  ;;  %2749 = vrot.lane.b32.xlu0 %v2740_v61, %s6216_s30  ;;  %v3003_v21 = vrot.slane %v2997_v5, 7 }
 0x366   : > { %v3071_v22 = vld [vmem:[%s4921_s27 + $0x18] sm:$0x77]  ;;  %s6227_s30 = smov 62   ;;  %s6228_s29 = smov 58  }
 0x367   : > { %v3212_v29 = vpop.permute.xlu1 %3211  ;;  %v3176_v30 = vpop.permute.xlu0 %3175 }
 0x368   : > { %v3224_v31 = vsel %vm6208_vm8, %v3212_v29, %v3214_v41  ;;  %v3187_v24 = vsel %vm6211_vm4, %v3176_v30, %v5811_v32  ;;  %vm3357_vm8 = vcmask 498688   ;;  %vm3485_vm4 = vcmask 474112  }
 0x369   : > { %3234 = vst [vmem:[#allocation2 + $0x438] sm:$0x7] %v3224_v31  ;;  %3197 = vst [vmem:[#allocation2 + $0x410] sm:$0xe0] %v3187_v24  ;;  %2878 = vrot.lane.b32.xlu1 %v2863_v26, %s4828_s25  ;;  %2839 = vrot.lane.b32.xlu0 %v2830_v25, %s6218_s3  ;;  %v3082_v29 = vrot.slane %v3071_v22, 1  ;;  %v3077_v30 = vcombine.high %v3071_v22, %v3071_v22  ;;  %s6229_s3 = smov 57  }
 0x36b   : > { %v3298_v43 = vpop.permute.xlu1 %3297  ;;  %v3255_v44 = vpop.permute.xlu0 %3254  ;;  %v3083_v39 = vrot.slane %v3077_v30, 1 }
 0x36c   : > { %v3310_v45 = vsel %vm6209_vm11, %v3298_v43, %v3300_v6  ;;  %v3267_v41 = vsel %vm6210_vm2, %v3255_v44, %v3257_v58  ;;  %v3735_v32 = vld [vmem:[#allocation2 + $0x440] sm:$0xff]  ;;  %vm3394_vm11 = vcmask 490496   ;;  %v3034_v6 = vld [vmem:[%s4921_s27 + $0x18] sm:$0x77]  ;;  %vm3437_vm2 = vcmask 482304  }
 0x36d   : > { %3320 = vst [vmem:[#allocation2 + $0x460] ss:$-36 sps:$4 sm:$0xc1] %v3310_v45   ;;  %3277 = vst [vmem:[#allocation2 + $0x438] sm:$0x38] %v3267_v41  ;;  %2921 = vrot.lane.b32.xlu1 %v2911_v35, %s4829_s26  ;;  %2880 = vrot.lane.b32.xlu0 %v2869_v37, %s4828_s25  ;;  %v4186_v47 = vpack.c.bf16 %v3735_v32, %v3730_v46  ;;  %v3040_v17 = vcombine.low %v3034_v6, %v3034_v6 }
 0x36e   : > { %v4671_v37 = vld [vmem:[%s4921_s27 + $0x10] sm:$0x77] }
 0x36f   : > { %v5865_v52 = vpop.permute.xlu1 %3349  ;;  %v3348_v53 = vpop.permute.xlu0 %3347  ;;  %4187 = vmatprep.subr.bf16.mxu0 %v4186_v47  ;;  %v2868_v35 = vcombine.high %v4671_v37, %v4671_v37  ;;  %v4672_v43 = vld [vmem:[%s4921_s27 + $0x10] sm:$0x77] }
 0x370   : > { %v3359_v58 = vsel %vm3357_vm8, %v3348_v53, %v5865_v52  ;;  %v3729_v61 = vld [vmem:[#allocation2 + $0x410] sm:$0xff]  ;;  %v2948_v44 = vcombine.high %v4672_v43, %v4672_v43 }
 0x371   : > { %3369 = vst [vmem:[#allocation2 + $0x468] sm:$0xe] %v3359_v58  ;;  %2964 = vrot.lane.b32.xlu1 %v2954_v56, %s6219_s4  ;;  %2923 = vrot.lane.b32.xlu0 %v2912_v49, %s4829_s26  ;;  %v4673_v45 = vld [vmem:[%s4921_s27 + $0x10] sm:$0x77] }
 0x372   : > { %v2905_v41 = vcombine.high %v4673_v45, %v4673_v45  ;;  %v2953_v56 = vrot.slane %v2948_v44, 2 }
 0x373   : > { %v5872_v9 = vpop.permute.xlu1 %3386  ;;  %v3385_v10 = vpop.permute.xlu0 %3384 }
 0x374   : > { %v3396_v12 = vsel %vm3394_vm11, %v3385_v10, %v5872_v9  ;;  %v3734_v13 = vld [vmem:[#allocation2 + $0x438] sm:$0xff]  ;;  %v2910_v49 = vrot.slane %v2905_v41, 5 }
 0x375   : > { %3406 = vst [vmem:[#allocation2 + $0x468] sm:$0x70] %v3396_v12  ;;  %3012 = vrot.lane.b32.xlu1 %v3002_v48, %s6220_s5  ;;  %2966 = vrot.lane.b32.xlu0 %v2955_v4, %s6219_s4  ;;  %v4188_v60 = vpack.c.bf16 %v3734_v13, %v3729_v61  ;;  %v4675_v12 = vld [vmem:[%s4921_s27 + $0x10] sm:$0x77]  ;;  %v3119_v13 = vld [vmem:[%s4921_s27 + $0x18] sm:$0x77] }
 0x376   : > { %v3076_v61 = vcombine.high %v4675_v12, %v4675_v12  ;;  %v3130_v30 = vrot.slane %v3119_v13, 6  ;;  %v3210_v12 = vcombine.high %v3204_v57, %v3204_v57 }
 0x377   : > { %v5879_v25 = vpop.permute.xlu1 %3429  ;;  %v3428_v26 = vpop.permute.xlu0 %3427  ;;  %4189 = vmatpush1.bf16.msra.mxu0 %v4188_v60 }
 0x378   : > { %v3439_v14 = vsel %vm3437_vm2, %v3428_v26, %v5879_v25  ;;  %v3081_v37 = vrot.slane %v3076_v61, 1 }
 0x379   : > { %3449 = vst [vmem:[#allocation2 + $0x490] ss:$-36 sps:$4 sm:$0x83] %v3439_v14   ;;  %3049 = vrot.lane.b32.xlu1 %v3040_v17, %s6221_s6  ;;  %3014 = vrot.lane.b32.xlu0 %v3003_v21, %s6220_s5  ;;  %v4676_v14 = vld [vmem:[%s4921_s27 + $0x10] sm:$0x77] }
 0x37b   : > { %v5885_v31 = vpop.permute.xlu1 %3477  ;;  %v3476_v24 = vpop.permute.xlu0 %3475 }
 0x37c   : > { %v3487_v38 = vsel %vm3485_vm4, %v3476_v24, %v5885_v31 }
 0x37d   : > { %3497 = vst [vmem:[#allocation2 + $0x490] sm:$0x1c] %v3487_v38  ;;  %3092 = vrot.lane.b32.xlu1 %v3082_v29, %s6222_s7  ;;  %3051 = vrot.lane.b32.xlu0 %v3034_v6, %s6221_s6  ;;  %v3001_v6 = vrot.slane %v2996_v1, 7  ;;  %v3162_v38 = vld [vmem:[%s4921_s27 + $0x18] sm:$0x77] }
 0x37e   : > { %v3168_v45 = vcombine.high %v3162_v38, %v3162_v38  ;;  %v3241_v1 = vld [vmem:[%s4921_s27 + $0x18] sm:$0x77] }
 0x37f   : > { %v5894_v46 = vpop.permute.xlu1 %3520  ;;  %v3519_v32 = vpop.permute.xlu0 %3518 }
 0x380   : > { %v3530_v47 = vsel %vm3528_vm0, %v3519_v32, %v5894_v46  ;;  %v3740_v22 = vld [vmem:[#allocation2 + $0x468] sm:$0xff] }
 0x381   : > { %3540 = vst [vmem:[#allocation2 + $0x490] sm:$0xe0] %v3530_v47  ;;  %2876 = vrot.lane.b32.xlu1 %v2868_v35, %s4828_s25  ;;  %3094 = vrot.lane.b32.xlu0 %v3083_v39, %s6222_s7  ;;  %v3125_v35 = vcombine.high %v3119_v13, %v3119_v13  ;;  %v3252_v13 = vrot.slane %v3241_v1, 5  ;;  %s6226_s25 = smov 63  }
 0x383   : > { %v3383_v58 = vpop.permute.xlu1 %3382  ;;  %v3346_v48 = vpop.permute.xlu0 %3345  ;;  %v3131_v44 = vrot.slane %v3125_v35, 6 }
 0x384   : > { %v3395_v4 = vsel %vm3394_vm11, %v3383_v58, %v3385_v10  ;;  %v3358_v5 = vsel %vm3357_vm8, %v3346_v48, %v3348_v53 }
 0x385   : > { %3405 = vst [vmem:[#allocation2 + $0x460] sm:$0x70] %v3395_v4  ;;  %3368 = vst [vmem:[#allocation2 + $0x460] sm:$0xe] %v3358_v5  ;;  %2962 = vrot.lane.b32.xlu1 %v2953_v56, %s6219_s4  ;;  %2919 = vrot.lane.b32.xlu0 %v2910_v49, %s4829_s26 }
 0x387   : > { %v3474_v60 = vpop.permute.xlu1 %3473  ;;  %v3426_v17 = vpop.permute.xlu0 %3425 }
 0x388   : > { %v3486_v21 = vsel %vm3485_vm4, %v3474_v60, %v3476_v24  ;;  %v3438_v10 = vsel %vm3437_vm2, %v3426_v17, %v3428_v26  ;;  %v3745_v53 = vld [vmem:[#allocation2 + $0x490] sm:$0xff]  ;;  %v3173_v26 = vrot.slane %v3162_v38, 3  ;;  %v3284_v60 = vld [vmem:[%s4921_s27 + $0x18] sm:$0x77]  ;;  %v3247_v17 = vcombine.high %v3241_v1, %v3241_v1 }
 0x389   : > { %3496 = vst [vmem:[#allocation2 + $0x488] sm:$0x1c] %v3486_v21  ;;  %3448 = vst [vmem:[#allocation2 + $0x488] ss:$-36 sps:$4 sm:$0x83] %v3438_v10   ;;  %3047 = vrot.lane.b32.xlu1 %v4676_v14, %s6221_s6  ;;  %3010 = vrot.lane.b32.xlu0 %v3001_v6, %s6220_s5  ;;  %v4190_v29 = vpack.c.bf16 %v3745_v53, %v3740_v22  ;;  %v3295_v14 = vrot.slane %v3284_v60, 2 }
 0x38a   : > { %v3253_v38 = vrot.slane %v3247_v17, 5 }
 0x38b   : > { %v3556_v39 = vpop.permute.xlu1 %3555  ;;  %v3517_v43 = vpop.permute.xlu0 %3516  ;;  %4191 = vmatprep.subr.bf16.mxu0 %v4190_v29  ;;  %v4677_v29 = vld [vmem:[%s4921_s27 + $0x10] sm:$0x77] }
 0x38c   : > { %v3529_v24 = vsel %vm3528_vm0, %v3517_v43, %v3519_v32  ;;  %v3174_v32 = vrot.slane %v3168_v45, 3  ;;  %v3290_v43 = vcombine.high %v3284_v60, %v3284_v60  ;;  %v3608_v45 = vld [vmem:[#allocation2 + $0x48] sm:$0xff] }
 0x38d   : > { %3539 = vst [vmem:[#allocation2 + $0x488] sm:$0xe0] %v3529_v24  ;;  %3140 = vrot.lane.b32.xlu1 %v3130_v30, %s6223_s15  ;;  %3090 = vrot.lane.b32.xlu0 %v3081_v37, %s6222_s7  ;;  %v3124_v30 = vcombine.high %v4677_v29, %v4677_v29  ;;  %v3618_v29 = vld [vmem:[#allocation2 + $0x98] sm:$0xff] }
 0x38e   : > { %v3296_v1 = vrot.slane %v3290_v43, 2 }
 0x38f   : > { %v3554_v41 = vpop.permute.xlu1 %3553  ;;  %v5916_v47 = vpop.permute.xlu0 %3557 }
 0x390   : > { %v3565_v56 = vsel %vm2072_vm14, %v3554_v41, %v3556_v39  ;;  %v3566_v49 = vsel %vm2072_vm14, %v3556_v39, %v5916_v47  ;;  %v3739_v5 = vld [vmem:[#allocation2 + $0x460] sm:$0xff]  ;;  %v3688_v39 = vld [vmem:[#allocation2 + $0x2c8] sm:$0xff] }
 0x391   : > { %3575 = vst [vmem:[#allocation2 + $0x4b0] sm:$0x7] %v3565_v56  ;;  %3576 = vst [vmem:[#allocation2 + $0x4b8] sm:$0x7] %v3566_v49  ;;  %3183 = vrot.lane.b32.xlu1 %v3173_v26, %s6224_s18  ;;  %3142 = vrot.lane.b32.xlu0 %v3131_v44, %s6223_s15  ;;  %v3683_v44 = vld [vmem:[#allocation2 + $0x2a0] sm:$0xff] }
 0x393   : > { %v2368_v58 = vpop.permute.xlu1 %2367  ;;  %v2333_v48 = vpop.permute.xlu0 %2332 }
 0x394   : > { %v2339_v4 = vsel %vm2334_vm5, %v5556_v27, %v2333_v48  ;;  %v3744_v6 = vld [vmem:[#allocation2 + $0x488] sm:$0xff]  ;;  %vm6231_vm5 = vcmask 80896  }
 0x395   : > { %2349 = vst [vmem:[#allocation2 + $0x318] sm:$0xe] %v2339_v4  ;;  %3219 = vrot.lane.b32.xlu1 %v3204_v57, %s6225_s24  ;;  %3185 = vrot.lane.b32.xlu0 %v3174_v32, %s6224_s18  ;;  %v4192_v61 = vpack.c.bf16 %v3744_v6, %v3739_v5  ;;  %v4262_v32 = vpack.c.bf16 %v3688_v39, %v3683_v44  ;;  %v3129_v57 = vrot.slane %v3124_v30, 6  ;;  %v3693_v30 = vld [vmem:[#allocation2 + $0x2f0] sm:$0xff] }
 0x397   : > { %v2411_v21 = vpop.permute.xlu1 %2410  ;;  %v2370_v10 = vpop.permute.xlu0 %2369  ;;  %4193 = vmatpush1.bf16.msra.mxu0 %v4192_v61 }
 0x398   : > { %v2376_v22 = vsel %vm2371_vm6, %v2368_v58, %v2370_v10  ;;  %v3750_v53 = vld [vmem:[#allocation2 + $0x4b8] sm:$0xff]  ;;  %v3749_v27 = vld [vmem:[#allocation2 + $0x4b0] sm:$0xff] }
 0x399   : > { %2386 = vst [vmem:[#allocation2 + $0x318] sm:$0x70] %v2376_v22  ;;  %3262 = vrot.lane.b32.xlu1 %v3252_v13, %s6226_s25  ;;  %3221 = vrot.lane.b32.xlu0 %v3210_v12, %s6225_s24  ;;  %v4194_v37 = vpack.c.bf16 %v4844_v51, %v3750_v53  ;;  %v4196_v35 = vpack.c.bf16 %v4844_v51, %v3749_v27  ;;  %v5943_v51 = vld [vmem:[%s6167_s1] sm:$0xff]  ;;  %v4679_v13 = vld [vmem:[%s4921_s27 + $0x10] sm:$0x77] }
 0x39a   : > { %v3209_v60 = vcombine.high %v4679_v13, %v4679_v13  ;;  %v4680_v10 = vld [vmem:[%s4921_s27 + $0x10] sm:$0x77] }
 0x39b   : > { %v2366_v24 = vpop.permute.xlu1 %2365  ;;  %v2413_v26 = vpop.permute.xlu0 %2412  ;;  %4195 = vmatprep.subr.bf16.mxu0 %v4194_v37  ;;  %v3289_v22 = vcombine.high %v4680_v10, %v4680_v10  ;;  %v4681_v53 = vld [vmem:[%s4921_s27 + $0x10] sm:$0x77]  ;;  %v3460_v10 = vld [vmem:[%s4921_s27 + $0x18] sm:$0x77] }
 0x39c   : > { %v2374_v41 = vsel %vm2371_vm6, %v5566_v34, %v2366_v24  ;;  %v2375_v56 = vsel %vm2371_vm6, %v2366_v24, %v2368_v58  ;;  %v2418_v49 = vsel %vm939_vm1, %v2411_v21, %v2413_v26  ;;  %4197 = vmatpush1.bf16.msra.mxu0 %v4196_v35  ;;  %v3603_v34 = vld [vmem:[#allocation2 + $0x20] sm:$0xff]  ;;  %v4678_v58 = vld [vmem:[%s4921_s27 + $0x10] sm:$0x77]  ;;  %v3246_v27 = vcombine.high %v4681_v53, %v4681_v53 }
 0x39d   : > { %2384 = vst [vmem:[#allocation2 + $0x308] sm:$0x70] %v2374_v41  ;;  %2385 = vst [vmem:[#allocation2 + $0x310] sm:$0x70] %v2375_v56  ;;  %3305 = vrot.lane.b32.xlu1 %v3295_v14, %s6227_s30  ;;  %3264 = vrot.lane.b32.xlu0 %v3253_v38, %s6226_s25  ;;  %v3167_v48 = vcombine.high %v4678_v58, %v4678_v58  ;;  %v4264_v4 = vpack.c.bf16 %v3608_v45, %v3603_v34  ;;  %v3332_v14 = vld [vmem:[%s4921_s27 + $0x18] sm:$0x77] }
 0x39e   : > { %2428 = vst [vmem:[#allocation2 + $0x340] ss:$-36 sps:$4 sm:$0x83] %v2418_v49   ;;  %4263 = vmatprep.subr.bf16.mxu0 %v4262_v32  ;;  %v3613_v38 = vld [vmem:[#allocation2 + $0x70] sm:$0xff]  ;;  %v3294_v39 = vrot.slane %v3289_v22, 2  ;;  %v3251_v43 = vrot.slane %v3246_v27, 5  ;;  %v3338_v24 = vcombine.high %v3332_v14, %v3332_v14 }
 0x39f   : > { %v5948_v5 = vpop.permute.xlu1 %2457  ;;  %v2409_v6 = vpop.permute.xlu0 %2408  ;;  %3824 = vmatmul.mubr.f32.vlgmr.msra.gmra.mrb[0].mxu0 %v5943_v51  ;;  %v3172_v17 = vrot.slane %v3167_v48, 3  ;;  %v4268_v26 = vpack.c.bf16 %v3618_v29, %v3613_v38  ;;  %v3691_v41 = vld [vmem:[#allocation2 + $0x2e0] sm:$0xff]  ;;  %v3692_v49 = vld [vmem:[#allocation2 + $0x2e8] sm:$0xff]  ;;  %v3343_v48 = vrot.slane %v3332_v14, 7  ;;  %v3466_v29 = vcombine.high %v3460_v10, %v3460_v10 }
 0x3a0   : > { %v2416_v12 = vsel %vm939_vm1, %v5573_v40, %v2409_v6  ;;  %v2417_v61 = vsel %vm939_vm1, %v2409_v6, %v2411_v21  ;;  %4265 = vmatpush3.bf16.msra.mxu0 %v4264_v4  ;;  %3965 = vmatprep.mubr.f32.mxu0 %v5706_v18  ;;  %v3344_v58 = vrot.slane %v3338_v24, 7  ;;  %v3375_v4 = vld [vmem:[%s4921_s27 + $0x18] sm:$0x77]  ;;  %v3471_v24 = vrot.slane %v3460_v10, 6 }
 0x3a1   : > { %2426 = vst [vmem:[#allocation2 + $0x330] ss:$-36 sps:$4 sm:$0x83] %v2416_v12   ;;  %2427 = vst [vmem:[#allocation2 + $0x338] ss:$-36 sps:$4 sm:$0x83] %v2417_v61   ;;  %3138 = vrot.lane.b32.xlu1 %v3129_v57, %s6223_s15  ;;  %3307 = vrot.lane.b32.xlu0 %v3296_v1, %s6227_s30 }
 0x3a2   : > { %v3412_v6 = vld [vmem:[%s4921_s27 + $0x18] sm:$0x77]  ;;  %vm6230_vm1 = vcmask 89088   ;;  %vm6232_vm6 = vcmask 72704   ;;  %s4845_s15 = smov [#allocation3]  }
 0x3a3   : > { %v5961_v40 = vpop.permute.xlu1 %2500  ;;  %v2460_v21 = vpop.permute.xlu0 %2459 }
 0x3a4   : > { %v2466_v18 = vsel %vm2461_vm7, %v5948_v5, %v2460_v21  ;;  %v3423_v21 = vrot.slane %v3412_v6, 1 }
 0x3a5   : > { %v3698_v37 = vld [vmem:[#allocation2 + $0x318] sm:$0xff]  ;;  %2476 = vst [vmem:[#allocation2 + $0x340] sm:$0x1c] %v2466_v18  ;;  %3217 = vrot.lane.b32.xlu1 %v3209_v60, %s6225_s24  ;;  %3181 = vrot.lane.b32.xlu0 %v3172_v17, %s6224_s18  ;;  %v3381_v60 = vcombine.low %v3375_v4, %v3375_v4  ;;  %v3418_v17 = vcombine.high %v3412_v6, %v3412_v6  ;;  %s4693_s18 = sshll.u32 %s4845_s15, 4  ;;  %s4694_s18 = int_to_ptr.vmem [resolvable:$false] %s4693_s18 }
 0x3a6   : > { %v4266_v35 = vpack.c.bf16 %v3698_v37, %v3693_v30  ;;  %v3503_v18 = vld [vmem:[%s4921_s27 + $0x18] sm:$0x77]  ;;  %s4695_s24 = scalar_lea.vmem %s4694_s18, 1280 }
 0x3a7   : > { %v2538_v44 = vpop.permute.xlu1 %2537  ;;  %v2503_v45 = vpop.permute.xlu0 %2502  ;;  %v3424_v14 = vrot.slane %v3418_v17, 1  ;;  %v4683_v17 = vld [vmem:[%s4921_s27 + $0x10] sm:$0x77] }
 0x3a8   : > { %4267 = vmatprep.subr.bf16.mxu0 %v4266_v35  ;;  %v2509_v56 = vsel %vm2504_vm9, %v5961_v40, %v2503_v45  ;;  %v3697_v32 = vld [vmem:[#allocation2 + $0x310] sm:$0xff]  ;;  %v3696_v34 = vld [vmem:[#allocation2 + $0x308] sm:$0xff]  ;;  %v3465_v10 = vcombine.high %v4683_v17, %v4683_v17 }
 0x3a9   : > { %4269 = vmatpush3.bf16.msra.mxu0 %v4268_v26  ;;  %2519 = vst [vmem:[#allocation2 + $0x340] sm:$0xe0] %v2509_v56  ;;  %3303 = vrot.lane.b32.xlu1 %v3294_v39, %s6227_s30  ;;  %v4234_v57 = vpack.c.bf16 %v3697_v32, %v3692_v49  ;;  %v4236_v1 = vpack.c.bf16 %v3696_v34, %v3691_v41  ;;  %v3514_v34 = vrot.slane %v3503_v18, 3 }
 0x3aa   : > { %3260 = vrot.lane.b32.xlu0 %v3251_v43, %s6226_s25  ;;  %v3472_v43 = vrot.slane %v3466_v29, 6  ;;  %v3509_v26 = vcombine.high %v3503_v18, %v3503_v18  ;;  %v3470_v29 = vrot.slane %v3465_v10, 6 }
 0x3ab   : > { %v2581_v12 = vpop.permute.xlu1 %2580  ;;  %v2540_v61 = vpop.permute.xlu0 %2539  ;;  %4235 = vmatprep.subr.bf16.mxu1 %v4234_v57  ;;  %v4682_v57 = vld [vmem:[%s4921_s27 + $0x10] sm:$0x77] }
 0x3ac   : > { %v2546_v13 = vsel %vm2541_vm10, %v2538_v44, %v2540_v61  ;;  %4237 = vmatpush1.bf16.msra.mxu1 %v4236_v1  ;;  %v3515_v32 = vrot.slane %v3509_v26, 3 }
 0x3ad   : > { %2556 = vst [vmem:[#allocation2 + $0x368] sm:$0x7] %v2546_v13  ;;  %3355 = vrot.lane.b32.xlu1 %v3344_v58, %s4838_s16  ;;  %v3628_v58 = vld [vmem:[#allocation2 + $0xe8] sm:$0xff]  ;;  %v3623_v13 = vld [vmem:[#allocation2 + $0xc0] sm:$0xff] }
 0x3ae   : > { %3353 = vrot.lane.b32.xlu0 %v3343_v48, %s4838_s16 }
 0x3af   : > { %v2624_v22 = vpop.permute.xlu1 %2623  ;;  %v2583_v53 = vpop.permute.xlu0 %2582 }
 0x3b0   : > { %v2589_v27 = vsel %vm2584_vm12, %v2581_v12, %v2583_v53  ;;  %v3703_v6 = vld [vmem:[#allocation2 + $0x340] sm:$0xff] }
 0x3b1   : > { %2599 = vst [vmem:[#allocation2 + $0x368] sm:$0x38] %v2589_v27  ;;  %3392 = vrot.lane.b32.xlu1 %v3375_v4, %s4839_s23 }
 0x3b2   : > { %3390 = vrot.lane.b32.xlu0 %v3381_v60, %s4839_s23 }
 0x3b3   : > { %v2456_v30 = vpop.permute.xlu1 %2455  ;;  %v2626_v37 = vpop.permute.xlu0 %2625 }
 0x3b4   : > { %v2464_v35 = vsel %vm2461_vm7, %v5592_v54, %v2456_v30  ;;  %v2465_v38 = vsel %vm2461_vm7, %v2456_v30, %v5948_v5  ;;  %v2632_v39 = vsel %vm2627_vm13, %v2624_v22, %v2626_v37  ;;  %v4686_v30 = vld [vmem:[%s4921_s27 + $0x10] sm:$0x77]  ;;  %vm6233_vm7 = vcmask 64512  }
 0x3b5   : > { %2474 = vst [vmem:[#allocation2 + $0x330] sm:$0x1c] %v2464_v35  ;;  %2475 = vst [vmem:[#allocation2 + $0x338] sm:$0x1c] %v2465_v38  ;;  %3435 = vrot.lane.b32.xlu1 %v3424_v14, %s4840_s8  ;;  %v3508_v37 = vcombine.high %v4686_v30, %v4686_v30 }
 0x3b6   : > { %2642 = vst [vmem:[#allocation2 + $0x390] ss:$-36 sps:$4 sm:$0xc1] %v2632_v39   ;;  %3433 = vrot.lane.b32.xlu0 %v3423_v21, %s4840_s8  ;;  %v4685_v21 = vld [vmem:[%s4921_s27 + $0x10] sm:$0x77] }
 0x3b7   : > { %v2536_v45 = vpop.permute.xlu1 %2535  ;;  %v2499_v41 = vpop.permute.xlu0 %2498 }
 0x3b8   : > { %v2544_v54 = vsel %vm2541_vm10, %v5616_v7, %v2536_v45  ;;  %v2545_v5 = vsel %vm2541_vm10, %v2536_v45, %v2538_v44  ;;  %v2507_v56 = vsel %vm2504_vm9, %v5605_v0, %v2499_v41  ;;  %v2508_v49 = vsel %vm2504_vm9, %v2499_v41, %v5961_v40  ;;  %vm6235_vm10 = vmmov %vm6231_vm5 }
 0x3b9   : > { %2554 = vst [vmem:[#allocation2 + $0x358] sm:$0x7] %v2544_v54  ;;  %2555 = vst [vmem:[#allocation2 + $0x360] sm:$0x7] %v2545_v5  ;;  %3483 = vrot.lane.b32.xlu1 %v3472_v43, %s6228_s29  ;;  %v3337_v7 = vcombine.high %v4682_v57, %v4682_v57  ;;  %v3513_v5 = vrot.slane %v3508_v37, 3  ;;  %vm6234_vm9 = vcmask 850944  }
 0x3ba   : > { %2517 = vst [vmem:[#allocation2 + $0x330] sm:$0xe0] %v2507_v56  ;;  %2518 = vst [vmem:[#allocation2 + $0x338] sm:$0xe0] %v2508_v49  ;;  %3481 = vrot.lane.b32.xlu0 %v3471_v24, %s6228_s29  ;;  %v3546_v56 = vld [vmem:[%s4921_s27 + $0x18] sm:$0x77] }
 0x3bb   : > { %v2622_v1 = vpop.permute.xlu1 %2621  ;;  %v2579_v44 = vpop.permute.xlu0 %2578  ;;  %v3342_v60 = vrot.slane %v3337_v7, 7  ;;  %v4687_v57 = vld [vmem:[%s4921_s27 + $0x10] sm:$0x77] }
 0x3bc   : > { %v2630_v0 = vsel %vm2627_vm13, %v5641_v23, %v2622_v1  ;;  %v2631_v40 = vsel %vm2627_vm13, %v2622_v1, %v2624_v22  ;;  %v2587_v48 = vsel %vm2584_vm12, %v5629_v15, %v2579_v44  ;;  %v2588_v4 = vsel %vm2584_vm12, %v2579_v44, %v2581_v12  ;;  %v4684_v15 = vld [vmem:[%s4921_s27 + $0x10] sm:$0x77]  ;;  %vm6236_vm12 = vmmov %vm6231_vm5  ;;  %s158_s27 = sand.u32 1, %s4751_s10  }
 0x3bd   : > { %v3708_v61 = vld [vmem:[#allocation2 + $0x368] sm:$0xff]  ;;  %2640 = vst [vmem:[#allocation2 + $0x380] ss:$-36 sps:$4 sm:$0xc1] %v2630_v0   ;;  %2597 = vst [vmem:[#allocation2 + $0x358] sm:$0x38] %v2587_v48  ;;  %3526 = vrot.lane.b32.xlu1 %v3515_v32, %s6229_s3  ;;  %v3417_v22 = vcombine.high %v4684_v15, %v4684_v15  ;;  %v4272_v12 = vpack.c.bf16 %v3628_v58, %v3623_v13  ;;  %v3551_v7 = vcombine.high %v4687_v57, %v4687_v57 }
 0x3be   : > { %2641 = vst [vmem:[#allocation2 + $0x388] ss:$-36 sps:$4 sm:$0xc1] %v2631_v40   ;;  %2598 = vst [vmem:[#allocation2 + $0x360] sm:$0x38] %v2588_v4  ;;  %3524 = vrot.lane.b32.xlu0 %v3514_v34, %s6229_s3  ;;  %v4270_v23 = vpack.c.bf16 %v3708_v61, %v3703_v6  ;;  %v3552_v1 = vcombine.high %v3546_v56, %v3546_v56 }
 0x3bf   : > { %v2674_v53 = vpop.permute.xlu1 %2673  ;;  %v2672_v27 = vpop.permute.xlu0 %2671  ;;  %v3422_v18 = vrot.slane %v3417_v22, 1  ;;  %vm6237_vm13 = vmmov %vm6230_vm1  ;;  %v3638_v22 = vld [vmem:[#allocation2 + $0x138] sm:$0xff] }
 0x3c0   : > { %4271 = vmatprep.subr.bf16.mxu0 %v4270_v23  ;;  %v2680_v14 = vsel %vm6230_vm1, %v2672_v27, %v2674_v53 }
 0x3c1   : > { %4273 = vmatpush3.bf16.msra.mxu0 %v4272_v12  ;;  %2690 = vst [vmem:[#allocation2 + $0x390] sm:$0xe] %v2680_v14  ;;  %3388 = vrot.lane.b32.xlu1 %v4685_v21, %s4839_s23  ;;  %v3702_v39 = vld [vmem:[#allocation2 + $0x338] sm:$0xff]  ;;  %v3701_v26 = vld [vmem:[#allocation2 + $0x330] sm:$0xff] }
 0x3c2   : > { %3351 = vrot.lane.b32.xlu0 %v3342_v60, %s4838_s16  ;;  %s4294_s16 = smul.u32 40, %s158_s27 }
 0x3c3   : > { %v2711_v35 = vpop.permute.xlu1 %2710  ;;  %v2709_v38 = vpop.permute.xlu0 %2708 }
 0x3c4   : > { %v2717_v43 = vsel %vm6231_vm5, %v2709_v38, %v2711_v35  ;;  %v3706_v45 = vld [vmem:[#allocation2 + $0x358] sm:$0xff]  ;;  %vm6238_vm5 = vmmov %vm6233_vm7 }
 0x3c5   : > { %v3707_v24 = vld [vmem:[#allocation2 + $0x360] sm:$0xff]  ;;  %2727 = vst [vmem:[#allocation2 + $0x390] sm:$0x70] %v2717_v43  ;;  %3479 = vrot.lane.b32.xlu1 %v3470_v29, %s6228_s29  ;;  %v4240_v54 = vpack.c.bf16 %v3706_v45, %v3701_v26  ;;  %v3633_v29 = vld [vmem:[#allocation2 + $0x110] sm:$0xff] }
 0x3c6   : > { %3431 = vrot.lane.b32.xlu0 %v3422_v18, %s4840_s8  ;;  %v4238_v41 = vpack.c.bf16 %v3707_v24, %v3702_v39  ;;  %v4276_v18 = vpack.c.bf16 %v3638_v22, %v3633_v29  ;;  %s4098_s8 = smul.u32 640, %s4759_s12  ;;  %s3992_s12 = scalar_lea.sflag [#allocation4], %s158_s27 }
 0x3c7   : > { %v2754_v49 = vpop.permute.xlu1 %2753  ;;  %v2752_v32 = vpop.permute.xlu0 %2751 }
 0x3c8   : > { %4239 = vmatprep.subr.bf16.mxu1 %v4238_v41  ;;  %v2760_v34 = vsel %vm6232_vm6, %v2752_v32, %v2754_v49  ;;  %vm6239_vm6 = vmmov %vm6238_vm5  ;;  %s6117_s6 = scalar_lea.hbm %s6168_s2, %s4098_s8 }
 0x3c9   : > { %4241 = vmatpush1.bf16.msra.mxu1 %v4240_v54  ;;  %2770 = vst [vmem:[#allocation2 + $0x3b8] ss:$-36 sps:$4 sm:$0x83] %v2760_v34   ;;  %3561 = vrot.lane.b32.xlu1 %v3546_v56, %s4811_s20 }
 0x3ca   : > { %3522 = vrot.lane.b32.xlu0 %v3513_v5, %s6229_s3 }
 0x3cb   : > { %v2802_v44 = vpop.permute.xlu1 %2801  ;;  %v2800_v58 = vpop.permute.xlu0 %2799 }
 0x3cc   : > { %v2807_v0 = vsel %vm6233_vm7, %v2800_v58, %v2802_v44  ;;  %vm6240_vm7 = vcmask 72704  }
 0x3cd   : > { %2817 = vst [vmem:[#allocation2 + $0x3b8] sm:$0x1c] %v2807_v0  ;;  %3559 = vrot.lane.b32.xlu1 %v3551_v7, %s4811_s20 }
 0x3ce   : > { %3563 = vrot.lane.b32.xlu0 %v3552_v1, %s4811_s20  ;;  %s160_s20 = scalar_lea.vmem [#allocation3], %s4294_s16 }
 0x3cf   : > { %v2844_v40 = vpop.permute.xlu1 %2843  ;;  %v2842_v48 = vpop.permute.xlu0 %2841  ;;  %s4008_s23 = sshll.u32 %s160_s20, 4  ;;  %s6119_s23 = int_to_ptr.vmem [resolvable:$true] %s4008_s23 }
 0x3d0   : > { %v2850_v4 = vsel %vm6234_vm9, %v2842_v48, %v2844_v40  ;;  %vm6241_vm9 = vmmov %vm6240_vm7  ;;  %s4689_s7 = scalar_lea.vmem %s6119_s23, 640  ;;  %p4696_p1 = scmp.lt.s32.totalorder %s6119_s23, %s4694_s18 }
 0x3d1   : > { %2860 = vst [vmem:[#allocation2 + $0x3b8] sm:$0xe0] %v2850_v4  ;;  %p4690_p12 = scmp.ne.s32.totalorder %s6119_s23, %s4689_s7  ;;  %p4697_p2 = scmp.lt.s32.totalorder %s4695_s24, %s4689_s7 }
 0x3d3   : > { %v2707_v6 = vpop.permute.xlu1 %2706  ;;  %v2670_v61 = vpop.permute.xlu0 %2669  ;;  %p4691_p13 = pnand %p4690_p12, %p4901_p4  ;;  %p4698_p3 = por %p4697_p2, %p4696_p1 }
 0x3d4   : > { %v2715_v23 = vsel %vm6235_vm10, %v5680_v62, %v2707_v6  ;;  %v2716_v13 = vsel %vm6236_vm12, %v2707_v6, %v2709_v38  ;;  %v2678_v60 = vsel %vm6237_vm13, %v5662_v50, %v2670_v61  ;;  %v2679_v17 = vsel %vm6230_vm1, %v2670_v61, %v2672_v27  ;;  %v3713_v50 = vld [vmem:[#allocation2 + $0x390] sm:$0xff] }
 0x3d5   : > { %2725 = vst [vmem:[#allocation2 + $0x380] sm:$0x70] %v2715_v23  ;;  %2726 = vst [vmem:[#allocation2 + $0x388] sm:$0x70] %v2716_v13  ;;  %vm6242_vm10 = vcmask 850944   ;;  %vm6244_vm13 = vcmask 826368   ;;  %p4692_p0 = pneg %p4691_p13 }
 0x3d6   : > { %2688 = vst [vmem:[#allocation2 + $0x380] sm:$0xe] %v2678_v60  ;;  %2689 = vst [vmem:[#allocation2 + $0x388] sm:$0xe] %v2679_v17  ;;  %vm6245_vm1 = vcmask 818176  }
 0x3d7   : > { %v2798_v10 = vpop.permute.xlu1 %2797  ;;  %v2750_v15 = vpop.permute.xlu0 %2749  ;;  %vm6243_vm12 = vmmov %vm6242_vm10  ;;  %p4699_p5 = pnand %p4698_p3, %p4692_p0 }
 0x3d8   : > { %v2805_v12 = vsel %vm6238_vm5, %v5696_v11, %v2798_v10  ;;  %v2806_v53 = vsel %vm6239_vm6, %v2798_v10, %v2800_v58  ;;  %v2758_v62 = vsel %vm6240_vm7, %v5687_v3, %v2750_v15  ;;  %v2759_v14 = vsel %vm6241_vm9, %v2750_v15, %v2752_v32  ;;  %v3718_v21 = vld [vmem:[#allocation2 + $0x3b8] sm:$0xff]  ;;  %vm6248_vm7 = vmmov %vm6244_vm13 }
 0x3d9   : > { %2815 = vst [vmem:[#allocation2 + $0x3a8] sm:$0x1c] %v2805_v12  ;;  %2816 = vst [vmem:[#allocation2 + $0x3b0] sm:$0x1c] %v2806_v53  ;;  %v4274_v27 = vpack.c.bf16 %v3718_v21, %v3713_v50  ;;  %vm6246_vm5 = vcmask 809984   ;;  %vm6247_vm6 = vcmask 801792  }
 0x3da   : > { %2768 = vst [vmem:[#allocation2 + $0x3a8] ss:$-36 sps:$4 sm:$0x83] %v2758_v62   ;;  %2769 = vst [vmem:[#allocation2 + $0x3b0] ss:$-36 sps:$4 sm:$0x83] %v2759_v14  }
 0x3db   : > { %v2879_v30 = vpop.permute.xlu1 %2878  ;;  %v2840_v37 = vpop.permute.xlu0 %2839  ;;  %4275 = vmatprep.subr.bf16.mxu0 %v4274_v27  ;;  %vm6249_vm9 = vmmov %vm6248_vm7  ;;  %v3648_v12 = vld [vmem:[#allocation2 + $0x188] sm:$0xff]  ;;  %v3643_v27 = vld [vmem:[#allocation2 + $0x160] sm:$0xff] }
 0x3dc   : > { %v2848_v11 = vsel %vm6242_vm10, %v5708_v19, %v2840_v37  ;;  %v2849_v35 = vsel %vm6243_vm12, %v2840_v37, %v2842_v48  ;;  %4277 = vmatpush3.bf16.msra.mxu0 %v4276_v18  ;;  %vm6251_vm10 = vmmov %vm6246_vm5  ;;  %v4280_v29 = vpack.c.bf16 %v3648_v12, %v3643_v27 }
 0x3dd   : > { %2858 = vst [vmem:[#allocation2 + $0x3a8] sm:$0xe0] %v2848_v11  ;;  %2859 = vst [vmem:[#allocation2 + $0x3b0] sm:$0xe0] %v2849_v35 }
 0x3de   : > { %vm6252_vm12 = vmmov %vm6245_vm1 }
 0x3df   : > { %v2922_v3 = vpop.permute.xlu1 %2921  ;;  %v2881_v38 = vpop.permute.xlu0 %2880 }
 0x3e0   : > { %v2887_v39 = vsel %vm2882_vm15, %v2879_v30, %v2881_v38 }
 0x3e1   : > { %2897 = vst [vmem:[#allocation2 + $0x3e0] sm:$0x7] %v2887_v39  ;;  %v3712_v26 = vld [vmem:[#allocation2 + $0x388] sm:$0xff]  ;;  %v3711_v54 = vld [vmem:[#allocation2 + $0x380] sm:$0xff] }
 0x3e3   : > { %v2965_v43 = vpop.permute.xlu1 %2964  ;;  %v2924_v24 = vpop.permute.xlu0 %2923 }
 0x3e4   : > { %v2930_v45 = vsel %vm2925_vm3, %v2922_v3, %v2924_v24  ;;  %v3717_v41 = vld [vmem:[#allocation2 + $0x3b0] sm:$0xff]  ;;  %v3716_v5 = vld [vmem:[#allocation2 + $0x3a8] sm:$0xff] }
 0x3e5   : > { %2940 = vst [vmem:[#allocation2 + $0x3e0] sm:$0x38] %v2930_v45  ;;  %v4242_v19 = vpack.c.bf16 %v3717_v41, %v3712_v26  ;;  %v4244_v56 = vpack.c.bf16 %v3716_v5, %v3711_v54 }
 0x3e7   : > { %v3013_v49 = vpop.permute.xlu1 %3012  ;;  %v2967_v32 = vpop.permute.xlu0 %2966  ;;  %4243 = vmatprep.subr.bf16.mxu1 %v4242_v19 }
 0x3e8   : > { %v2973_v34 = vsel %vm6244_vm13, %v2965_v43, %v2967_v32  ;;  %4245 = vmatpush1.bf16.msra.mxu1 %v4244_v56  ;;  %vm6253_vm13 = vmmov %vm6245_vm1 }
 0x3e9   : > { %2983 = vst [vmem:[#allocation2 + $0x408] ss:$-36 sps:$4 sm:$0xc1] %v2973_v34  }
 0x3eb   : > { %v3050_v57 = vpop.permute.xlu1 %3049  ;;  %v3015_v7 = vpop.permute.xlu0 %3014 }
 0x3ec   : > { %v3021_v1 = vsel %vm6245_vm1, %v3013_v49, %v3015_v7 }
 0x3ed   : > { %3031 = vst [vmem:[#allocation2 + $0x408] sm:$0xe] %v3021_v1 }
 0x3ef   : > { %v3093_v44 = vpop.permute.xlu1 %3092  ;;  %v3052_v58 = vpop.permute.xlu0 %3051 }
 0x3f0   : > { %v3058_v0 = vsel %vm6246_vm5, %v3050_v57, %v3052_v58 }
 0x3f1   : > { %3068 = vst [vmem:[#allocation2 + $0x408] sm:$0x70] %v3058_v0 }
 0x3f3   : > { %v2877_v40 = vpop.permute.xlu1 %2876  ;;  %v3095_v48 = vpop.permute.xlu0 %3094 }
 0x3f4   : > { %v2885_v4 = vsel %vm2882_vm15, %v5736_v63, %v2877_v40  ;;  %v2886_v6 = vsel %vm2882_vm15, %v2877_v40, %v2879_v30  ;;  %v3101_v61 = vsel %vm6247_vm6, %v3093_v44, %v3095_v48  ;;  %vm6250_vm15 = vmmov %vm6246_vm5  ;;  %vm6256_vm5 = vcmask 793600  }
 0x3f5   : > { %2895 = vst [vmem:[#allocation2 + $0x3d0] sm:$0x7] %v2885_v4  ;;  %2896 = vst [vmem:[#allocation2 + $0x3d8] sm:$0x7] %v2886_v6 }
 0x3f6   : > { %3111 = vst [vmem:[#allocation2 + $0x430] ss:$-36 sps:$4 sm:$0x83] %v3101_v61  }
 0x3f7   : > { %v2963_v23 = vpop.permute.xlu1 %2962  ;;  %v2920_v13 = vpop.permute.xlu0 %2919 }
 0x3f8   : > { %v2971_v60 = vsel %vm6248_vm7, %v5757_v16, %v2963_v23  ;;  %v2972_v17 = vsel %vm6249_vm9, %v2963_v23, %v2965_v43  ;;  %v2928_v10 = vsel %vm2925_vm3, %v5747_v2, %v2920_v13  ;;  %v2929_v15 = vsel %vm2925_vm3, %v2920_v13, %v2922_v3  ;;  %v3723_v2 = vld [vmem:[#allocation2 + $0x3e0] sm:$0xff]  ;;  %vm6254_vm3 = vmmov %vm6247_vm6  ;;  %v3658_v23 = vld [vmem:[#allocation2 + $0x1d8] sm:$0xff] }
 0x3f9   : > { %2981 = vst [vmem:[#allocation2 + $0x3f8] ss:$-36 sps:$4 sm:$0xc1] %v2971_v60   ;;  %2982 = vst [vmem:[#allocation2 + $0x400] ss:$-36 sps:$4 sm:$0xc1] %v2972_v17  }
 0x3fa   : > { %2938 = vst [vmem:[#allocation2 + $0x3d0] sm:$0x38] %v2928_v10  ;;  %2939 = vst [vmem:[#allocation2 + $0x3d8] sm:$0x38] %v2929_v15  ;;  %vm6257_vm6 = vcmask 785408   ;;  %vm6258_vm7 = vcmask 523264  }
 0x3fb   : > { %v3048_v63 = vpop.permute.xlu1 %3047  ;;  %v3011_v22 = vpop.permute.xlu0 %3010  ;;  %vm6255_vm1 = vmmov %vm6254_vm3  ;;  %vm6259_vm9 = vcmask 515072  }
 0x3fc   : > { %v3056_v53 = vsel %vm6250_vm15, %v5773_v36, %v3048_v63  ;;  %v3057_v62 = vsel %vm6251_vm10, %v3048_v63, %v3050_v57  ;;  %v3019_v16 = vsel %vm6252_vm12, %v5765_v28, %v3011_v22  ;;  %v3020_v14 = vsel %vm6253_vm13, %v3011_v22, %v3013_v49  ;;  %vm6260_vm15 = vmmov %vm6256_vm5  ;;  %v3653_v63 = vld [vmem:[#allocation2 + $0x1b0] sm:$0xff] }
 0x3fd   : > { %v3728_v50 = vld [vmem:[#allocation2 + $0x408] sm:$0xff]  ;;  %3066 = vst [vmem:[#allocation2 + $0x3f8] sm:$0x70] %v3056_v53  ;;  %3067 = vst [vmem:[#allocation2 + $0x400] sm:$0x70] %v3057_v62  ;;  %vm6262_vm12 = vcmask 506880   ;;  %v4284_v22 = vpack.c.bf16 %v3658_v23, %v3653_v63 }
 0x3fe   : > { %3029 = vst [vmem:[#allocation2 + $0x3f8] sm:$0xe] %v3019_v16  ;;  %3030 = vst [vmem:[#allocation2 + $0x400] sm:$0xe] %v3020_v14  ;;  %v4278_v21 = vpack.c.bf16 %v3728_v50, %v3723_v2 }
 0x3ff   : > { %v3141_v18 = vpop.permute.xlu1 %3140  ;;  %v3091_v30 = vpop.permute.xlu0 %3090  ;;  %vm6261_vm10 = vmmov %vm6256_vm5 }
 0x400   : > { %4279 = vmatprep.subr.bf16.mxu0 %v4278_v21  ;;  %v3099_v36 = vsel %vm6254_vm3, %v5783_v55, %v3091_v30  ;;  %v3100_v37 = vsel %vm6255_vm1, %v3091_v30, %v3093_v44  ;;  %vm6263_vm13 = vmmov %vm6258_vm7 }
 0x401   : > { %4281 = vmatpush3.bf16.msra.mxu0 %v4280_v29  ;;  %3109 = vst [vmem:[#allocation2 + $0x420] ss:$-36 sps:$4 sm:$0x83] %v3099_v36   ;;  %3110 = vst [vmem:[#allocation2 + $0x428] ss:$-36 sps:$4 sm:$0x83] %v3100_v37  }
 0x402   : > { %v3722_v39 = vld [vmem:[#allocation2 + $0x3d8] sm:$0xff]  ;;  %v3721_v26 = vld [vmem:[#allocation2 + $0x3d0] sm:$0xff]  ;;  %vm6264_vm3 = vmmov %vm6258_vm7 }
 0x403   : > { %v3184_v28 = vpop.permute.xlu1 %3183  ;;  %v3143_v11 = vpop.permute.xlu0 %3142  ;;  %vm6265_vm1 = vmmov %vm6257_vm6 }
 0x404   : > { %v3149_v35 = vsel %vm6256_vm5, %v3141_v18, %v3143_v11  ;;  %vm6266_vm5 = vmmov %vm6265_vm1 }
 0x405   : > { %3159 = vst [vmem:[#allocation2 + $0x430] sm:$0x1c] %v3149_v35 }
 0x407   : > { %v3220_v3 = vpop.permute.xlu1 %3219  ;;  %v3186_v38 = vpop.permute.xlu0 %3185 }
 0x408   : > { %v3191_v43 = vsel %vm6257_vm6, %v3184_v28, %v3186_v38  ;;  %v3727_v24 = vld [vmem:[#allocation2 + $0x400] sm:$0xff]  ;;  %v3726_v45 = vld [vmem:[#allocation2 + $0x3f8] sm:$0xff]  ;;  %vm6267_vm6 = vmmov %vm6262_vm12 }
 0x409   : > { %3201 = vst [vmem:[#allocation2 + $0x430] sm:$0xe0] %v3191_v43  ;;  %v4246_v55 = vpack.c.bf16 %v3727_v24, %v3722_v39  ;;  %v4248_v41 = vpack.c.bf16 %v3726_v45, %v3721_v26 }
 0x40b   : > { %v3263_v54 = vpop.permute.xlu1 %3262  ;;  %v3222_v5 = vpop.permute.xlu0 %3221  ;;  %4247 = vmatprep.subr.bf16.mxu1 %v4246_v55 }
 0x40c   : > { %v3228_v19 = vsel %vm6258_vm7, %v3220_v3, %v3222_v5  ;;  %4249 = vmatpush1.bf16.msra.mxu1 %v4248_v41  ;;  %vm6268_vm7 = vmmov %vm6267_vm6  ;;  %v3668_v5 = vld [vmem:[#allocation2 + $0x228] sm:$0xff] }
 0x40d   : > { %3238 = vst [vmem:[#allocation2 + $0x458] sm:$0x7] %v3228_v19 }
 0x40f   : > { %v3306_v56 = vpop.permute.xlu1 %3305  ;;  %v3265_v49 = vpop.permute.xlu0 %3264 }
 0x410   : > { %v3271_v32 = vsel %vm6259_vm9, %v3263_v54, %v3265_v49 }
 0x411   : > { %3281 = vst [vmem:[#allocation2 + $0x458] sm:$0x38] %v3271_v32 }
 0x413   : > { %v3139_v34 = vpop.permute.xlu1 %3138  ;;  %v3308_v57 = vpop.permute.xlu0 %3307 }
 0x414   : > { %v3147_v7 = vsel %vm6260_vm15, %v5813_v33, %v3139_v34  ;;  %v3148_v1 = vsel %vm6261_vm10, %v3139_v34, %v3141_v18  ;;  %v3314_v44 = vsel %vm6262_vm12, %v3306_v56, %v3308_v57  ;;  %vm6269_vm15 = vmmov %vm6259_vm9  ;;  %v3663_v57 = vld [vmem:[#allocation2 + $0x200] sm:$0xff] }
 0x415   : > { %3157 = vst [vmem:[#allocation2 + $0x420] sm:$0x1c] %v3147_v7  ;;  %3158 = vst [vmem:[#allocation2 + $0x428] sm:$0x1c] %v3148_v1  ;;  %v4288_v7 = vpack.c.bf16 %v3668_v5, %v3663_v57 }
 0x416   : > { %3324 = vst [vmem:[#allocation2 + $0x480] ss:$-36 sps:$4 sm:$0xc1] %v3314_v44  }
 0x417   : > { %v3218_v58 = vpop.permute.xlu1 %3217  ;;  %v3182_v0 = vpop.permute.xlu0 %3181 }
 0x418   : > { %v3226_v40 = vsel %vm6263_vm13, %v5828_v59, %v3218_v58  ;;  %v3227_v48 = vsel %vm6264_vm3, %v3218_v58, %v3220_v3  ;;  %v3189_v4 = vsel %vm6265_vm1, %v5820_v42, %v3182_v0  ;;  %v3190_v6 = vsel %vm6266_vm5, %v3182_v0, %v3184_v28  ;;  %v3733_v42 = vld [vmem:[#allocation2 + $0x430] sm:$0xff] }
 0x419   : > { %3236 = vst [vmem:[#allocation2 + $0x448] sm:$0x7] %v3226_v40  ;;  %3237 = vst [vmem:[#allocation2 + $0x450] sm:$0x7] %v3227_v48 }
 0x41a   : > { %3199 = vst [vmem:[#allocation2 + $0x420] sm:$0xe0] %v3189_v4  ;;  %3200 = vst [vmem:[#allocation2 + $0x428] sm:$0xe0] %v3190_v6 }
 0x41b   : > { %v3304_v33 = vpop.permute.xlu1 %3303 }
 0x41c   : > { %v3261_v61 = vpop.permute.xlu0 %3260  ;;  %v3312_v13 = vsel %vm6267_vm6, %v5844_v20, %v3304_v33  ;;  %v3313_v60 = vsel %vm6268_vm7, %v3304_v33, %v3306_v56 }
 0x41d   : > { %v3269_v59 = vsel %vm6259_vm9, %v5836_v8, %v3261_v61  ;;  %v3270_v17 = vsel %vm6269_vm15, %v3261_v61, %v3263_v54  ;;  %v3738_v10 = vld [vmem:[#allocation2 + $0x458] sm:$0xff]  ;;  %3322 = vst [vmem:[#allocation2 + $0x470] ss:$-36 sps:$4 sm:$0xc1] %v3312_v13  }
 0x41e   : > { %3323 = vst [vmem:[#allocation2 + $0x478] ss:$-36 sps:$4 sm:$0xc1] %v3313_v60   ;;  %3279 = vst [vmem:[#allocation2 + $0x448] sm:$0x38] %v3269_v59  ;;  %v4282_v15 = vpack.c.bf16 %v3738_v10, %v3733_v42  ;;  %v3678_v60 = vld [vmem:[#allocation2 + $0x278] sm:$0xff] }
 0x41f   : > { %3280 = vst [vmem:[#allocation2 + $0x450] sm:$0x38] %v3270_v17  ;;  %v3356_v12 = vpop.permute.xlu1 %3355  ;;  %v4688_v42 = vld [vmem:[#allocation2 + $0x4e0] sm:$0xff] }
 0x420   : > { %v3354_v53 = vpop.permute.xlu0 %3353  ;;  %4283 = vmatprep.subr.bf16.mxu0 %v4282_v15 }
 0x421   : > { %v3362_v20 = vsel %vm3357_vm8, %v3354_v53, %v3356_v12  ;;  %4285 = vmatpush3.bf16.msra.mxu0 %v4284_v22  ;;  %v3732_v16 = vld [vmem:[#allocation2 + $0x428] sm:$0xff]  ;;  %v3731_v50 = vld [vmem:[#allocation2 + $0x420] sm:$0xff]  ;;  %v3673_v22 = vld [vmem:[#allocation2 + $0x250] sm:$0xff] }
 0x422   : > { %3372 = vst [vmem:[#allocation2 + $0x480] sm:$0xe] %v3362_v20  ;;  %v4292_v12 = vpack.c.bf16 %v3678_v60, %v3673_v22 }
 0x423   : > { %v3393_v62 = vpop.permute.xlu1 %3392 }
 0x424   : > { %v3391_v8 = vpop.permute.xlu0 %3390 }
 0x425   : > { %v3399_v14 = vsel %vm3394_vm11, %v3391_v8, %v3393_v62  ;;  %v3736_v21 = vld [vmem:[#allocation2 + $0x448] sm:$0xff] }
 0x426   : > { %v3737_v2 = vld [vmem:[#allocation2 + $0x450] sm:$0xff]  ;;  %3409 = vst [vmem:[#allocation2 + $0x480] sm:$0x70] %v3399_v14  ;;  %v4252_v29 = vpack.c.bf16 %v3736_v21, %v3731_v50 }
 0x427   : > { %v4250_v27 = vpack.c.bf16 %v3737_v2, %v3732_v16  ;;  %v3436_v18 = vpop.permute.xlu1 %3435 }
 0x428   : > { %v3434_v30 = vpop.permute.xlu0 %3433 }
 0x429   : > { %4251 = vmatprep.subr.bf16.mxu1 %v4250_v27  ;;  %v3442_v36 = vsel %vm3437_vm2, %v3434_v30, %v3436_v18 }
 0x42a   : > { %4253 = vmatpush1.bf16.msra.mxu1 %v4252_v29  ;;  %3452 = vst [vmem:[#allocation2 + $0x4a8] ss:$-36 sps:$4 sm:$0x83] %v3442_v36  }
 0x42b   : > { %v3484_v37 = vpop.permute.xlu1 %3483 }
 0x42c   : > { %v3482_v28 = vpop.permute.xlu0 %3481 }
 0x42d   : > { %v3490_v11 = vsel %vm3485_vm4, %v3482_v28, %v3484_v37 }
 0x42e   : > { %3500 = vst [vmem:[#allocation2 + $0x4a8] sm:$0x1c] %v3490_v11 }
 0x42f   : > { %v3527_v35 = vpop.permute.xlu1 %3526 }
 0x430   : > { %v3525_v3 = vpop.permute.xlu0 %3524 }
 0x431   : > { %v3533_v38 = vsel %vm3528_vm0, %v3525_v3, %v3527_v35 }
 0x432   : > { %3543 = vst [vmem:[#allocation2 + $0x4a8] sm:$0xe0] %v3533_v38 }
 0x433   : > { %v3389_v39 = vpop.permute.xlu1 %3388 }
 0x434   : > { %v3352_v43 = vpop.permute.xlu0 %3351  ;;  %v3397_v24 = vsel %vm3394_vm11, %v5872_v9, %v3389_v39  ;;  %v3398_v26 = vsel %vm3394_vm11, %v3389_v39, %v3391_v8 }
 0x435   : > { %v3360_v45 = vsel %vm3357_vm8, %v5865_v52, %v3352_v43  ;;  %v3361_v55 = vsel %vm3357_vm8, %v3352_v43, %v3354_v53  ;;  %3407 = vst [vmem:[#allocation2 + $0x470] sm:$0x70] %v3397_v24  ;;  %3408 = vst [vmem:[#allocation2 + $0x478] sm:$0x70] %v3398_v26  ;;  %v3743_v52 = vld [vmem:[#allocation2 + $0x480] sm:$0xff] }
 0x436   : > { %3370 = vst [vmem:[#allocation2 + $0x470] sm:$0xe] %v3360_v45  ;;  %3371 = vst [vmem:[#allocation2 + $0x478] sm:$0xe] %v3361_v55 }
 0x437   : > { %v3480_v41 = vpop.permute.xlu1 %3479 }
 0x438   : > { %v3432_v54 = vpop.permute.xlu0 %3431  ;;  %v3488_v19 = vsel %vm3485_vm4, %v5885_v31, %v3480_v41  ;;  %v3489_v56 = vsel %vm3485_vm4, %v3480_v41, %v3482_v28 }
 0x439   : > { %v3440_v9 = vsel %vm3437_vm2, %v5879_v25, %v3432_v54  ;;  %v3441_v49 = vsel %vm3437_vm2, %v3432_v54, %v3434_v30  ;;  %v3748_v32 = vld [vmem:[#allocation2 + $0x4a8] sm:$0xff]  ;;  %3498 = vst [vmem:[#allocation2 + $0x498] sm:$0x1c] %v3488_v19  ;;  %3499 = vst [vmem:[#allocation2 + $0x4a0] sm:$0x1c] %v3489_v56 }
 0x43a   : > { %3450 = vst [vmem:[#allocation2 + $0x498] ss:$-36 sps:$4 sm:$0x83] %v3440_v9   ;;  %3451 = vst [vmem:[#allocation2 + $0x4a0] ss:$-36 sps:$4 sm:$0x83] %v3441_v49   ;;  %v4286_v34 = vpack.c.bf16 %v3748_v32, %v3743_v52 }
 0x43b   : > { %v3562_v1 = vpop.permute.xlu1 %3561 }
 0x43c   : > { %v3523_v44 = vpop.permute.xlu0 %3522  ;;  %4287 = vmatprep.subr.bf16.mxu0 %v4286_v34 }
 0x43d   : > { %v3531_v31 = vsel %vm3528_vm0, %v5894_v46, %v3523_v44  ;;  %v3532_v58 = vsel %vm3528_vm0, %v3523_v44, %v3525_v3  ;;  %4289 = vmatpush3.bf16.msra.mxu0 %v4288_v7 }
 0x43e   : > { %3541 = vst [vmem:[#allocation2 + $0x498] sm:$0xe0] %v3531_v31  ;;  %3542 = vst [vmem:[#allocation2 + $0x4a0] sm:$0xe0] %v3532_v58 }
 0x43f   : > { %v3560_v25 = vpop.permute.xlu1 %3559 }
 0x440   : > { %v3564_v0 = vpop.permute.xlu0 %3563  ;;  %v3567_v40 = vsel %vm2072_vm14, %v5916_v47, %v3560_v25  ;;  %v3568_v48 = vsel %vm2072_vm14, %v3560_v25, %v3562_v1 }
 0x441   : > { %v3569_v4 = vsel %vm2072_vm14, %v3562_v1, %v3564_v0  ;;  %3577 = vst [vmem:[#allocation2 + $0x4c0] sm:$0x7] %v3567_v40  ;;  %3578 = vst [vmem:[#allocation2 + $0x4c8] sm:$0x7] %v3568_v48  ;;  %v3742_v6 = vld [vmem:[#allocation2 + $0x478] sm:$0xff]  ;;  %v3741_v46 = vld [vmem:[#allocation2 + $0x470] sm:$0xff] }
 0x442   : > { %3579 = vst [vmem:[#allocation2 + $0x4d0] sm:$0x7] %v3569_v4 }
 0x445   : > { %v3747_v33 = vld [vmem:[#allocation2 + $0x4a0] sm:$0xff]  ;;  %v3746_v61 = vld [vmem:[#allocation2 + $0x498] sm:$0xff] }
 0x446   : > { %v4254_v23 = vpack.c.bf16 %v3747_v33, %v3742_v6  ;;  %v4256_v13 = vpack.c.bf16 %v3746_v61, %v3741_v46 }
 0x448   : > { %4255 = vmatprep.subr.bf16.mxu1 %v4254_v23  ;;  %v3752_v59 = vld [vmem:[#allocation2 + $0x4c8] sm:$0xff]  ;;  %v3751_v17 = vld [vmem:[#allocation2 + $0x4c0] sm:$0xff] }
 0x449   : > { %4257 = vmatpush1.bf16.msra.mxu1 %v4256_v13  ;;  %v3753_v47 = vld [vmem:[#allocation2 + $0x4d0] sm:$0xff]  ;;  %v4258_v10 = vpack.c.bf16 %v4688_v42, %v3752_v59  ;;  %v4260_v63 = vpack.c.bf16 %v4688_v42, %v3751_v17 }
 0x44a   : > { %v4290_v15 = vpack.c.bf16 %v4688_v42, %v3753_v47 }
 0x44b   : > { %4259 = vmatprep.subr.bf16.mxu1 %v4258_v10 }
 0x44c   : > { %4291 = vmatprep.subr.bf16.mxu0 %v4290_v15 }
 0x44d   : > { %4261 = vmatpush1.bf16.msra.mxu1 %v4260_v63  ;;  %4293 = vmatpush3.bf16.msra.mxu0 %v4292_v12 }
 0x450   : > { %3966 = vmatmul.mubr.f32.vlgmr.msra.gmra.mrb[2].mxu0 %v5943_v51  ;;  %3895 = vmatmul.mubr.f32.vlgmr.msra.gmra.mrb[0].mxu1 %v5943_v51 }
 0x472   : > { %v3825_v53 = vpop.f32.mrb[0].mxu0 }
 0x473   : > { %v3971_v20 = vmax.f32 %v3825_v53, 0.0  ;;  %v3827_v62 = vpop.f32.mrb[1].mxu0 }
 0x474   : > { %v3972_v8 = vmax.f32 %v3827_v62, 0.0 }
 0x475   : > { %v3976_v16 = vmin.f32 %v3971_v20, 6.0 }
 0x476   : > { %v3977_v14 = vmin.f32 %v3972_v8, 6.0 }
 0x477   : > { %v3981_v2 = vmul.f32 0.16666667, %v3976_v16 }
 0x478   : > { %v3982_v50 = vmul.f32 0.16666667, %v3977_v14 }
 0x479   : > { %3986 = vst [vmem:[%s160_s20] sm:$0xff] %v3981_v2 }
 0x47a   : > { %3987 = vst [vmem:[%s160_s20 + $0x8] sm:$0xff] %v3982_v50 }
 0x523   : > { %v4131_v21 = vpop.f32.mrb[2].mxu0  ;;  %v3896_v27 = vpop.f32.mrb[0].mxu1 }
 0x524   : > { %v3973_v29 = vmax.f32 %v3896_v27, 0.0  ;;  %v4132_v18 = vpop.f32.mrb[3].mxu0  ;;  %v3898_v51 = vpop.f32.mrb[1].mxu1 }
 0x525   : > { %v4133_v30 = vadd.f32 %v4132_v18, %v4131_v21  ;;  %v3974_v36 = vmax.f32 %v3898_v51, 0.0 }
 0x526   : > { %v3978_v37 = vmin.f32 %v3973_v29, 6.0 }
 0x527   : > { %v3975_v28 = vmax.f32 %v4133_v30, 0.0  ;;  %v3979_v11 = vmin.f32 %v3974_v36, 6.0 }
 0x528   : > { %v3983_v35 = vmul.f32 0.16666667, %v3978_v37 }
 0x529   : > { %v3980_v3 = vmin.f32 %v3975_v28, 6.0  ;;  %v3984_v38 = vmul.f32 0.16666667, %v3979_v11 }
 0x52a   : > { %3988 = vst [vmem:[%s160_s20 + $0x10] sm:$0xff] %v3983_v35 }
 0x52b   : > { %v3985_v39 = vmul.f32 0.16666667, %v3980_v3  ;;  %3989 = vst [vmem:[%s160_s20 + $0x18] sm:$0xff] %v3984_v38 }
 0x52d   : > { %3990 = vst [vmem:[%s160_s20 + $0x20] sm:$0xff] %v3985_v39 }
 0x52e   : > { %4702 = shalt.err (!%p4699_p5)
}
 0x52f   : > { %s4703_s25 = scalar_lea.hbm %s6117_s6, 640  ;;  %s4707_s30 = scalar_lea.hbm %s6168_s2, 1280 }
 0x530   : > { %p4704_p6 = scmp.ne.s32.totalorder %s6117_s6, %s4703_s25  ;;  %p4708_p10 = scmp.lt.u32.totalorder %s6117_s6, %s6168_s2 }
 0x531   : > { %p4709_p11 = scmp.lt.u32.totalorder %s4707_s30, %s4703_s25  ;;  %p4711_p13 = scmp.lt.u32.totalorder %s4703_s25, %s6117_s6 }
 0x532   : > { %p4705_p7 = pnand %p4704_p6, %p4901_p4 }
 0x533   : > { %p4710_p12 = por %p4709_p11, %p4708_p10 }
 0x534   : > { %p4706_p9 = pneg %p4705_p7 }
 0x535   : > { %p4712_p0 = por %p4711_p13, %p4710_p12 }
 0x537   : > { %p4713_p1 = pnand %p4712_p0, %p4706_p9 }
 0x539   : > { %4716 = shalt.err (!%p4713_p1)
}
 0x53a   : > { %4295 = dma.vmem_to_hbm [thread:$0]  (%p4901_p4), %s6119_s23, 640, %s6117_s6, %s3992_s12  }
 0x53b PF: > { %p4301_p2 = scmp.ge.s32.totalorder %s4767_s14, 2  ;;  %s4020_s27 = sand.u32 1, %s4747_s9  }
 0x53c   : > { %s4021_s16 = scalar_lea.sflag [#allocation4], %s4020_s27 }
 0x53d   : > { %p4298_p3 = pnand %p4301_p2, %p4908_p8 }
 0x53f   : > { %4742 = dma.done.wait (!%p4298_p3), %s4021_s16, 640  }
 0x540   : > { %4744 = vsyncadd (!%p4298_p3), %s4021_s16, 4294966656  ;;  %s15_s14 = sadd.s32 1, %s4767_s14   ;;  %s6270_s9 = smov %s4751_s10 }
 0x541   : > { %p12_p5 = scmp.ge.s32.totalorder %s15_s14, 4   ;;  %s6271_s10 = smov %s4755_s11 }
 0x542   : > { %s6272_s11 = smov %s4914_s22  ;;  %s6273_s12 = smov %s4763_s13 }
 0x543   : > { %s6274_s13 = smov %s6276_s17  ;;  %14 = sbr.rel (!%p12_p5) target bundleno = 4 (0x4), region = 64 }
 0x54a   :  { %4026 = vsyncpa [#allocation4], 1 }
 0x54b   :  { %4028 = vsyncpa [#allocation4 + $0x1], 1 }

</bundles_post_ra>
